<compile_context>
chip_gen: v5e
topology: v5e:2x2
jax: 0.10.0
libtpu: 0.0.40
codegen_flags: <defaults>
</compile_context>

<pallas_src>
import jax
import jax.numpy as jnp
from jax.experimental import pallas as pl
from jax.experimental.pallas import tpu as pltpu  # noqa: F401  (CompilerParams if scaled up)

# ---- model config (small, consistent with a tiny T5 encoder) ----
VOCAB = 128
D_MODEL = 32
N_HEADS = 4
D_KV = 8            # per-head dim; inner dim = N_HEADS * D_KV = 32
D_FF = 64
N_LAYERS = 2
NUM_BUCKETS = 32
MAX_DISTANCE = 128
EPS = 1e-6
NUM_PASSAGES = 2
INNER = N_HEADS * D_KV


# ---------------- fused Pallas kernel ----------------

def _rmsnorm(x, w):
    var = jnp.mean(x * x, axis=-1, keepdims=True)
    return x * jax.lax.rsqrt(var + EPS) * w


def fused_encoder_kernel(ids_ref, emb_ref, bias_ref,
                         ln1_ref, wqkv_ref, wo_ref,
                         ln2_ref, wi_ref, wof_ref, fln_ref,
                         out_ref):
    """Whole T5 encoder in one kernel invocation (no grid).

    ids_ref  : (T, 1) int32   token ids, T = B*num_passages*L tokens
    emb_ref  : (VOCAB, D)     embedding table
    bias_ref : (H, T, T)      combined bias: rel-pos bias + additive key mask on the
                              per-passage diagonal blocks, big-negative off-diagonal
                              (kills cross-passage attention exactly)
    ln1/2    : (NL, 1, D)     per-layer RMSNorm weights
    wqkv     : (NL, D, 3*H*dk) fused Q|K|V projection
    wo       : (NL, H*dk, D)  attention output projection
    wi/wof   : (NL, D, Dff) / (NL, Dff, D)
    fln_ref  : (1, D)         final RMSNorm weight
    out_ref  : (T, D)
    """
    T = ids_ref.shape[0]
    V = emb_ref.shape[0]
    NL = ln1_ref.shape[0]
    H, dk = N_HEADS, D_KV

    # --- embedding gather fused as one-hot @ table (exact for integer ids) ---
    onehot = (jax.lax.broadcasted_iota(jnp.int32, (T, V), 1) == ids_ref[...]
              ).astype(jnp.float32)                                           # (T, V)
    x = jnp.dot(onehot, emb_ref[...], preferred_element_type=jnp.float32)     # (T, D)

    for layer in range(NL):
        # --- self-attention sublayer (T5: pre-RMSNorm, no scaling, no biases) ---
        xn = _rmsnorm(x, ln1_ref[layer])
        qkv = jnp.dot(xn, wqkv_ref[layer], preferred_element_type=jnp.float32)  # (T, 3*INNER)
        wo_l = wo_ref[layer]                                                     # (INNER, D)

        # per-head (T x T) score tiles across ALL passages at once, stacked along
        # sublanes -> a single softmax pass for every (b, h) pair of this layer.
        scores = []
        for h in range(H):
            c0, c1 = h * dk, (h + 1) * dk
            qh = qkv[:, c0:c1]                       # (T, dk)
            kh = qkv[:, INNER + c0:INNER + c1]       # (T, dk)
            scores.append(jnp.dot(qh, kh.T, preferred_element_type=jnp.float32)
                          + bias_ref[h])
        s = jnp.concatenate(scores, axis=0)          # (H*T, T)
        s = s - jnp.max(s, axis=-1, keepdims=True)
        p = jnp.exp(s)
        p = p * pl.reciprocal(jnp.sum(p, axis=-1, keepdims=True), approx=True)

        # accumulate attention output in registers (no VMEM scratch / masked stores)
        attn = jnp.zeros((T, D_MODEL), jnp.float32)
        for h in range(H):
            c0, c1 = h * dk, (h + 1) * dk
            vh = qkv[:, 2 * INNER + c0:2 * INNER + c1]                           # (T, dk)
            ctx = jnp.dot(p[h * T:(h + 1) * T, :], vh,
                          preferred_element_type=jnp.float32)                    # (T, dk)
            attn = attn + jnp.dot(ctx, wo_l[c0:c1, :],
                                  preferred_element_type=jnp.float32)            # (T, D)
        x = x + attn

        # --- feed-forward sublayer (T5DenseActDense: ReLU) ---
        xn2 = _rmsnorm(x, ln2_ref[layer])
        ff = jnp.maximum(jnp.dot(xn2, wi_ref[layer],
                                 preferred_element_type=jnp.float32), 0.0)
        x = x + jnp.dot(ff, wof_ref[layer], preferred_element_type=jnp.float32)

    # --- final RMSNorm fused into the same kernel ---
    out_ref[...] = _rmsnorm(x, fln_ref[...])


# ---------------- glue: position bias, combined bias, wrapper reshapes ----------------

def relative_position_bucket(rel_pos, num_buckets=NUM_BUCKETS, max_distance=MAX_DISTANCE):
    # bidirectional T5 bucketing
    num_buckets //= 2
    ret = (rel_pos > 0).astype(jnp.int32) * num_buckets
    rel_pos = jnp.abs(rel_pos)
    max_exact = num_buckets // 2
    is_small = rel_pos < max_exact
    rel_pos_f = jnp.maximum(rel_pos.astype(jnp.float32), 1.0)
    large = max_exact + (jnp.log(rel_pos_f / max_exact)
                         / jnp.log(max_distance / max_exact)
                         * (num_buckets - max_exact)).astype(jnp.int32)
    large = jnp.minimum(large, num_buckets - 1)
    return ret + jnp.where(is_small, rel_pos, large)


def compute_position_bias(rel_bias_table, L):
    ctx = jnp.arange(L)[:, None]
    mem = jnp.arange(L)[None, :]
    buckets = relative_position_bucket(mem - ctx)            # (L, L)
    bias = rel_bias_table[buckets]                           # (L, L, H)
    return jnp.transpose(bias, (2, 0, 1))                    # (H, L, L)


def _combined_bias(rel_bias_table, mask, BN, L):
    """(H, T, T) = rel-pos bias + key mask on diagonal blocks, -2e9 off-diagonal."""
    T = BN * L
    pos_bias = compute_position_bias(rel_bias_table, L)                      # (H, L, L)
    eye_blocks = jnp.kron(jnp.eye(BN, dtype=jnp.float32),
                          jnp.ones((L, L), jnp.float32))                     # (T, T)
    pos_full = jnp.tile(pos_bias, (1, BN, BN)) * eye_blocks[None]            # (H, T, T)
    key_mask = ((1.0 - mask.astype(jnp.float32)) * -1e9).reshape(1, 1, T)    # key columns
    block_neg = (1.0 - eye_blocks)[None] * -2e9                              # no cross-passage attn
    return pos_full + key_mask + block_neg


def _encoder_forward(params, input_ids, attention_mask, num_passages):
    B, flat = input_ids.shape
    L = flat // num_passages
    BN = B * num_passages
    T = BN * L                                                # total tokens

    ids = input_ids.reshape(T, 1).astype(jnp.int32)           # view(B*n_passages, -1), flattened
    mask = attention_mask.reshape(BN, L)
    bias = _combined_bias(params["rel_bias"], mask, BN, L)     # (H, T, T), 16 KiB

    out = pl.pallas_call(
        fused_encoder_kernel,
        out_shape=jax.ShapeDtypeStruct((T, D_MODEL), jnp.float32),
    )(ids, params["embedding"], bias,
      params["ln1"], params["wqkv"], params["wo"],
      params["ln2"], params["wi"], params["wof"], params["final_ln"])

    # EncoderWrapper: last_hidden_state.view(B, flat, -1)
    return out.reshape(B, flat, D_MODEL)


encoder_wrapper_forward = jax.jit(_encoder_forward, static_argnums=(3,))


# ---------------- pure-JAX reference (for correctness check) ----------------

def ref_forward(params, input_ids, attention_mask, num_passages):
    B, flat = input_ids.shape
    L = flat // num_passages
    BN = B * num_passages
    ids = input_ids.reshape(BN, L)
    mask = attention_mask.reshape(BN, L)
    h = params["embedding"][ids].astype(jnp.float32)                       # (BN, L, D)
    pos_bias = compute_position_bias(params["rel_bias"], L)                # (H, L, L)
    ext_mask = (1.0 - mask.astype(jnp.float32))[:, None, None, :] * -1e9
    bias = pos_bias[None] + ext_mask                                       # (BN, H, L, L)
    for l in range(N_LAYERS):
        wqkv = params["wqkv"][l]
        wq, wk, wv = wqkv[:, :INNER], wqkv[:, INNER:2 * INNER], wqkv[:, 2 * INNER:]
        wo, wi, wof = params["wo"][l], params["wi"][l], params["wof"][l]
        ln1, ln2 = params["ln1"][l][0], params["ln2"][l][0]
        xn = h * jax.lax.rsqrt(jnp.mean(h * h, -1, keepdims=True) + EPS) * ln1
        q = (xn @ wq).reshape(BN, L, N_HEADS, D_KV)
        k = (xn @ wk).reshape(BN, L, N_HEADS, D_KV)
        v = (xn @ wv).reshape(BN, L, N_HEADS, D_KV)
        s = jnp.einsum("bqhd,bkhd->bhqk", q, k) + bias
        p = jax.nn.softmax(s, axis=-1)
        ctx = jnp.einsum("bhqk,bkhd->bqhd", p, v).reshape(BN, L, INNER)
        h = h + ctx @ wo
        xn2 = h * jax.lax.rsqrt(jnp.mean(h * h, -1, keepdims=True) + EPS) * ln2
        h = h + jnp.maximum(xn2 @ wi, 0.0) @ wof
    h = h * jax.lax.rsqrt(jnp.mean(h * h, -1, keepdims=True) + EPS) * params["final_ln"][0]
    return h.reshape(B, flat, D_MODEL)


# ---------------- deterministic parameter init (weights pre-stacked once) ----------------

def init_params(key):
    ks = iter(jax.random.split(key, 2 + N_LAYERS * 6))
    emb = jax.random.normal(next(ks), (VOCAB, D_MODEL), jnp.float32)
    rel = jax.random.normal(next(ks), (NUM_BUCKETS, N_HEADS), jnp.float32) * 0.02
    wq, wk, wv, wo, wi, wof = [], [], [], [], [], []
    for _ in range(N_LAYERS):
        wq.append(jax.random.normal(next(ks), (D_MODEL, INNER), jnp.float32) * 0.05)
        wk.append(jax.random.normal(next(ks), (D_MODEL, INNER), jnp.float32) * 0.05)
        wv.append(jax.random.normal(next(ks), (D_MODEL, INNER), jnp.float32) * 0.05)
        wo.append(jax.random.normal(next(ks), (INNER, D_MODEL), jnp.float32) * 0.05)
        wi.append(jax.random.normal(next(ks), (D_MODEL, D_FF), jnp.float32) * 0.05)
        wof.append(jax.random.normal(next(ks), (D_FF, D_MODEL), jnp.float32) * 0.05)
    return {
        "embedding": emb,
        "rel_bias": rel,
        "ln1": jnp.ones((N_LAYERS, 1, D_MODEL), jnp.float32),
        "ln2": jnp.ones((N_LAYERS, 1, D_MODEL), jnp.float32),
        "final_ln": jnp.ones((1, D_MODEL), jnp.float32),
        # Q|K|V fused along the output dim: (NL, D, 3*INNER)
        "wqkv": jnp.concatenate([jnp.stack(wq), jnp.stack(wk), jnp.stack(wv)], axis=-1),
        "wo": jnp.stack(wo),       # (NL, INNER, D)
        "wi": jnp.stack(wi),       # (NL, D, D_FF)
        "wof": jnp.stack(wof),     # (NL, D_FF, D)
    }


if __name__ == "__main__":
    key = jax.random.PRNGKey(0)
    k_param, k_ids = jax.random.split(key)
    params = init_params(k_param)

    B = 2
    L = 8
    flat = NUM_PASSAGES * L                      # = 16
    input_ids = jax.random.randint(k_ids, (B, flat), 0, VOCAB, dtype=jnp.int32)
    attention_mask = jnp.ones((B, flat), jnp.int32).at[:, -1].set(0)

    out = encoder_wrapper_forward(params, input_ids, attention_mask, NUM_PASSAGES)
    out = jax.block_until_ready(out)

    ref = ref_forward(params, input_ids, attention_mask, NUM_PASSAGES)
    assert out.shape == (B, flat, D_MODEL)
    max_err = float(jnp.max(jnp.abs(out - ref)))
    # tolerance covers the approximate EUP reciprocal used for the softmax denominator
    assert max_err < 2e-3, f"mismatch vs reference: {max_err}"
    print("KERNEL_OK")
</pallas_src>

<mosaic_0001>
module attributes {stable_mosaic.version = 11 : i64} {
  func.func @fused_encoder_kernel(%arg0: memref<32x1xi32, #tpu.memory_space<vmem>>, %arg1: memref<128x32xf32, #tpu.memory_space<vmem>>, %arg2: memref<4x32x32xf32, #tpu.memory_space<vmem>>, %arg3: memref<2x1x32xf32, #tpu.memory_space<vmem>>, %arg4: memref<2x32x96xf32, #tpu.memory_space<vmem>>, %arg5: memref<2x32x32xf32, #tpu.memory_space<vmem>>, %arg6: memref<2x1x32xf32, #tpu.memory_space<vmem>>, %arg7: memref<2x32x64xf32, #tpu.memory_space<vmem>>, %arg8: memref<2x64x32xf32, #tpu.memory_space<vmem>>, %arg9: memref<1x32xf32, #tpu.memory_space<vmem>>, %arg10: memref<32x32xf32, #tpu.memory_space<vmem>>) attributes {dimension_semantics = [], scalar_prefetch = 0 : i64, scratch_operands = 0 : i64, tpu.core_type = #tpu.core_type<tc>} {
    %0 = tpu.iota {dimensions = array<i32: 1>} : vector<32x128xi32>
    %c0 = arith.constant 0 : index
    %c0_0 = arith.constant 0 : index
    %1 = vector.load %arg0[%c0, %c0_0] : memref<32x1xi32, #tpu.memory_space<vmem>>, vector<32x1xi32>
    %2 = vector.broadcast %1 : vector<32x1xi32> to vector<32x128xi32>
    %3 = arith.cmpi eq, %0, %2 : vector<32x128xi32>
    %4 = arith.extui %3 : vector<32x128xi1> to vector<32x128xi32>
    %5 = arith.sitofp %4 : vector<32x128xi32> to vector<32x128xf32>
    %c0_1 = arith.constant 0 : index
    %c0_2 = arith.constant 0 : index
    %6 = vector.load %arg1[%c0_1, %c0_2] : memref<128x32xf32, #tpu.memory_space<vmem>>, vector<128x32xf32>
    %cst = arith.constant dense<0.000000e+00> : vector<32x32xf32>
    %7 = tpu.matmul %5, %6, %cst {dimension_numbers = #tpu.dot_dimension_numbers<[1], [0], [0], [1], [0, 0, 1, 1], [], []>} : vector<32x128xf32>, vector<128x32xf32>, vector<32x32xf32> -> vector<32x32xf32>
    %c0_3 = arith.constant 0 : index
    %c0_4 = arith.constant 0 : index
    %c0_5 = arith.constant 0 : index
    %8 = vector.load %arg3[%c0_3, %c0_4, %c0_5] : memref<2x1x32xf32, #tpu.memory_space<vmem>>, vector<1x1x32xf32>
    %9 = vector.shape_cast %8 : vector<1x1x32xf32> to vector<1x32xf32>
    %10 = arith.mulf %7, %7 : vector<32x32xf32>
    %cst_6 = arith.constant dense<0.000000e+00> : vector<32xf32>
    %11 = vector.multi_reduction <add>, %10, %cst_6 [1] : vector<32x32xf32> to vector<32xf32>
    %12 = vector.shape_cast %11 : vector<32xf32> to vector<32x1xf32>
    %cst_7 = arith.constant 3.200000e+01 : f32
    %13 = vector.broadcast %cst_7 : f32 to vector<32x1xf32>
    %14 = arith.divf %12, %13 : vector<32x1xf32>
    %cst_8 = arith.constant 9.99999997E-7 : f32
    %15 = vector.broadcast %cst_8 : f32 to vector<32x1xf32>
    %16 = arith.addf %14, %15 : vector<32x1xf32>
    %17 = math.rsqrt %16 : vector<32x1xf32>
    %18 = vector.broadcast %17 : vector<32x1xf32> to vector<32x32xf32>
    %19 = arith.mulf %7, %18 : vector<32x32xf32>
    %20 = vector.broadcast %9 : vector<1x32xf32> to vector<32x32xf32>
    %21 = arith.mulf %19, %20 : vector<32x32xf32>
    %c0_9 = arith.constant 0 : index
    %c0_10 = arith.constant 0 : index
    %c0_11 = arith.constant 0 : index
    %22 = vector.load %arg4[%c0_9, %c0_10, %c0_11] : memref<2x32x96xf32, #tpu.memory_space<vmem>>, vector<1x32x96xf32>
    %23 = vector.shape_cast %22 : vector<1x32x96xf32> to vector<32x96xf32>
    %cst_12 = arith.constant dense<0.000000e+00> : vector<32x96xf32>
    %24 = tpu.matmul %21, %23, %cst_12 {dimension_numbers = #tpu.dot_dimension_numbers<[1], [0], [0], [1], [0, 0, 1, 1], [], []>} : vector<32x32xf32>, vector<32x96xf32>, vector<32x96xf32> -> vector<32x96xf32>
    %c0_13 = arith.constant 0 : index
    %c0_14 = arith.constant 0 : index
    %c0_15 = arith.constant 0 : index
    %25 = vector.load %arg5[%c0_13, %c0_14, %c0_15] : memref<2x32x32xf32, #tpu.memory_space<vmem>>, vector<1x32x32xf32>
    %26 = vector.shape_cast %25 : vector<1x32x32xf32> to vector<32x32xf32>
    %27 = vector.extract_strided_slice %24 {offsets = [0, 0], sizes = [32, 8], strides = [1, 1]} : vector<32x96xf32> to vector<32x8xf32>
    %28 = vector.extract_strided_slice %24 {offsets = [0, 32], sizes = [32, 8], strides = [1, 1]} : vector<32x96xf32> to vector<32x8xf32>
    %29 = tpu.transpose %28, [1, 0] : vector<32x8xf32> -> vector<8x32xf32>
    %cst_16 = arith.constant dense<0.000000e+00> : vector<32x32xf32>
    %30 = tpu.matmul %27, %29, %cst_16 {dimension_numbers = #tpu.dot_dimension_numbers<[1], [0], [0], [1], [0, 0, 1, 1], [], []>} : vector<32x8xf32>, vector<8x32xf32>, vector<32x32xf32> -> vector<32x32xf32>
    %c0_17 = arith.constant 0 : index
    %c0_18 = arith.constant 0 : index
    %c0_19 = arith.constant 0 : index
    %31 = vector.load %arg2[%c0_17, %c0_18, %c0_19] : memref<4x32x32xf32, #tpu.memory_space<vmem>>, vector<1x32x32xf32>
    %32 = vector.shape_cast %31 : vector<1x32x32xf32> to vector<32x32xf32>
    %33 = arith.addf %30, %32 : vector<32x32xf32>
    %34 = vector.extract_strided_slice %24 {offsets = [0, 8], sizes = [32, 8], strides = [1, 1]} : vector<32x96xf32> to vector<32x8xf32>
    %35 = vector.extract_strided_slice %24 {offsets = [0, 40], sizes = [32, 8], strides = [1, 1]} : vector<32x96xf32> to vector<32x8xf32>
    %36 = tpu.transpose %35, [1, 0] : vector<32x8xf32> -> vector<8x32xf32>
    %cst_20 = arith.constant dense<0.000000e+00> : vector<32x32xf32>
    %37 = tpu.matmul %34, %36, %cst_20 {dimension_numbers = #tpu.dot_dimension_numbers<[1], [0], [0], [1], [0, 0, 1, 1], [], []>} : vector<32x8xf32>, vector<8x32xf32>, vector<32x32xf32> -> vector<32x32xf32>
    %c1 = arith.constant 1 : index
    %c0_21 = arith.constant 0 : index
    %c0_22 = arith.constant 0 : index
    %38 = vector.load %arg2[%c1, %c0_21, %c0_22] : memref<4x32x32xf32, #tpu.memory_space<vmem>>, vector<1x32x32xf32>
    %39 = vector.shape_cast %38 : vector<1x32x32xf32> to vector<32x32xf32>
    %40 = arith.addf %37, %39 : vector<32x32xf32>
    %41 = vector.extract_strided_slice %24 {offsets = [0, 16], sizes = [32, 8], strides = [1, 1]} : vector<32x96xf32> to vector<32x8xf32>
    %42 = vector.extract_strided_slice %24 {offsets = [0, 48], sizes = [32, 8], strides = [1, 1]} : vector<32x96xf32> to vector<32x8xf32>
    %43 = tpu.transpose %42, [1, 0] : vector<32x8xf32> -> vector<8x32xf32>
    %cst_23 = arith.constant dense<0.000000e+00> : vector<32x32xf32>
    %44 = tpu.matmul %41, %43, %cst_23 {dimension_numbers = #tpu.dot_dimension_numbers<[1], [0], [0], [1], [0, 0, 1, 1], [], []>} : vector<32x8xf32>, vector<8x32xf32>, vector<32x32xf32> -> vector<32x32xf32>
    %c2 = arith.constant 2 : index
    %c0_24 = arith.constant 0 : index
    %c0_25 = arith.constant 0 : index
    %45 = vector.load %arg2[%c2, %c0_24, %c0_25] : memref<4x32x32xf32, #tpu.memory_space<vmem>>, vector<1x32x32xf32>
    %46 = vector.shape_cast %45 : vector<1x32x32xf32> to vector<32x32xf32>
    %47 = arith.addf %44, %46 : vector<32x32xf32>
    %48 = vector.extract_strided_slice %24 {offsets = [0, 24], sizes = [32, 8], strides = [1, 1]} : vector<32x96xf32> to vector<32x8xf32>
    %49 = vector.extract_strided_slice %24 {offsets = [0, 56], sizes = [32, 8], strides = [1, 1]} : vector<32x96xf32> to vector<32x8xf32>
    %50 = tpu.transpose %49, [1, 0] : vector<32x8xf32> -> vector<8x32xf32>
    %cst_26 = arith.constant dense<0.000000e+00> : vector<32x32xf32>
    %51 = tpu.matmul %48, %50, %cst_26 {dimension_numbers = #tpu.dot_dimension_numbers<[1], [0], [0], [1], [0, 0, 1, 1], [], []>} : vector<32x8xf32>, vector<8x32xf32>, vector<32x32xf32> -> vector<32x32xf32>
    %c3 = arith.constant 3 : index
    %c0_27 = arith.constant 0 : index
    %c0_28 = arith.constant 0 : index
    %52 = vector.load %arg2[%c3, %c0_27, %c0_28] : memref<4x32x32xf32, #tpu.memory_space<vmem>>, vector<1x32x32xf32>
    %53 = vector.shape_cast %52 : vector<1x32x32xf32> to vector<32x32xf32>
    %54 = arith.addf %51, %53 : vector<32x32xf32>
    %55 = tpu.concatenate %33, %40, %47, %54 in 0 : vector<32x32xf32>, vector<32x32xf32>, vector<32x32xf32>, vector<32x32xf32> -> vector<128x32xf32>
    %cst_29 = arith.constant dense<0xFF800000> : vector<128xf32>
    %56 = vector.multi_reduction <maximumf>, %55, %cst_29 [1] : vector<128x32xf32> to vector<128xf32>
    %57 = vector.shape_cast %56 : vector<128xf32> to vector<128x1xf32>
    %58 = vector.broadcast %57 : vector<128x1xf32> to vector<128x32xf32>
    %59 = arith.subf %55, %58 : vector<128x32xf32>
    %60 = math.exp %59 : vector<128x32xf32>
    %cst_30 = arith.constant dense<0.000000e+00> : vector<128xf32>
    %61 = vector.multi_reduction <add>, %60, %cst_30 [1] : vector<128x32xf32> to vector<128xf32>
    %62 = vector.shape_cast %61 : vector<128xf32> to vector<128x1xf32>
    %63 = tpu.reciprocal %62 {approx = true} : vector<128x1xf32> -> vector<128x1xf32>
    %64 = vector.broadcast %63 : vector<128x1xf32> to vector<128x32xf32>
    %65 = arith.mulf %60, %64 : vector<128x32xf32>
    %cst_31 = arith.constant 0.000000e+00 : f32
    %66 = vector.broadcast %cst_31 : f32 to vector<32x32xf32>
    %67 = vector.extract_strided_slice %24 {offsets = [0, 64], sizes = [32, 8], strides = [1, 1]} : vector<32x96xf32> to vector<32x8xf32>
    %68 = vector.extract_strided_slice %65 {offsets = [0, 0], sizes = [32, 32], strides = [1, 1]} : vector<128x32xf32> to vector<32x32xf32>
    %cst_32 = arith.constant dense<0.000000e+00> : vector<32x8xf32>
    %69 = tpu.matmul %68, %67, %cst_32 {dimension_numbers = #tpu.dot_dimension_numbers<[1], [0], [0], [1], [0, 0, 1, 1], [], []>} : vector<32x32xf32>, vector<32x8xf32>, vector<32x8xf32> -> vector<32x8xf32>
    %70 = vector.extract_strided_slice %26 {offsets = [0, 0], sizes = [8, 32], strides = [1, 1]} : vector<32x32xf32> to vector<8x32xf32>
    %cst_33 = arith.constant dense<0.000000e+00> : vector<32x32xf32>
    %71 = tpu.matmul %69, %70, %cst_33 {dimension_numbers = #tpu.dot_dimension_numbers<[1], [0], [0], [1], [0, 0, 1, 1], [], []>} : vector<32x8xf32>, vector<8x32xf32>, vector<32x32xf32> -> vector<32x32xf32>
    %72 = arith.addf %66, %71 : vector<32x32xf32>
    %73 = vector.extract_strided_slice %24 {offsets = [0, 72], sizes = [32, 8], strides = [1, 1]} : vector<32x96xf32> to vector<32x8xf32>
    %74 = vector.extract_strided_slice %65 {offsets = [32, 0], sizes = [32, 32], strides = [1, 1]} : vector<128x32xf32> to vector<32x32xf32>
    %cst_34 = arith.constant dense<0.000000e+00> : vector<32x8xf32>
    %75 = tpu.matmul %74, %73, %cst_34 {dimension_numbers = #tpu.dot_dimension_numbers<[1], [0], [0], [1], [0, 0, 1, 1], [], []>} : vector<32x32xf32>, vector<32x8xf32>, vector<32x8xf32> -> vector<32x8xf32>
    %76 = vector.extract_strided_slice %26 {offsets = [8, 0], sizes = [8, 32], strides = [1, 1]} : vector<32x32xf32> to vector<8x32xf32>
    %cst_35 = arith.constant dense<0.000000e+00> : vector<32x32xf32>
    %77 = tpu.matmul %75, %76, %cst_35 {dimension_numbers = #tpu.dot_dimension_numbers<[1], [0], [0], [1], [0, 0, 1, 1], [], []>} : vector<32x8xf32>, vector<8x32xf32>, vector<32x32xf32> -> vector<32x32xf32>
    %78 = arith.addf %72, %77 : vector<32x32xf32>
    %79 = vector.extract_strided_slice %24 {offsets = [0, 80], sizes = [32, 8], strides = [1, 1]} : vector<32x96xf32> to vector<32x8xf32>
    %80 = vector.extract_strided_slice %65 {offsets = [64, 0], sizes = [32, 32], strides = [1, 1]} : vector<128x32xf32> to vector<32x32xf32>
    %cst_36 = arith.constant dense<0.000000e+00> : vector<32x8xf32>
    %81 = tpu.matmul %80, %79, %cst_36 {dimension_numbers = #tpu.dot_dimension_numbers<[1], [0], [0], [1], [0, 0, 1, 1], [], []>} : vector<32x32xf32>, vector<32x8xf32>, vector<32x8xf32> -> vector<32x8xf32>
    %82 = vector.extract_strided_slice %26 {offsets = [16, 0], sizes = [8, 32], strides = [1, 1]} : vector<32x32xf32> to vector<8x32xf32>
    %cst_37 = arith.constant dense<0.000000e+00> : vector<32x32xf32>
    %83 = tpu.matmul %81, %82, %cst_37 {dimension_numbers = #tpu.dot_dimension_numbers<[1], [0], [0], [1], [0, 0, 1, 1], [], []>} : vector<32x8xf32>, vector<8x32xf32>, vector<32x32xf32> -> vector<32x32xf32>
    %84 = arith.addf %78, %83 : vector<32x32xf32>
    %85 = vector.extract_strided_slice %24 {offsets = [0, 88], sizes = [32, 8], strides = [1, 1]} : vector<32x96xf32> to vector<32x8xf32>
    %86 = vector.extract_strided_slice %65 {offsets = [96, 0], sizes = [32, 32], strides = [1, 1]} : vector<128x32xf32> to vector<32x32xf32>
    %cst_38 = arith.constant dense<0.000000e+00> : vector<32x8xf32>
    %87 = tpu.matmul %86, %85, %cst_38 {dimension_numbers = #tpu.dot_dimension_numbers<[1], [0], [0], [1], [0, 0, 1, 1], [], []>} : vector<32x32xf32>, vector<32x8xf32>, vector<32x8xf32> -> vector<32x8xf32>
    %88 = vector.extract_strided_slice %26 {offsets = [24, 0], sizes = [8, 32], strides = [1, 1]} : vector<32x32xf32> to vector<8x32xf32>
    %cst_39 = arith.constant dense<0.000000e+00> : vector<32x32xf32>
    %89 = tpu.matmul %87, %88, %cst_39 {dimension_numbers = #tpu.dot_dimension_numbers<[1], [0], [0], [1], [0, 0, 1, 1], [], []>} : vector<32x8xf32>, vector<8x32xf32>, vector<32x32xf32> -> vector<32x32xf32>
    %90 = arith.addf %84, %89 : vector<32x32xf32>
    %91 = arith.addf %7, %90 : vector<32x32xf32>
    %c0_40 = arith.constant 0 : index
    %c0_41 = arith.constant 0 : index
    %c0_42 = arith.constant 0 : index
    %92 = vector.load %arg6[%c0_40, %c0_41, %c0_42] : memref<2x1x32xf32, #tpu.memory_space<vmem>>, vector<1x1x32xf32>
    %93 = vector.shape_cast %92 : vector<1x1x32xf32> to vector<1x32xf32>
    %94 = arith.mulf %91, %91 : vector<32x32xf32>
    %cst_43 = arith.constant dense<0.000000e+00> : vector<32xf32>
    %95 = vector.multi_reduction <add>, %94, %cst_43 [1] : vector<32x32xf32> to vector<32xf32>
    %96 = vector.shape_cast %95 : vector<32xf32> to vector<32x1xf32>
    %cst_44 = arith.constant 3.200000e+01 : f32
    %97 = vector.broadcast %cst_44 : f32 to vector<32x1xf32>
    %98 = arith.divf %96, %97 : vector<32x1xf32>
    %cst_45 = arith.constant 9.99999997E-7 : f32
    %99 = vector.broadcast %cst_45 : f32 to vector<32x1xf32>
    %100 = arith.addf %98, %99 : vector<32x1xf32>
    %101 = math.rsqrt %100 : vector<32x1xf32>
    %102 = vector.broadcast %101 : vector<32x1xf32> to vector<32x32xf32>
    %103 = arith.mulf %91, %102 : vector<32x32xf32>
    %104 = vector.broadcast %93 : vector<1x32xf32> to vector<32x32xf32>
    %105 = arith.mulf %103, %104 : vector<32x32xf32>
    %c0_46 = arith.constant 0 : index
    %c0_47 = arith.constant 0 : index
    %c0_48 = arith.constant 0 : index
    %106 = vector.load %arg7[%c0_46, %c0_47, %c0_48] : memref<2x32x64xf32, #tpu.memory_space<vmem>>, vector<1x32x64xf32>
    %107 = vector.shape_cast %106 : vector<1x32x64xf32> to vector<32x64xf32>
    %cst_49 = arith.constant dense<0.000000e+00> : vector<32x64xf32>
    %108 = tpu.matmul %105, %107, %cst_49 {dimension_numbers = #tpu.dot_dimension_numbers<[1], [0], [0], [1], [0, 0, 1, 1], [], []>} : vector<32x32xf32>, vector<32x64xf32>, vector<32x64xf32> -> vector<32x64xf32>
    %cst_50 = arith.constant 0.000000e+00 : f32
    %109 = vector.broadcast %cst_50 : f32 to vector<32x64xf32>
    %110 = arith.maximumf %108, %109 : vector<32x64xf32>
    %c0_51 = arith.constant 0 : index
    %c0_52 = arith.constant 0 : index
    %c0_53 = arith.constant 0 : index
    %111 = vector.load %arg8[%c0_51, %c0_52, %c0_53] : memref<2x64x32xf32, #tpu.memory_space<vmem>>, vector<1x64x32xf32>
    %112 = vector.shape_cast %111 : vector<1x64x32xf32> to vector<64x32xf32>
    %cst_54 = arith.constant dense<0.000000e+00> : vector<32x32xf32>
    %113 = tpu.matmul %110, %112, %cst_54 {dimension_numbers = #tpu.dot_dimension_numbers<[1], [0], [0], [1], [0, 0, 1, 1], [], []>} : vector<32x64xf32>, vector<64x32xf32>, vector<32x32xf32> -> vector<32x32xf32>
    %114 = arith.addf %91, %113 : vector<32x32xf32>
    %c1_55 = arith.constant 1 : index
    %c0_56 = arith.constant 0 : index
    %c0_57 = arith.constant 0 : index
    %115 = vector.load %arg3[%c1_55, %c0_56, %c0_57] : memref<2x1x32xf32, #tpu.memory_space<vmem>>, vector<1x1x32xf32>
    %116 = vector.shape_cast %115 : vector<1x1x32xf32> to vector<1x32xf32>
    %117 = arith.mulf %114, %114 : vector<32x32xf32>
    %cst_58 = arith.constant dense<0.000000e+00> : vector<32xf32>
    %118 = vector.multi_reduction <add>, %117, %cst_58 [1] : vector<32x32xf32> to vector<32xf32>
    %119 = vector.shape_cast %118 : vector<32xf32> to vector<32x1xf32>
    %cst_59 = arith.constant 3.200000e+01 : f32
    %120 = vector.broadcast %cst_59 : f32 to vector<32x1xf32>
    %121 = arith.divf %119, %120 : vector<32x1xf32>
    %cst_60 = arith.constant 9.99999997E-7 : f32
    %122 = vector.broadcast %cst_60 : f32 to vector<32x1xf32>
    %123 = arith.addf %121, %122 : vector<32x1xf32>
    %124 = math.rsqrt %123 : vector<32x1xf32>
    %125 = vector.broadcast %124 : vector<32x1xf32> to vector<32x32xf32>
    %126 = arith.mulf %114, %125 : vector<32x32xf32>
    %127 = vector.broadcast %116 : vector<1x32xf32> to vector<32x32xf32>
    %128 = arith.mulf %126, %127 : vector<32x32xf32>
    %c1_61 = arith.constant 1 : index
    %c0_62 = arith.constant 0 : index
    %c0_63 = arith.constant 0 : index
    %129 = vector.load %arg4[%c1_61, %c0_62, %c0_63] : memref<2x32x96xf32, #tpu.memory_space<vmem>>, vector<1x32x96xf32>
    %130 = vector.shape_cast %129 : vector<1x32x96xf32> to vector<32x96xf32>
    %cst_64 = arith.constant dense<0.000000e+00> : vector<32x96xf32>
    %131 = tpu.matmul %128, %130, %cst_64 {dimension_numbers = #tpu.dot_dimension_numbers<[1], [0], [0], [1], [0, 0, 1, 1], [], []>} : vector<32x32xf32>, vector<32x96xf32>, vector<32x96xf32> -> vector<32x96xf32>
    %c1_65 = arith.constant 1 : index
    %c0_66 = arith.constant 0 : index
    %c0_67 = arith.constant 0 : index
    %132 = vector.load %arg5[%c1_65, %c0_66, %c0_67] : memref<2x32x32xf32, #tpu.memory_space<vmem>>, vector<1x32x32xf32>
    %133 = vector.shape_cast %132 : vector<1x32x32xf32> to vector<32x32xf32>
    %134 = vector.extract_strided_slice %131 {offsets = [0, 0], sizes = [32, 8], strides = [1, 1]} : vector<32x96xf32> to vector<32x8xf32>
    %135 = vector.extract_strided_slice %131 {offsets = [0, 32], sizes = [32, 8], strides = [1, 1]} : vector<32x96xf32> to vector<32x8xf32>
    %136 = tpu.transpose %135, [1, 0] : vector<32x8xf32> -> vector<8x32xf32>
    %cst_68 = arith.constant dense<0.000000e+00> : vector<32x32xf32>
    %137 = tpu.matmul %134, %136, %cst_68 {dimension_numbers = #tpu.dot_dimension_numbers<[1], [0], [0], [1], [0, 0, 1, 1], [], []>} : vector<32x8xf32>, vector<8x32xf32>, vector<32x32xf32> -> vector<32x32xf32>
    %c0_69 = arith.constant 0 : index
    %c0_70 = arith.constant 0 : index
    %c0_71 = arith.constant 0 : index
    %138 = vector.load %arg2[%c0_69, %c0_70, %c0_71] : memref<4x32x32xf32, #tpu.memory_space<vmem>>, vector<1x32x32xf32>
    %139 = vector.shape_cast %138 : vector<1x32x32xf32> to vector<32x32xf32>
    %140 = arith.addf %137, %139 : vector<32x32xf32>
    %141 = vector.extract_strided_slice %131 {offsets = [0, 8], sizes = [32, 8], strides = [1, 1]} : vector<32x96xf32> to vector<32x8xf32>
    %142 = vector.extract_strided_slice %131 {offsets = [0, 40], sizes = [32, 8], strides = [1, 1]} : vector<32x96xf32> to vector<32x8xf32>
    %143 = tpu.transpose %142, [1, 0] : vector<32x8xf32> -> vector<8x32xf32>
    %cst_72 = arith.constant dense<0.000000e+00> : vector<32x32xf32>
    %144 = tpu.matmul %141, %143, %cst_72 {dimension_numbers = #tpu.dot_dimension_numbers<[1], [0], [0], [1], [0, 0, 1, 1], [], []>} : vector<32x8xf32>, vector<8x32xf32>, vector<32x32xf32> -> vector<32x32xf32>
    %c1_73 = arith.constant 1 : index
    %c0_74 = arith.constant 0 : index
    %c0_75 = arith.constant 0 : index
    %145 = vector.load %arg2[%c1_73, %c0_74, %c0_75] : memref<4x32x32xf32, #tpu.memory_space<vmem>>, vector<1x32x32xf32>
    %146 = vector.shape_cast %145 : vector<1x32x32xf32> to vector<32x32xf32>
    %147 = arith.addf %144, %146 : vector<32x32xf32>
    %148 = vector.extract_strided_slice %131 {offsets = [0, 16], sizes = [32, 8], strides = [1, 1]} : vector<32x96xf32> to vector<32x8xf32>
    %149 = vector.extract_strided_slice %131 {offsets = [0, 48], sizes = [32, 8], strides = [1, 1]} : vector<32x96xf32> to vector<32x8xf32>
    %150 = tpu.transpose %149, [1, 0] : vector<32x8xf32> -> vector<8x32xf32>
    %cst_76 = arith.constant dense<0.000000e+00> : vector<32x32xf32>
    %151 = tpu.matmul %148, %150, %cst_76 {dimension_numbers = #tpu.dot_dimension_numbers<[1], [0], [0], [1], [0, 0, 1, 1], [], []>} : vector<32x8xf32>, vector<8x32xf32>, vector<32x32xf32> -> vector<32x32xf32>
    %c2_77 = arith.constant 2 : index
    %c0_78 = arith.constant 0 : index
    %c0_79 = arith.constant 0 : index
    %152 = vector.load %arg2[%c2_77, %c0_78, %c0_79] : memref<4x32x32xf32, #tpu.memory_space<vmem>>, vector<1x32x32xf32>
    %153 = vector.shape_cast %152 : vector<1x32x32xf32> to vector<32x32xf32>
    %154 = arith.addf %151, %153 : vector<32x32xf32>
    %155 = vector.extract_strided_slice %131 {offsets = [0, 24], sizes = [32, 8], strides = [1, 1]} : vector<32x96xf32> to vector<32x8xf32>
    %156 = vector.extract_strided_slice %131 {offsets = [0, 56], sizes = [32, 8], strides = [1, 1]} : vector<32x96xf32> to vector<32x8xf32>
    %157 = tpu.transpose %156, [1, 0] : vector<32x8xf32> -> vector<8x32xf32>
    %cst_80 = arith.constant dense<0.000000e+00> : vector<32x32xf32>
    %158 = tpu.matmul %155, %157, %cst_80 {dimension_numbers = #tpu.dot_dimension_numbers<[1], [0], [0], [1], [0, 0, 1, 1], [], []>} : vector<32x8xf32>, vector<8x32xf32>, vector<32x32xf32> -> vector<32x32xf32>
    %c3_81 = arith.constant 3 : index
    %c0_82 = arith.constant 0 : index
    %c0_83 = arith.constant 0 : index
    %159 = vector.load %arg2[%c3_81, %c0_82, %c0_83] : memref<4x32x32xf32, #tpu.memory_space<vmem>>, vector<1x32x32xf32>
    %160 = vector.shape_cast %159 : vector<1x32x32xf32> to vector<32x32xf32>
    %161 = arith.addf %158, %160 : vector<32x32xf32>
    %162 = tpu.concatenate %140, %147, %154, %161 in 0 : vector<32x32xf32>, vector<32x32xf32>, vector<32x32xf32>, vector<32x32xf32> -> vector<128x32xf32>
    %cst_84 = arith.constant dense<0xFF800000> : vector<128xf32>
    %163 = vector.multi_reduction <maximumf>, %162, %cst_84 [1] : vector<128x32xf32> to vector<128xf32>
    %164 = vector.shape_cast %163 : vector<128xf32> to vector<128x1xf32>
    %165 = vector.broadcast %164 : vector<128x1xf32> to vector<128x32xf32>
    %166 = arith.subf %162, %165 : vector<128x32xf32>
    %167 = math.exp %166 : vector<128x32xf32>
    %cst_85 = arith.constant dense<0.000000e+00> : vector<128xf32>
    %168 = vector.multi_reduction <add>, %167, %cst_85 [1] : vector<128x32xf32> to vector<128xf32>
    %169 = vector.shape_cast %168 : vector<128xf32> to vector<128x1xf32>
    %170 = tpu.reciprocal %169 {approx = true} : vector<128x1xf32> -> vector<128x1xf32>
    %171 = vector.broadcast %170 : vector<128x1xf32> to vector<128x32xf32>
    %172 = arith.mulf %167, %171 : vector<128x32xf32>
    %cst_86 = arith.constant 0.000000e+00 : f32
    %173 = vector.broadcast %cst_86 : f32 to vector<32x32xf32>
    %174 = vector.extract_strided_slice %131 {offsets = [0, 64], sizes = [32, 8], strides = [1, 1]} : vector<32x96xf32> to vector<32x8xf32>
    %175 = vector.extract_strided_slice %172 {offsets = [0, 0], sizes = [32, 32], strides = [1, 1]} : vector<128x32xf32> to vector<32x32xf32>
    %cst_87 = arith.constant dense<0.000000e+00> : vector<32x8xf32>
    %176 = tpu.matmul %175, %174, %cst_87 {dimension_numbers = #tpu.dot_dimension_numbers<[1], [0], [0], [1], [0, 0, 1, 1], [], []>} : vector<32x32xf32>, vector<32x8xf32>, vector<32x8xf32> -> vector<32x8xf32>
    %177 = vector.extract_strided_slice %133 {offsets = [0, 0], sizes = [8, 32], strides = [1, 1]} : vector<32x32xf32> to vector<8x32xf32>
    %cst_88 = arith.constant dense<0.000000e+00> : vector<32x32xf32>
    %178 = tpu.matmul %176, %177, %cst_88 {dimension_numbers = #tpu.dot_dimension_numbers<[1], [0], [0], [1], [0, 0, 1, 1], [], []>} : vector<32x8xf32>, vector<8x32xf32>, vector<32x32xf32> -> vector<32x32xf32>
    %179 = arith.addf %173, %178 : vector<32x32xf32>
    %180 = vector.extract_strided_slice %131 {offsets = [0, 72], sizes = [32, 8], strides = [1, 1]} : vector<32x96xf32> to vector<32x8xf32>
    %181 = vector.extract_strided_slice %172 {offsets = [32, 0], sizes = [32, 32], strides = [1, 1]} : vector<128x32xf32> to vector<32x32xf32>
    %cst_89 = arith.constant dense<0.000000e+00> : vector<32x8xf32>
    %182 = tpu.matmul %181, %180, %cst_89 {dimension_numbers = #tpu.dot_dimension_numbers<[1], [0], [0], [1], [0, 0, 1, 1], [], []>} : vector<32x32xf32>, vector<32x8xf32>, vector<32x8xf32> -> vector<32x8xf32>
    %183 = vector.extract_strided_slice %133 {offsets = [8, 0], sizes = [8, 32], strides = [1, 1]} : vector<32x32xf32> to vector<8x32xf32>
    %cst_90 = arith.constant dense<0.000000e+00> : vector<32x32xf32>
    %184 = tpu.matmul %182, %183, %cst_90 {dimension_numbers = #tpu.dot_dimension_numbers<[1], [0], [0], [1], [0, 0, 1, 1], [], []>} : vector<32x8xf32>, vector<8x32xf32>, vector<32x32xf32> -> vector<32x32xf32>
    %185 = arith.addf %179, %184 : vector<32x32xf32>
    %186 = vector.extract_strided_slice %131 {offsets = [0, 80], sizes = [32, 8], strides = [1, 1]} : vector<32x96xf32> to vector<32x8xf32>
    %187 = vector.extract_strided_slice %172 {offsets = [64, 0], sizes = [32, 32], strides = [1, 1]} : vector<128x32xf32> to vector<32x32xf32>
    %cst_91 = arith.constant dense<0.000000e+00> : vector<32x8xf32>
    %188 = tpu.matmul %187, %186, %cst_91 {dimension_numbers = #tpu.dot_dimension_numbers<[1], [0], [0], [1], [0, 0, 1, 1], [], []>} : vector<32x32xf32>, vector<32x8xf32>, vector<32x8xf32> -> vector<32x8xf32>
    %189 = vector.extract_strided_slice %133 {offsets = [16, 0], sizes = [8, 32], strides = [1, 1]} : vector<32x32xf32> to vector<8x32xf32>
    %cst_92 = arith.constant dense<0.000000e+00> : vector<32x32xf32>
    %190 = tpu.matmul %188, %189, %cst_92 {dimension_numbers = #tpu.dot_dimension_numbers<[1], [0], [0], [1], [0, 0, 1, 1], [], []>} : vector<32x8xf32>, vector<8x32xf32>, vector<32x32xf32> -> vector<32x32xf32>
    %191 = arith.addf %185, %190 : vector<32x32xf32>
    %192 = vector.extract_strided_slice %131 {offsets = [0, 88], sizes = [32, 8], strides = [1, 1]} : vector<32x96xf32> to vector<32x8xf32>
    %193 = vector.extract_strided_slice %172 {offsets = [96, 0], sizes = [32, 32], strides = [1, 1]} : vector<128x32xf32> to vector<32x32xf32>
    %cst_93 = arith.constant dense<0.000000e+00> : vector<32x8xf32>
    %194 = tpu.matmul %193, %192, %cst_93 {dimension_numbers = #tpu.dot_dimension_numbers<[1], [0], [0], [1], [0, 0, 1, 1], [], []>} : vector<32x32xf32>, vector<32x8xf32>, vector<32x8xf32> -> vector<32x8xf32>
    %195 = vector.extract_strided_slice %133 {offsets = [24, 0], sizes = [8, 32], strides = [1, 1]} : vector<32x32xf32> to vector<8x32xf32>
    %cst_94 = arith.constant dense<0.000000e+00> : vector<32x32xf32>
    %196 = tpu.matmul %194, %195, %cst_94 {dimension_numbers = #tpu.dot_dimension_numbers<[1], [0], [0], [1], [0, 0, 1, 1], [], []>} : vector<32x8xf32>, vector<8x32xf32>, vector<32x32xf32> -> vector<32x32xf32>
    %197 = arith.addf %191, %196 : vector<32x32xf32>
    %198 = arith.addf %114, %197 : vector<32x32xf32>
    %c1_95 = arith.constant 1 : index
    %c0_96 = arith.constant 0 : index
    %c0_97 = arith.constant 0 : index
    %199 = vector.load %arg6[%c1_95, %c0_96, %c0_97] : memref<2x1x32xf32, #tpu.memory_space<vmem>>, vector<1x1x32xf32>
    %200 = vector.shape_cast %199 : vector<1x1x32xf32> to vector<1x32xf32>
    %201 = arith.mulf %198, %198 : vector<32x32xf32>
    %cst_98 = arith.constant dense<0.000000e+00> : vector<32xf32>
    %202 = vector.multi_reduction <add>, %201, %cst_98 [1] : vector<32x32xf32> to vector<32xf32>
    %203 = vector.shape_cast %202 : vector<32xf32> to vector<32x1xf32>
    %cst_99 = arith.constant 3.200000e+01 : f32
    %204 = vector.broadcast %cst_99 : f32 to vector<32x1xf32>
    %205 = arith.divf %203, %204 : vector<32x1xf32>
    %cst_100 = arith.constant 9.99999997E-7 : f32
    %206 = vector.broadcast %cst_100 : f32 to vector<32x1xf32>
    %207 = arith.addf %205, %206 : vector<32x1xf32>
    %208 = math.rsqrt %207 : vector<32x1xf32>
    %209 = vector.broadcast %208 : vector<32x1xf32> to vector<32x32xf32>
    %210 = arith.mulf %198, %209 : vector<32x32xf32>
    %211 = vector.broadcast %200 : vector<1x32xf32> to vector<32x32xf32>
    %212 = arith.mulf %210, %211 : vector<32x32xf32>
    %c1_101 = arith.constant 1 : index
    %c0_102 = arith.constant 0 : index
    %c0_103 = arith.constant 0 : index
    %213 = vector.load %arg7[%c1_101, %c0_102, %c0_103] : memref<2x32x64xf32, #tpu.memory_space<vmem>>, vector<1x32x64xf32>
    %214 = vector.shape_cast %213 : vector<1x32x64xf32> to vector<32x64xf32>
    %cst_104 = arith.constant dense<0.000000e+00> : vector<32x64xf32>
    %215 = tpu.matmul %212, %214, %cst_104 {dimension_numbers = #tpu.dot_dimension_numbers<[1], [0], [0], [1], [0, 0, 1, 1], [], []>} : vector<32x32xf32>, vector<32x64xf32>, vector<32x64xf32> -> vector<32x64xf32>
    %cst_105 = arith.constant 0.000000e+00 : f32
    %216 = vector.broadcast %cst_105 : f32 to vector<32x64xf32>
    %217 = arith.maximumf %215, %216 : vector<32x64xf32>
    %c1_106 = arith.constant 1 : index
    %c0_107 = arith.constant 0 : index
    %c0_108 = arith.constant 0 : index
    %218 = vector.load %arg8[%c1_106, %c0_107, %c0_108] : memref<2x64x32xf32, #tpu.memory_space<vmem>>, vector<1x64x32xf32>
    %219 = vector.shape_cast %218 : vector<1x64x32xf32> to vector<64x32xf32>
    %cst_109 = arith.constant dense<0.000000e+00> : vector<32x32xf32>
    %220 = tpu.matmul %217, %219, %cst_109 {dimension_numbers = #tpu.dot_dimension_numbers<[1], [0], [0], [1], [0, 0, 1, 1], [], []>} : vector<32x64xf32>, vector<64x32xf32>, vector<32x32xf32> -> vector<32x32xf32>
    %221 = arith.addf %198, %220 : vector<32x32xf32>
    %c0_110 = arith.constant 0 : index
    %c0_111 = arith.constant 0 : index
    %222 = vector.load %arg9[%c0_110, %c0_111] : memref<1x32xf32, #tpu.memory_space<vmem>>, vector<1x32xf32>
    %223 = arith.mulf %221, %221 : vector<32x32xf32>
    %cst_112 = arith.constant dense<0.000000e+00> : vector<32xf32>
    %224 = vector.multi_reduction <add>, %223, %cst_112 [1] : vector<32x32xf32> to vector<32xf32>
    %225 = vector.shape_cast %224 : vector<32xf32> to vector<32x1xf32>
    %cst_113 = arith.constant 3.200000e+01 : f32
    %226 = vector.broadcast %cst_113 : f32 to vector<32x1xf32>
    %227 = arith.divf %225, %226 : vector<32x1xf32>
    %cst_114 = arith.constant 9.99999997E-7 : f32
    %228 = vector.broadcast %cst_114 : f32 to vector<32x1xf32>
    %229 = arith.addf %227, %228 : vector<32x1xf32>
    %230 = math.rsqrt %229 : vector<32x1xf32>
    %231 = vector.broadcast %230 : vector<32x1xf32> to vector<32x32xf32>
    %232 = arith.mulf %221, %231 : vector<32x32xf32>
    %233 = vector.broadcast %222 : vector<1x32xf32> to vector<32x32xf32>
    %234 = arith.mulf %232, %233 : vector<32x32xf32>
    %c0_115 = arith.constant 0 : index
    %c0_116 = arith.constant 0 : index
    %235 = vector.load %arg10[%c0_115, %c0_116] : memref<32x32xf32, #tpu.memory_space<vmem>>, vector<32x32xf32>
    tpu.vector_store %arg10[%c0_115, %c0_116], %234 {strides = array<i32>} : memref<32x32xf32, #tpu.memory_space<vmem>>, vector<32x32xf32>,
    return
  }
}

</mosaic_0001>

<bundles_post_ra>
// kernel: tile.9
= control target key start
LH: loop header
LB: loop body
LE: loop exit
PB: predicated region body
PF: predicated region fallthrough
CT: control target
= control target key end

     0   :  { %vm516_vm0 = vcmask 1047556   ;;  %s1370_s15 = smov 24   ;;  %s1371_s11 = smov 16   ;;  %vm518_vm1 = vcmask 64512   ;;  %vm663_vm2 = vcmask 261312   ;;  %vm838_vm3 = vcmask 195712   ;;  %s2135_s0 = inlined_call_operand.vmem [shape: f32[4,4,8,4,8], index: 0, kind: input, shape index: {}]   ;;  %s2136_s1 = inlined_call_operand.vmem [shape: f32[4,32,32], index: 1, kind: output, shape index: {}]  }
   0x1   :  { %v1300_v0 = vld [vmem:[%s2135_s0 + $0x1c] sm:$0xf]  ;;  %v1301_v1 = vld [vmem:[%s2135_s0 + $0x18] sm:$0xf]  ;;  %v1302_v2 = vld [vmem:[%s2135_s0 + $0x14] sm:$0xf] }
   0x2   :  { %487 = vst [vmem:[#allocation0 + $0x38] sm:$0xf] %v1300_v0  ;;  %v1303_v3 = vld [vmem:[%s2135_s0 + $0x10] sm:$0xf]  ;;  %v1304_v4 = vld [vmem:[%s2135_s0 + $0xc] sm:$0xf] }
   0x3   :  { %491 = vst [vmem:[#allocation0 + $0x30] sm:$0xf] %v1301_v1  ;;  %v1305_v5 = vld [vmem:[%s2135_s0 + $0x8] sm:$0xf]  ;;  %v1306_v6 = vld [vmem:[%s2135_s0 + $0x4] sm:$0xf] }
   0x4   :  { %495 = vst [vmem:[#allocation0 + $0x28] sm:$0xf] %v1302_v2  ;;  %v512_v7 = vld [vmem:[%s2135_s0] sm:$0xf]  ;;  %v1236_v8 = vld [vmem:[%s2135_s0 + $0x11c] sm:$0xf] }
   0x5   :  { %499 = vst [vmem:[#allocation0 + $0x20] sm:$0xf] %v1303_v3  ;;  %v1237_v9 = vld [vmem:[%s2135_s0 + $0x118] sm:$0xf]  ;;  %v1238_v10 = vld [vmem:[%s2135_s0 + $0x114] sm:$0xf] }
   0x6   :  { %503 = vst [vmem:[#allocation0 + $0x18] sm:$0xf] %v1304_v4  ;;  %v1239_v11 = vld [vmem:[%s2135_s0 + $0x110] sm:$0xf]  ;;  %v1240_v12 = vld [vmem:[%s2135_s0 + $0x10c] sm:$0xf] }
   0x7   :  { %507 = vst [vmem:[#allocation0 + $0x10] sm:$0xf] %v1305_v5  ;;  %v1241_v13 = vld [vmem:[%s2135_s0 + $0x108] sm:$0xf]  ;;  %v1242_v14 = vld [vmem:[%s2135_s0 + $0x104] sm:$0xf] }
   0x8   :  { %511 = vst [vmem:[#allocation0 + $0x8] sm:$0xf] %v1306_v6  ;;  %v1243_v15 = vld [vmem:[%s2135_s0 + $0x100] sm:$0xf]  ;;  %v1268_v17 = vld [vmem:[%s2135_s0 + $0x9c] sm:$0xf] }
   0x9   :  { %513 = vst [vmem:[#allocation0] sm:$0xf] %v512_v7  ;;  %v1269_v18 = vld [vmem:[%s2135_s0 + $0x98] sm:$0xf]  ;;  %v1270_v21 = vld [vmem:[%s2135_s0 + $0x94] sm:$0xf] }
   0xa   :  { %231 = vst [vmem:[#allocation0 + $0x238] sm:$0xf] %v1236_v8  ;;  %v1271_v22 = vld [vmem:[%s2135_s0 + $0x90] sm:$0xf]  ;;  %v1272_v23 = vld [vmem:[%s2135_s0 + $0x8c] sm:$0xf] }
   0xb   :  { %235 = vst [vmem:[#allocation0 + $0x230] sm:$0xf] %v1237_v9  ;;  %v1273_v24 = vld [vmem:[%s2135_s0 + $0x88] sm:$0xf]  ;;  %v1274_v25 = vld [vmem:[%s2135_s0 + $0x84] sm:$0xf] }
   0xc   :  { %239 = vst [vmem:[#allocation0 + $0x228] sm:$0xf] %v1238_v10  ;;  %v658_v16 = vld [vmem:[#allocation0 + $0x3] ss:$8 sm:$0xf0]   ;;  %vm1013_vm4 = vcmask 130112  }
   0xd   :  { %243 = vst [vmem:[#allocation0 + $0x220] sm:$0xf] %v1239_v11  ;;  %v1275_v26 = vld [vmem:[%s2135_s0 + $0x80] sm:$0xf]  ;;  %v1204_v28 = vld [vmem:[%s2135_s0 + $0x19c] sm:$0xf] }
   0xe   :  { %247 = vst [vmem:[#allocation0 + $0x218] sm:$0xf] %v1240_v12  ;;  %v1205_v29 = vld [vmem:[%s2135_s0 + $0x198] sm:$0xf]  ;;  %v1206_v32 = vld [vmem:[%s2135_s0 + $0x194] sm:$0xf] }
   0xf   :  { %251 = vst [vmem:[#allocation0 + $0x210] sm:$0xf] %v1241_v13  ;;  %v1207_v33 = vld [vmem:[%s2135_s0 + $0x190] sm:$0xf]  ;;  %v1208_v34 = vld [vmem:[%s2135_s0 + $0x18c] sm:$0xf] }
  0x10   :  { %v656_v19 = vld [vmem:[#allocation0 + $0x3] ss:$8 sm:$0xf]   ;;  %255 = vst [vmem:[#allocation0 + $0x208] sm:$0xf] %v1242_v14 }
  0x11   :  { %v660_v20 = vsel %vm516_vm0, %v658_v16, %v656_v19  ;;  %259 = vst [vmem:[#allocation0 + $0x200] sm:$0xf] %v1243_v15  ;;  %v1209_v35 = vld [vmem:[%s2135_s0 + $0x188] sm:$0xf]  ;;  %v1210_v36 = vld [vmem:[%s2135_s0 + $0x184] sm:$0xf] }
  0x12   :  { %661 = vrot.lane.b32.xlu0 %v660_v20, %s1370_s15  ;;  %359 = vst [vmem:[#allocation0 + $0x138] sm:$0xf] %v1268_v17  ;;  %v1211_v37 = vld [vmem:[%s2135_s0 + $0x180] sm:$0xf]  ;;  %v1228_v39 = vld [vmem:[%s2135_s0 + $0x13c] sm:$0xf] }
  0x13   :  { %363 = vst [vmem:[#allocation0 + $0x130] sm:$0xf] %v1269_v18  ;;  %v1229_v40 = vld [vmem:[%s2135_s0 + $0x138] sm:$0xf]  ;;  %v1230_v43 = vld [vmem:[%s2135_s0 + $0x134] sm:$0xf] }
  0x14   :  { %367 = vst [vmem:[#allocation0 + $0x128] sm:$0xf] %v1270_v21  ;;  %v679_v27 = vld [vmem:[#allocation0 + $0x203] ss:$8 sm:$0xf0]  }
  0x15   :  { %371 = vst [vmem:[#allocation0 + $0x120] sm:$0xf] %v1271_v22  ;;  %v1231_v44 = vld [vmem:[%s2135_s0 + $0x130] sm:$0xf]  ;;  %v1232_v45 = vld [vmem:[%s2135_s0 + $0x12c] sm:$0xf] }
  0x16   :  { %375 = vst [vmem:[#allocation0 + $0x118] sm:$0xf] %v1272_v23  ;;  %v1233_v46 = vld [vmem:[%s2135_s0 + $0x128] sm:$0xf]  ;;  %v1234_v47 = vld [vmem:[%s2135_s0 + $0x124] sm:$0xf] }
  0x17   :  { %379 = vst [vmem:[#allocation0 + $0x110] sm:$0xf] %v1273_v24  ;;  %v1235_v48 = vld [vmem:[%s2135_s0 + $0x120] sm:$0xf]  ;;  %v1196_v50 = vld [vmem:[%s2135_s0 + $0x1bc] sm:$0xf] }
  0x18   :  { %v677_v30 = vld [vmem:[#allocation0 + $0x203] ss:$8 sm:$0xf]   ;;  %383 = vst [vmem:[#allocation0 + $0x108] sm:$0xf] %v1274_v25 }
  0x19   :  { %v681_v31 = vsel %vm516_vm0, %v679_v27, %v677_v30  ;;  %387 = vst [vmem:[#allocation0 + $0x100] sm:$0xf] %v1275_v26  ;;  %v1197_v51 = vld [vmem:[%s2135_s0 + $0x1b8] sm:$0xf]  ;;  %v1198_v54 = vld [vmem:[%s2135_s0 + $0x1b4] sm:$0xf] }
  0x1a   :  { %682 = vrot.lane.b32.xlu1 %v681_v31, %s1370_s15  ;;  %103 = vst [vmem:[#allocation0 + $0x338] sm:$0xf] %v1204_v28  ;;  %v1199_v55 = vld [vmem:[%s2135_s0 + $0x1b0] sm:$0xf]  ;;  %v1200_v56 = vld [vmem:[%s2135_s0 + $0x1ac] sm:$0xf] }
  0x1b   :  { %107 = vst [vmem:[#allocation0 + $0x330] sm:$0xf] %v1205_v29  ;;  %v1201_v57 = vld [vmem:[%s2135_s0 + $0x1a8] sm:$0xf]  ;;  %v1202_v58 = vld [vmem:[%s2135_s0 + $0x1a4] sm:$0xf] }
  0x1c   :  { %111 = vst [vmem:[#allocation0 + $0x328] sm:$0xf] %v1206_v32  ;;  %v668_v38 = vld [vmem:[#allocation0 + $0x103] ss:$8 sm:$0xf0]  }
  0x1d   :  { %115 = vst [vmem:[#allocation0 + $0x320] sm:$0xf] %v1207_v33  ;;  %v1203_v59 = vld [vmem:[%s2135_s0 + $0x1a0] sm:$0xf]  ;;  %v1292_v61 = vld [vmem:[%s2135_s0 + $0x3c] sm:$0xf] }
  0x1e   :  { %119 = vst [vmem:[#allocation0 + $0x318] sm:$0xf] %v1208_v34  ;;  %v1293_v62 = vld [vmem:[%s2135_s0 + $0x38] sm:$0xf]  ;;  %v1294_v1 = vld [vmem:[%s2135_s0 + $0x34] sm:$0xf] }
  0x1f   :  { %123 = vst [vmem:[#allocation0 + $0x310] sm:$0xf] %v1209_v35  ;;  %v1295_v2 = vld [vmem:[%s2135_s0 + $0x30] sm:$0xf]  ;;  %v1296_v3 = vld [vmem:[%s2135_s0 + $0x2c] sm:$0xf] }
  0x20   :  { %v666_v41 = vld [vmem:[#allocation0 + $0x103] ss:$8 sm:$0xf]   ;;  %127 = vst [vmem:[#allocation0 + $0x308] sm:$0xf] %v1210_v36 }
  0x21   :  { %v670_v42 = vsel %vm516_vm0, %v668_v38, %v666_v41  ;;  %131 = vst [vmem:[#allocation0 + $0x300] sm:$0xf] %v1211_v37  ;;  %v1297_v4 = vld [vmem:[%s2135_s0 + $0x28] sm:$0xf]  ;;  %v1298_v5 = vld [vmem:[%s2135_s0 + $0x24] sm:$0xf] }
  0x22   :  { %671 = vrot.lane.b32.xlu0 %v670_v42, %s1370_s15  ;;  %199 = vst [vmem:[#allocation0 + $0x278] sm:$0xf] %v1228_v39  ;;  %v1299_v6 = vld [vmem:[%s2135_s0 + $0x20] sm:$0xf]  ;;  %v1252_v8 = vld [vmem:[%s2135_s0 + $0xdc] sm:$0xf] }
  0x23   :  { %203 = vst [vmem:[#allocation0 + $0x270] sm:$0xf] %v1229_v40  ;;  %v1253_v9 = vld [vmem:[%s2135_s0 + $0xd8] sm:$0xf]  ;;  %v1254_v12 = vld [vmem:[%s2135_s0 + $0xd4] sm:$0xf] }
  0x24   :  { %207 = vst [vmem:[#allocation0 + $0x268] sm:$0xf] %v1230_v43  ;;  %v690_v49 = vld [vmem:[#allocation0 + $0x303] ss:$8 sm:$0xf0]  }
  0x25   :  { %211 = vst [vmem:[#allocation0 + $0x260] sm:$0xf] %v1231_v44  ;;  %v1255_v13 = vld [vmem:[%s2135_s0 + $0xd0] sm:$0xf]  ;;  %v1256_v14 = vld [vmem:[%s2135_s0 + $0xcc] sm:$0xf] }
  0x26   :  { %215 = vst [vmem:[#allocation0 + $0x258] sm:$0xf] %v1232_v45  ;;  %v1257_v15 = vld [vmem:[%s2135_s0 + $0xc8] sm:$0xf]  ;;  %v1258_v16 = vld [vmem:[%s2135_s0 + $0xc4] sm:$0xf] }
  0x27   :  { %219 = vst [vmem:[#allocation0 + $0x250] sm:$0xf] %v1233_v46  ;;  %v1259_v17 = vld [vmem:[%s2135_s0 + $0xc0] sm:$0xf]  ;;  %v1220_v19 = vld [vmem:[%s2135_s0 + $0x15c] sm:$0xf] }
  0x28   :  { %v688_v52 = vld [vmem:[#allocation0 + $0x303] ss:$8 sm:$0xf]   ;;  %223 = vst [vmem:[#allocation0 + $0x248] sm:$0xf] %v1234_v47 }
  0x29   :  { %v692_v53 = vsel %vm516_vm0, %v690_v49, %v688_v52  ;;  %227 = vst [vmem:[#allocation0 + $0x240] sm:$0xf] %v1235_v48  ;;  %v1221_v20 = vld [vmem:[%s2135_s0 + $0x158] sm:$0xf]  ;;  %v1222_v23 = vld [vmem:[%s2135_s0 + $0x154] sm:$0xf] }
  0x2a   :  { %693 = vrot.lane.b32.xlu1 %v692_v53, %s1370_s15  ;;  %71 = vst [vmem:[#allocation0 + $0x378] sm:$0xf] %v1196_v50  ;;  %v1223_v24 = vld [vmem:[%s2135_s0 + $0x150] sm:$0xf]  ;;  %v1224_v25 = vld [vmem:[%s2135_s0 + $0x14c] sm:$0xf] }
  0x2b   :  { %75 = vst [vmem:[#allocation0 + $0x370] sm:$0xf] %v1197_v51  ;;  %v1225_v26 = vld [vmem:[%s2135_s0 + $0x148] sm:$0xf]  ;;  %v1226_v27 = vld [vmem:[%s2135_s0 + $0x144] sm:$0xf] }
  0x2c   :  { %79 = vst [vmem:[#allocation0 + $0x368] sm:$0xf] %v1198_v54  ;;  %v723_v60 = vld [vmem:[#allocation0 + $0x243] ss:$8 sm:$0xf0]  }
  0x2d   :  { %83 = vst [vmem:[#allocation0 + $0x360] sm:$0xf] %v1199_v55  ;;  %v1227_v28 = vld [vmem:[%s2135_s0 + $0x140] sm:$0xf]  ;;  %v1260_v30 = vld [vmem:[%s2135_s0 + $0xbc] sm:$0xf] }
  0x2e   :  { %87 = vst [vmem:[#allocation0 + $0x358] sm:$0xf] %v1200_v56  ;;  %v1261_v31 = vld [vmem:[%s2135_s0 + $0xb8] sm:$0xf]  ;;  %v1262_v34 = vld [vmem:[%s2135_s0 + $0xb4] sm:$0xf] }
  0x2f   :  { %91 = vst [vmem:[#allocation0 + $0x350] sm:$0xf] %v1201_v57  ;;  %v1263_v35 = vld [vmem:[%s2135_s0 + $0xb0] sm:$0xf]  ;;  %v1264_v36 = vld [vmem:[%s2135_s0 + $0xac] sm:$0xf] }
  0x30   :  { %v721_v63 = vld [vmem:[#allocation0 + $0x243] ss:$8 sm:$0xf]   ;;  %95 = vst [vmem:[#allocation0 + $0x348] sm:$0xf] %v1202_v58 }
  0x31   :  { %v725_v0 = vsel %vm516_vm0, %v723_v60, %v721_v63  ;;  %99 = vst [vmem:[#allocation0 + $0x340] sm:$0xf] %v1203_v59  ;;  %v1265_v37 = vld [vmem:[%s2135_s0 + $0xa8] sm:$0xf]  ;;  %v1266_v38 = vld [vmem:[%s2135_s0 + $0xa4] sm:$0xf] }
  0x32   :  { %726 = vrot.lane.b32.xlu0 %v725_v0, %s1370_s15  ;;  %455 = vst [vmem:[#allocation0 + $0x78] sm:$0xf] %v1292_v61  ;;  %v1267_v39 = vld [vmem:[%s2135_s0 + $0xa0] sm:$0xf]  ;;  %v1276_v41 = vld [vmem:[%s2135_s0 + $0x7c] sm:$0xf] }
  0x33   :  { %459 = vst [vmem:[#allocation0 + $0x70] sm:$0xf] %v1293_v62  ;;  %v1277_v42 = vld [vmem:[%s2135_s0 + $0x78] sm:$0xf]  ;;  %v1278_v45 = vld [vmem:[%s2135_s0 + $0x74] sm:$0xf] }
  0x34   :  { %463 = vst [vmem:[#allocation0 + $0x68] sm:$0xf] %v1294_v1  ;;  %v734_v7 = vld [vmem:[#allocation0 + $0x343] ss:$8 sm:$0xf0]  }
  0x35   :  { %467 = vst [vmem:[#allocation0 + $0x60] sm:$0xf] %v1295_v2  ;;  %v1279_v46 = vld [vmem:[%s2135_s0 + $0x70] sm:$0xf]  ;;  %v1280_v47 = vld [vmem:[%s2135_s0 + $0x6c] sm:$0xf] }
  0x36   :  { %471 = vst [vmem:[#allocation0 + $0x58] sm:$0xf] %v1296_v3  ;;  %v1281_v48 = vld [vmem:[%s2135_s0 + $0x68] sm:$0xf]  ;;  %v1282_v49 = vld [vmem:[%s2135_s0 + $0x64] sm:$0xf] }
  0x37   :  { %475 = vst [vmem:[#allocation0 + $0x50] sm:$0xf] %v1297_v4  ;;  %v1283_v50 = vld [vmem:[%s2135_s0 + $0x60] sm:$0xf]  ;;  %v1244_v52 = vld [vmem:[%s2135_s0 + $0xfc] sm:$0xf] }
  0x38   :  { %v732_v10 = vld [vmem:[#allocation0 + $0x343] ss:$8 sm:$0xf]   ;;  %479 = vst [vmem:[#allocation0 + $0x48] sm:$0xf] %v1298_v5 }
  0x39   :  { %v736_v11 = vsel %vm516_vm0, %v734_v7, %v732_v10  ;;  %483 = vst [vmem:[#allocation0 + $0x40] sm:$0xf] %v1299_v6  ;;  %v1245_v53 = vld [vmem:[%s2135_s0 + $0xf8] sm:$0xf]  ;;  %v1246_v56 = vld [vmem:[%s2135_s0 + $0xf4] sm:$0xf] }
  0x3a   :  { %737 = vrot.lane.b32.xlu1 %v736_v11, %s1370_s15  ;;  %295 = vst [vmem:[#allocation0 + $0x1b8] sm:$0xf] %v1252_v8  ;;  %v1247_v57 = vld [vmem:[%s2135_s0 + $0xf0] sm:$0xf]  ;;  %v1248_v58 = vld [vmem:[%s2135_s0 + $0xec] sm:$0xf] }
  0x3b   :  { %299 = vst [vmem:[#allocation0 + $0x1b0] sm:$0xf] %v1253_v9  ;;  %v1249_v59 = vld [vmem:[%s2135_s0 + $0xe8] sm:$0xf]  ;;  %v1250_v60 = vld [vmem:[%s2135_s0 + $0xe4] sm:$0xf] }
  0x3c   :  { %303 = vst [vmem:[#allocation0 + $0x1a8] sm:$0xf] %v1254_v12  ;;  %v701_v18 = vld [vmem:[#allocation0 + $0x43] ss:$8 sm:$0xf0]  }
  0x3d   :  { %307 = vst [vmem:[#allocation0 + $0x1a0] sm:$0xf] %v1255_v13  ;;  %v1251_v61 = vld [vmem:[%s2135_s0 + $0xe0] sm:$0xf]  ;;  %v1284_v63 = vld [vmem:[%s2135_s0 + $0x5c] sm:$0xf] }
  0x3e   :  { %311 = vst [vmem:[#allocation0 + $0x198] sm:$0xf] %v1256_v14  ;;  %v1285_v0 = vld [vmem:[%s2135_s0 + $0x58] sm:$0xf]  ;;  %v1286_v3 = vld [vmem:[%s2135_s0 + $0x54] sm:$0xf] }
  0x3f   :  { %315 = vst [vmem:[#allocation0 + $0x190] sm:$0xf] %v1257_v15  ;;  %v1287_v4 = vld [vmem:[%s2135_s0 + $0x50] sm:$0xf]  ;;  %v1288_v5 = vld [vmem:[%s2135_s0 + $0x4c] sm:$0xf] }
  0x40   :  { %v699_v21 = vld [vmem:[#allocation0 + $0x43] ss:$8 sm:$0xf]   ;;  %319 = vst [vmem:[#allocation0 + $0x188] sm:$0xf] %v1258_v16 }
  0x41   :  { %v703_v22 = vsel %vm516_vm0, %v701_v18, %v699_v21  ;;  %323 = vst [vmem:[#allocation0 + $0x180] sm:$0xf] %v1259_v17  ;;  %v1289_v6 = vld [vmem:[%s2135_s0 + $0x48] sm:$0xf]  ;;  %v1290_v7 = vld [vmem:[%s2135_s0 + $0x44] sm:$0xf] }
  0x42   :  { %704 = vrot.lane.b32.xlu2 %v703_v22, %s1370_s15  ;;  %167 = vst [vmem:[#allocation0 + $0x2b8] sm:$0xf] %v1220_v19  ;;  %v1291_v8 = vld [vmem:[%s2135_s0 + $0x40] sm:$0xf]  ;;  %v1180_v10 = vld [vmem:[%s2135_s0 + $0x1fc] sm:$0xf] }
  0x43   :  { %171 = vst [vmem:[#allocation0 + $0x2b0] sm:$0xf] %v1221_v20  ;;  %v1181_v11 = vld [vmem:[%s2135_s0 + $0x1f8] sm:$0xf]  ;;  %v1182_v14 = vld [vmem:[%s2135_s0 + $0x1f4] sm:$0xf] }
  0x44   :  { %175 = vst [vmem:[#allocation0 + $0x2a8] sm:$0xf] %v1222_v23  ;;  %v756_v29 = vld [vmem:[#allocation0 + $0x183] ss:$8 sm:$0xf0]  }
  0x45   :  { %179 = vst [vmem:[#allocation0 + $0x2a0] sm:$0xf] %v1223_v24  ;;  %v1183_v15 = vld [vmem:[%s2135_s0 + $0x1f0] sm:$0xf]  ;;  %v1184_v18 = vld [vmem:[%s2135_s0 + $0x1ec] sm:$0xf] }
  0x46   :  { %183 = vst [vmem:[#allocation0 + $0x298] sm:$0xf] %v1224_v25  ;;  %v831_v16 = vld [vmem:[#allocation0 + $0x2] ss:$8 sm:$0xf]  }
  0x47   :  { %187 = vst [vmem:[#allocation0 + $0x290] sm:$0xf] %v1225_v26  ;;  %v833_v17 = vld [vmem:[#allocation0 + $0x2] ss:$8 sm:$0xf0]  }
  0x48   :  { %v754_v32 = vld [vmem:[#allocation0 + $0x183] ss:$8 sm:$0xf]   ;;  %191 = vst [vmem:[#allocation0 + $0x288] sm:$0xf] %v1226_v27  ;;  %v835_v23 = vsel %vm516_vm0, %v833_v17, %v831_v16 }
  0x49   :  { %v758_v33 = vsel %vm516_vm0, %v756_v29, %v754_v32  ;;  %195 = vst [vmem:[#allocation0 + $0x280] sm:$0xf] %v1227_v28  ;;  %v1185_v19 = vld [vmem:[%s2135_s0 + $0x1e8] sm:$0xf]  ;;  %v1186_v20 = vld [vmem:[%s2135_s0 + $0x1e4] sm:$0xf] }
  0x4a   :  { %759 = vrot.lane.b32.xlu0 %v758_v33, %s1370_s15  ;;  %327 = vst [vmem:[#allocation0 + $0x178] sm:$0xf] %v1260_v30  ;;  %v1187_v21 = vld [vmem:[%s2135_s0 + $0x1e0] sm:$0xf]  ;;  %v1188_v24 = vld [vmem:[%s2135_s0 + $0x1dc] sm:$0xf] }
  0x4b   :  { %331 = vst [vmem:[#allocation0 + $0x170] sm:$0xf] %v1261_v31  ;;  %v1189_v25 = vld [vmem:[%s2135_s0 + $0x1d8] sm:$0xf]  ;;  %v1190_v28 = vld [vmem:[%s2135_s0 + $0x1d4] sm:$0xf] }
  0x4c   :  { %335 = vst [vmem:[#allocation0 + $0x168] sm:$0xf] %v1262_v34  ;;  %v767_v40 = vld [vmem:[#allocation0 + $0x283] ss:$8 sm:$0xf0]  }
  0x4d   :  { %339 = vst [vmem:[#allocation0 + $0x160] sm:$0xf] %v1263_v35  ;;  %v863_v29 = vld [vmem:[#allocation0 + $0x302] ss:$8 sm:$0xf]  }
  0x4e   :  { %343 = vst [vmem:[#allocation0 + $0x158] sm:$0xf] %v1264_v36  ;;  %v865_v30 = vld [vmem:[#allocation0 + $0x302] ss:$8 sm:$0xf0]  }
  0x4f   :  { %347 = vst [vmem:[#allocation0 + $0x150] sm:$0xf] %v1265_v37  ;;  %v1191_v31 = vld [vmem:[%s2135_s0 + $0x1d0] sm:$0xf]  ;;  %v1192_v32 = vld [vmem:[%s2135_s0 + $0x1cc] sm:$0xf]  ;;  %v867_v37 = vsel %vm516_vm0, %v865_v30, %v863_v29 }
  0x50   :  { %v765_v43 = vld [vmem:[#allocation0 + $0x283] ss:$8 sm:$0xf]   ;;  %351 = vst [vmem:[#allocation0 + $0x148] sm:$0xf] %v1266_v38 }
  0x51   :  { %v769_v44 = vsel %vm516_vm0, %v767_v40, %v765_v43  ;;  %355 = vst [vmem:[#allocation0 + $0x140] sm:$0xf] %v1267_v39  ;;  %v1193_v33 = vld [vmem:[%s2135_s0 + $0x1c8] sm:$0xf]  ;;  %v1194_v34 = vld [vmem:[%s2135_s0 + $0x1c4] sm:$0xf] }
  0x52   :  { %770 = vrot.lane.b32.xlu1 %v769_v44, %s1370_s15  ;;  %391 = vst [vmem:[#allocation0 + $0xf8] sm:$0xf] %v1276_v41  ;;  %v1195_v35 = vld [vmem:[%s2135_s0 + $0x1c0] sm:$0xf]  ;;  %v1212_v38 = vld [vmem:[%s2135_s0 + $0x17c] sm:$0xf] }
  0x53   :  { %395 = vst [vmem:[#allocation0 + $0xf0] sm:$0xf] %v1277_v42  ;;  %v1213_v39 = vld [vmem:[%s2135_s0 + $0x178] sm:$0xf]  ;;  %v1214_v42 = vld [vmem:[%s2135_s0 + $0x174] sm:$0xf] }
  0x54   :  { %399 = vst [vmem:[#allocation0 + $0xe8] sm:$0xf] %v1278_v45  ;;  %v712_v51 = vld [vmem:[#allocation0 + $0x143] ss:$8 sm:$0xf0]  }
  0x55   :  { %403 = vst [vmem:[#allocation0 + $0xe0] sm:$0xf] %v1279_v46  ;;  %v852_v43 = vld [vmem:[#allocation0 + $0x202] ss:$8 sm:$0xf]  }
  0x56   :  { %407 = vst [vmem:[#allocation0 + $0xd8] sm:$0xf] %v1280_v47  ;;  %v854_v44 = vld [vmem:[#allocation0 + $0x202] ss:$8 sm:$0xf0]  }
  0x57   :  { %411 = vst [vmem:[#allocation0 + $0xd0] sm:$0xf] %v1281_v48  ;;  %v1215_v45 = vld [vmem:[%s2135_s0 + $0x170] sm:$0xf]  ;;  %v1216_v48 = vld [vmem:[%s2135_s0 + $0x16c] sm:$0xf] }
  0x58   :  { %v710_v54 = vld [vmem:[#allocation0 + $0x143] ss:$8 sm:$0xf]   ;;  %415 = vst [vmem:[#allocation0 + $0xc8] sm:$0xf] %v1282_v49 }
  0x59   :  { %v714_v55 = vsel %vm516_vm0, %v712_v51, %v710_v54  ;;  %419 = vst [vmem:[#allocation0 + $0xc0] sm:$0xf] %v1283_v50  ;;  %v896_v46 = vld [vmem:[#allocation0 + $0x242] ss:$8 sm:$0xf]  }
  0x5a   :  { %715 = vrot.lane.b32.xlu2 %v714_v55, %s1370_s15  ;;  %263 = vst [vmem:[#allocation0 + $0x1f8] sm:$0xf] %v1244_v52  ;;  %v898_v47 = vld [vmem:[#allocation0 + $0x242] ss:$8 sm:$0xf0]  }
  0x5b   :  { %267 = vst [vmem:[#allocation0 + $0x1f0] sm:$0xf] %v1245_v53  ;;  %v1217_v49 = vld [vmem:[%s2135_s0 + $0x168] sm:$0xf]  ;;  %v1218_v50 = vld [vmem:[%s2135_s0 + $0x164] sm:$0xf]  ;;  %v856_v53 = vsel %vm516_vm0, %v854_v44, %v852_v43  ;;  %v900_v55 = vsel %vm516_vm0, %v898_v47, %v896_v46 }
  0x5c   :  { %271 = vst [vmem:[#allocation0 + $0x1e8] sm:$0xf] %v1246_v56  ;;  %v789_v62 = vld [vmem:[#allocation0 + $0xc3] ss:$8 sm:$0xf0]  }
  0x5d   :  { %275 = vst [vmem:[#allocation0 + $0x1e0] sm:$0xf] %v1247_v57  ;;  %v1219_v51 = vld [vmem:[%s2135_s0 + $0x160] sm:$0xf]  ;;  %s1372_s0 = smov 8  }
  0x5e   :  { %279 = vst [vmem:[#allocation0 + $0x1d8] sm:$0xf] %v1248_v58  ;;  %v885_v57 = vld [vmem:[#allocation0 + $0x142] ss:$8 sm:$0xf]  }
  0x5f   :  { %283 = vst [vmem:[#allocation0 + $0x1d0] sm:$0xf] %v1249_v59  ;;  %v887_v58 = vld [vmem:[#allocation0 + $0x142] ss:$8 sm:$0xf0]  }
  0x60   :  { %v787_v1 = vld [vmem:[#allocation0 + $0xc3] ss:$8 sm:$0xf]   ;;  %287 = vst [vmem:[#allocation0 + $0x1c8] sm:$0xf] %v1250_v60 }
  0x61   :  { %v791_v2 = vsel %vm516_vm0, %v789_v62, %v787_v1  ;;  %291 = vst [vmem:[#allocation0 + $0x1c0] sm:$0xf] %v1251_v61  ;;  %v929_v59 = vld [vmem:[#allocation0 + $0x182] ss:$8 sm:$0xf]   ;;  %v889_v62 = vsel %vm516_vm0, %v887_v58, %v885_v57 }
  0x62   :  { %792 = vrot.lane.b32.xlu0 %v791_v2, %s1370_s15  ;;  %423 = vst [vmem:[#allocation0 + $0xb8] sm:$0xf] %v1284_v63  ;;  %v931_v60 = vld [vmem:[#allocation0 + $0x182] ss:$8 sm:$0xf0]  }
  0x63   :  { %427 = vst [vmem:[#allocation0 + $0xb0] sm:$0xf] %v1285_v0  ;;  %v933_v0 = vsel %vm516_vm0, %v931_v60, %v929_v59  ;;  %v841_v2 = vld [vmem:[#allocation0 + $0x102] ss:$8 sm:$0xf]  }
  0x64   :  { %431 = vst [vmem:[#allocation0 + $0xa8] sm:$0xf] %v1286_v3  ;;  %v800_v9 = vld [vmem:[#allocation0 + $0x1c3] ss:$8 sm:$0xf0]  }
  0x65   :  { %435 = vst [vmem:[#allocation0 + $0xa0] sm:$0xf] %v1287_v4  ;;  %v843_v3 = vld [vmem:[#allocation0 + $0x102] ss:$8 sm:$0xf0]  }
  0x66   :  { %439 = vst [vmem:[#allocation0 + $0x98] sm:$0xf] %v1288_v5  ;;  %v940_v29 = vld [vmem:[#allocation0 + $0x282] ss:$8 sm:$0xf]  }
  0x67   :  { %443 = vst [vmem:[#allocation0 + $0x90] sm:$0xf] %v1289_v6  ;;  %v962_v6 = vld [vmem:[#allocation0 + $0xc2] ss:$8 sm:$0xf]  }
  0x68   :  { %v798_v12 = vld [vmem:[#allocation0 + $0x1c3] ss:$8 sm:$0xf]   ;;  %447 = vst [vmem:[#allocation0 + $0x88] sm:$0xf] %v1290_v7 }
  0x69   :  { %v802_v13 = vsel %vm516_vm0, %v800_v9, %v798_v12  ;;  %451 = vst [vmem:[#allocation0 + $0x80] sm:$0xf] %v1291_v8  ;;  %v964_v7 = vld [vmem:[#allocation0 + $0xc2] ss:$8 sm:$0xf0]   ;;  %v845_v8 = vsel %vm516_vm0, %v843_v3, %v841_v2 }
  0x6a   :  { %803 = vrot.lane.b32.xlu1 %v802_v13, %s1370_s15  ;;  %7 = vst [vmem:[#allocation0 + $0x3f8] sm:$0xf] %v1180_v10  ;;  %v966_v10 = vsel %vm516_vm0, %v964_v7, %v962_v6  ;;  %v876_v12 = vld [vmem:[#allocation0 + $0x42] ss:$8 sm:$0xf0]  }
  0x6b   :  { %11 = vst [vmem:[#allocation0 + $0x3f0] sm:$0xf] %v1181_v11  ;;  %v874_v11 = vld [vmem:[#allocation0 + $0x42] ss:$8 sm:$0xf]  }
  0x6c   :  { %15 = vst [vmem:[#allocation0 + $0x3e8] sm:$0xf] %v1182_v14  ;;  %v745_v22 = vld [vmem:[#allocation0 + $0x83] ss:$8 sm:$0xf0]   ;;  %v878_v17 = vsel %vm516_vm0, %v876_v12, %v874_v11 }
  0x6d   :  { %19 = vst [vmem:[#allocation0 + $0x3e0] sm:$0xf] %v1183_v15  ;;  %v920_v5 = vld [vmem:[#allocation0 + $0x82] ss:$8 sm:$0xf0]  }
  0x6e   :  { %23 = vst [vmem:[#allocation0 + $0x3d8] sm:$0xf] %v1184_v18  ;;  %v942_v30 = vld [vmem:[#allocation0 + $0x282] ss:$8 sm:$0xf0]  }
  0x6f   :  { %27 = vst [vmem:[#allocation0 + $0x3d0] sm:$0xf] %v1185_v19  ;;  %v584_v43 = vld [vmem:[#allocation0 + $0x200] ss:$8 sm:$0xf]   ;;  %v944_v47 = vsel %vm516_vm0, %v942_v30, %v940_v29 }
  0x70   :  { %v743_v26 = vld [vmem:[#allocation0 + $0x83] ss:$8 sm:$0xf]   ;;  %31 = vst [vmem:[#allocation0 + $0x3c8] sm:$0xf] %v1186_v20 }
  0x71   :  { %v747_v27 = vsel %vm516_vm0, %v745_v22, %v743_v26  ;;  %35 = vst [vmem:[#allocation0 + $0x3c0] sm:$0xf] %v1187_v21  ;;  %v918_v4 = vld [vmem:[#allocation0 + $0x82] ss:$8 sm:$0xf]  }
  0x72   :  { %748 = vrot.lane.b32.xlu2 %v747_v27, %s1370_s15  ;;  %836 = vrot.lane.b32.xlu1 %v835_v23, %s1371_s11  ;;  %39 = vst [vmem:[#allocation0 + $0x3b8] sm:$0xf] %v1188_v24  ;;  %v922_v9 = vsel %vm516_vm0, %v920_v5, %v918_v4  ;;  %v907_v20 = vld [vmem:[#allocation0 + $0x342] ss:$8 sm:$0xf]  }
  0x73   :  { %43 = vst [vmem:[#allocation0 + $0x3b0] sm:$0xf] %v1189_v25  ;;  %v909_v21 = vld [vmem:[#allocation0 + $0x342] ss:$8 sm:$0xf0]  }
  0x74   :  { %47 = vst [vmem:[#allocation0 + $0x3a8] sm:$0xf] %v1190_v28  ;;  %v822_v36 = vld [vmem:[#allocation0 + $0x3c3] ss:$8 sm:$0xf0]   ;;  %v911_v26 = vsel %vm516_vm0, %v909_v21, %v907_v20 }
  0x75   :  { %51 = vst [vmem:[#allocation0 + $0x3a0] sm:$0xf] %v1191_v31  ;;  %v997_v16 = vld [vmem:[#allocation0 + $0x3c2] ss:$8 sm:$0xf0]  }
  0x76   :  { %55 = vst [vmem:[#allocation0 + $0x398] sm:$0xf] %v1192_v32  ;;  %v1027_v24 = vld [vmem:[#allocation0 + $0x201] ss:$8 sm:$0xf]  }
  0x77   :  { %59 = vst [vmem:[#allocation0 + $0x390] sm:$0xf] %v1193_v33  ;;  %v1029_v25 = vld [vmem:[#allocation0 + $0x201] ss:$8 sm:$0xf0]  }
  0x78   :  { %v820_v40 = vld [vmem:[#allocation0 + $0x3c3] ss:$8 sm:$0xf]   ;;  %63 = vst [vmem:[#allocation0 + $0x388] sm:$0xf] %v1194_v34  ;;  %v1031_v28 = vsel %vm516_vm0, %v1029_v25, %v1027_v24 }
  0x79   :  { %v824_v41 = vsel %vm516_vm0, %v822_v36, %v820_v40  ;;  %67 = vst [vmem:[#allocation0 + $0x380] sm:$0xf] %v1195_v35  ;;  %v995_v15 = vld [vmem:[#allocation0 + $0x3c2] ss:$8 sm:$0xf]  }
  0x7a   :  { %825 = vrot.lane.b32.xlu0 %v824_v41, %s1370_s15  ;;  %868 = vrot.lane.b32.xlu1 %v867_v37, %s1371_s11  ;;  %135 = vst [vmem:[#allocation0 + $0x2f8] sm:$0xf] %v1212_v38  ;;  %v999_v19 = vsel %vm516_vm0, %v997_v16, %v995_v15  ;;  %v1016_v31 = vld [vmem:[#allocation0 + $0x101] ss:$8 sm:$0xf]  }
  0x7b   :  { %139 = vst [vmem:[#allocation0 + $0x2f0] sm:$0xf] %v1213_v39  ;;  %v1018_v32 = vld [vmem:[#allocation0 + $0x101] ss:$8 sm:$0xf0]  }
  0x7c   :  { %143 = vst [vmem:[#allocation0 + $0x2e8] sm:$0xf] %v1214_v42  ;;  %v778_v52 = vld [vmem:[#allocation0 + $0x383] ss:$8 sm:$0xf0]  }
  0x7d   :  { %147 = vst [vmem:[#allocation0 + $0x2e0] sm:$0xf] %v1215_v45  ;;  %v953_v14 = vld [vmem:[#allocation0 + $0x382] ss:$8 sm:$0xf0]  }
  0x7e   :  { %151 = vst [vmem:[#allocation0 + $0x2d8] sm:$0xf] %v1216_v48  ;;  %v514_v33 = vld [vmem:[#allocation0] ss:$8 sm:$0xf]   ;;  %v1020_v48 = vsel %vm516_vm0, %v1018_v32, %v1016_v31 }
  0x7f   :  { %155 = vst [vmem:[#allocation0 + $0x2d0] sm:$0xf] %v1217_v49  ;;  %v1060_v36 = vld [vmem:[#allocation0 + $0x141] ss:$8 sm:$0xf]  }
  0x80   :  { %v776_v54 = vld [vmem:[#allocation0 + $0x383] ss:$8 sm:$0xf]   ;;  %159 = vst [vmem:[#allocation0 + $0x2c8] sm:$0xf] %v1218_v50 }
  0x81   :  { %v780_v56 = vsel %vm516_vm0, %v778_v52, %v776_v54  ;;  %163 = vst [vmem:[#allocation0 + $0x2c0] sm:$0xf] %v1219_v51  ;;  %v951_v13 = vld [vmem:[#allocation0 + $0x382] ss:$8 sm:$0xf]  }
  0x82   :  { %781 = vrot.lane.b32.xlu2 %v780_v56, %s1370_s15  ;;  %857 = vrot.lane.b32.xlu0 %v856_v53, %s1371_s11  ;;  %v955_v18 = vsel %vm516_vm0, %v953_v14, %v951_v13  ;;  %v1062_v37 = vld [vmem:[#allocation0 + $0x141] ss:$8 sm:$0xf0]   ;;  %v515_v38 = vld [vmem:[#allocation0] ss:$8 sm:$0xf0]  }
  0x83   :  { %901 = vrot.lane.b32.xlu1 %v900_v55, %s1371_s11  ;;  %v521_v39 = vld [vmem:[#allocation0 + $0x40] ss:$8 sm:$0xf]   ;;  %v517_v41 = vsel %vm516_vm0, %v515_v38, %v514_v33  ;;  %v1064_v49 = vsel %vm516_vm0, %v1062_v37, %v1060_v36  ;;  %v973_v50 = vld [vmem:[#allocation0 + $0x1c2] ss:$8 sm:$0xf]  }
  0x84   :  { %v811_v61 = vld [vmem:[#allocation0 + $0x2c3] ss:$8 sm:$0xf0]   ;;  %v986_v23 = vld [vmem:[#allocation0 + $0x2c2] ss:$8 sm:$0xf0]   ;;  %v662_v34 = vpop.permute.xlu0 %661  }
  0x85   :  { %v523_v42 = vld [vmem:[#allocation0 + $0x40] ss:$8 sm:$0xf0]   ;;  %519 = vst.msk [vmem:[%s2136_s1] sm:$0xff] %vm518_vm1, %v517_v41  }
  0x86   :  { %v525_v44 = vsel %vm516_vm0, %v523_v42, %v521_v39  ;;  %v586_v45 = vld [vmem:[#allocation0 + $0x200] ss:$8 sm:$0xf0]   ;;  %664 = vst.msk [vmem:[%s2136_s1] sm:$0xff] %vm663_vm2, %v662_v34  }
  0x87   :  { %v588_v46 = vsel %vm516_vm0, %v586_v45, %v584_v43  ;;  %1307 = vst.msk [vmem:[%s2136_s1 + $0x8] sm:$0xff] %vm518_vm1, %v525_v44   ;;  %v975_v51 = vld [vmem:[#allocation0 + $0x1c2] ss:$8 sm:$0xf0]  }
  0x88   :  { %v809_v63 = vld [vmem:[#allocation0 + $0x2c3] ss:$8 sm:$0xf]   ;;  %v984_v22 = vld [vmem:[#allocation0 + $0x2c2] ss:$8 sm:$0xf]   ;;  %v977_v2 = vsel %vm516_vm0, %v975_v51, %v973_v50 }
  0x89   :  { %v813_v1 = vsel %vm516_vm0, %v811_v61, %v809_v63  ;;  %v988_v27 = vsel %vm516_vm0, %v986_v23, %v984_v22  ;;  %1314 = vst.msk [vmem:[%s2136_s1 + $0x40] sm:$0xff] %vm518_vm1, %v588_v46   ;;  %v1049_v52 = vld [vmem:[#allocation0 + $0x41] ss:$8 sm:$0xf]  }
  0x8a   :  { %814 = vrot.lane.b32.xlu2 %v813_v1, %s1370_s15  ;;  %890 = vrot.lane.b32.xlu0 %v889_v62, %s1371_s11  ;;  %v1051_v53 = vld [vmem:[#allocation0 + $0x41] ss:$8 sm:$0xf0]   ;;  %v548_v57 = vld [vmem:[#allocation0 + $0x100] ss:$8 sm:$0xf]  }
  0x8b   :  { %934 = vrot.lane.b32.xlu1 %v933_v0, %s1371_s11  ;;  %v1093_v55 = vld [vmem:[#allocation0 + $0x81] ss:$8 sm:$0xf]   ;;  %v550_v59 = vld [vmem:[#allocation0 + $0x100] ss:$8 sm:$0xf0]   ;;  %v1053_v3 = vsel %vm516_vm0, %v1051_v53, %v1049_v52 }
  0x8c   :  { %v683_v40 = vpop.permute.xlu1 %682   ;;  %v1095_v56 = vld [vmem:[#allocation0 + $0x81] ss:$8 sm:$0xf0]   ;;  %v557_v60 = vld [vmem:[#allocation0 + $0x140] ss:$8 sm:$0xf]   ;;  %v552_v61 = vsel %vm516_vm0, %v550_v59, %v548_v57 }
  0x8d   :  { %1323 = vst.msk [vmem:[%s2136_s1 + $0x40] sm:$0xff] %vm663_vm2, %v683_v40   ;;  %v559_v62 = vld [vmem:[#allocation0 + $0x140] ss:$8 sm:$0xf0]   ;;  %v1097_v5 = vsel %vm516_vm0, %v1095_v56, %v1093_v55 }
  0x8e   :  { %v620_v63 = vld [vmem:[#allocation0 + $0x300] ss:$8 sm:$0xf]   ;;  %1310 = vst.msk [vmem:[%s2136_s1 + $0x20] sm:$0xff] %vm518_vm1, %v552_v61   ;;  %v561_v0 = vsel %vm516_vm0, %v559_v62, %v557_v60 }
  0x8f   :  { %v622_v1 = vld [vmem:[#allocation0 + $0x300] ss:$8 sm:$0xf0]   ;;  %1311 = vst.msk [vmem:[%s2136_s1 + $0x28] sm:$0xff] %vm518_vm1, %v561_v0  }
  0x90   :  { %v624_v4 = vsel %vm516_vm0, %v622_v1, %v620_v63  ;;  %v1006_v6 = vld [vmem:[#allocation0 + $0x1] ss:$8 sm:$0xf]   ;;  %v532_v14 = vld [vmem:[#allocation0 + $0x80] ss:$8 sm:$0xf0]  }
  0x91   :  { %1318 = vst.msk [vmem:[%s2136_s1 + $0x60] sm:$0xff] %vm518_vm1, %v624_v4   ;;  %v1008_v7 = vld [vmem:[#allocation0 + $0x1] ss:$8 sm:$0xf0]  }
  0x92   :  { %846 = vrot.lane.b32.xlu2 %v845_v8, %s1371_s11  ;;  %923 = vrot.lane.b32.xlu0 %v922_v9, %s1371_s11  ;;  %v1082_v8 = vld [vmem:[#allocation0 + $0x341] ss:$8 sm:$0xf]   ;;  %v593_v15 = vld [vmem:[#allocation0 + $0x240] ss:$8 sm:$0xf]   ;;  %v1010_v24 = vsel %vm516_vm0, %v1008_v7, %v1006_v6 }
  0x93   :  { %967 = vrot.lane.b32.xlu1 %v966_v10, %s1371_s11  ;;  %v1084_v9 = vld [vmem:[#allocation0 + $0x341] ss:$8 sm:$0xf0]   ;;  %v530_v10 = vld [vmem:[#allocation0 + $0x80] ss:$8 sm:$0xf]  }
  0x94   :  { %v672_v54 = vpop.permute.xlu0 %671   ;;  %v1126_v12 = vld [vmem:[#allocation0 + $0x381] ss:$8 sm:$0xf]   ;;  %v629_v20 = vld [vmem:[#allocation0 + $0x340] ss:$8 sm:$0xf]   ;;  %v1086_v25 = vsel %vm516_vm0, %v1084_v9, %v1082_v8 }
  0x95   :  { %1322 = vst.msk [vmem:[%s2136_s1 + $0x20] sm:$0xff] %vm663_vm2, %v672_v54   ;;  %v1128_v13 = vld [vmem:[#allocation0 + $0x381] ss:$8 sm:$0xf0]  }
  0x96   :  { %v631_v22 = vld [vmem:[#allocation0 + $0x340] ss:$8 sm:$0xf0]   ;;  %v1115_v29 = vld [vmem:[#allocation0 + $0x281] ss:$8 sm:$0xf]  }
  0x97   :  { %v633_v23 = vsel %vm516_vm0, %v631_v22, %v629_v20  ;;  %v1117_v30 = vld [vmem:[#allocation0 + $0x281] ss:$8 sm:$0xf0]   ;;  %v566_v31 = vld [vmem:[#allocation0 + $0x180] ss:$8 sm:$0xf]  }
  0x98   :  { %1319 = vst.msk [vmem:[%s2136_s1 + $0x68] sm:$0xff] %vm518_vm1, %v633_v23   ;;  %v1159_v32 = vld [vmem:[#allocation0 + $0x2c1] ss:$8 sm:$0xf]   ;;  %v1119_v44 = vsel %vm516_vm0, %v1117_v30, %v1115_v29 }
  0x99   :  { %v1161_v33 = vld [vmem:[#allocation0 + $0x2c1] ss:$8 sm:$0xf0]   ;;  %v568_v34 = vld [vmem:[#allocation0 + $0x180] ss:$8 sm:$0xf0]  }
  0x9a   :  { %879 = vrot.lane.b32.xlu2 %v878_v17, %s1371_s11  ;;  %956 = vrot.lane.b32.xlu0 %v955_v18, %s1371_s11  ;;  %v534_v18 = vsel %vm516_vm0, %v532_v14, %v530_v10  ;;  %v570_v36 = vsel %vm516_vm0, %v568_v34, %v566_v31  ;;  %v604_v38 = vld [vmem:[#allocation0 + $0x280] ss:$8 sm:$0xf0]   ;;  %v1163_v45 = vsel %vm516_vm0, %v1161_v33, %v1159_v32  ;;  %v1071_v46 = vld [vmem:[#allocation0 + $0x241] ss:$8 sm:$0xf]  }
  0x9b   :  { %1000 = vrot.lane.b32.xlu1 %v999_v19, %s1371_s11  ;;  %v595_v19 = vld [vmem:[#allocation0 + $0x240] ss:$8 sm:$0xf0]   ;;  %1308 = vst.msk [vmem:[%s2136_s1 + $0x10] sm:$0xff] %vm518_vm1, %v534_v18  }
  0x9c   :  { %v705_v35 = vpop.permute.xlu2 %704   ;;  %v694_v58 = vpop.permute.xlu1 %693   ;;  %v597_v21 = vsel %vm516_vm0, %v595_v19, %v593_v15  ;;  %v638_v39 = vld [vmem:[#allocation0 + $0x380] ss:$8 sm:$0xf]   ;;  %1312 = vst.msk [vmem:[%s2136_s1 + $0x30] sm:$0xff] %vm518_vm1, %v570_v36  }
  0x9d   :  { %1325 = vst.msk [vmem:[%s2136_s1 + $0x8] sm:$0xff] %vm663_vm2, %v705_v35   ;;  %v602_v35 = vld [vmem:[#allocation0 + $0x280] ss:$8 sm:$0xf]  }
  0x9e   :  { %1324 = vst.msk [vmem:[%s2136_s1 + $0x60] sm:$0xff] %vm663_vm2, %v694_v58   ;;  %v606_v40 = vsel %vm516_vm0, %v604_v38, %v602_v35  ;;  %v640_v41 = vld [vmem:[#allocation0 + $0x380] ss:$8 sm:$0xf0]  }
  0x9f   :  { %1315 = vst.msk [vmem:[%s2136_s1 + $0x48] sm:$0xff] %vm518_vm1, %v597_v21   ;;  %v642_v42 = vsel %vm516_vm0, %v640_v41, %v638_v39  ;;  %v539_v50 = vld [vmem:[#allocation0 + $0xc0] ss:$8 sm:$0xf]  }
  0xa0   :  { %1316 = vst.msk [vmem:[%s2136_s1 + $0x50] sm:$0xff] %vm518_vm1, %v606_v40   ;;  %v541_v51 = vld [vmem:[#allocation0 + $0xc0] ss:$8 sm:$0xf0]  }
  0xa1   :  { %1320 = vst.msk [vmem:[%s2136_s1 + $0x70] sm:$0xff] %vm518_vm1, %v642_v42   ;;  %v543_v52 = vsel %vm516_vm0, %v541_v51, %v539_v50  ;;  %v575_v53 = vld [vmem:[#allocation0 + $0x1c0] ss:$8 sm:$0xf]  }
  0xa2   :  { %912 = vrot.lane.b32.xlu2 %v911_v26, %s1371_s11  ;;  %989 = vrot.lane.b32.xlu0 %v988_v27, %s1371_s11  ;;  %v1130_v26 = vsel %vm516_vm0, %v1128_v13, %v1126_v12  ;;  %v1038_v27 = vld [vmem:[#allocation0 + $0x301] ss:$8 sm:$0xf]   ;;  %v577_v54 = vld [vmem:[#allocation0 + $0x1c0] ss:$8 sm:$0xf0]  }
  0xa3   :  { %1032 = vrot.lane.b32.xlu1 %v1031_v28, %s1372_s0  ;;  %v1040_v28 = vld [vmem:[#allocation0 + $0x301] ss:$8 sm:$0xf0]   ;;  %1309 = vst.msk [vmem:[%s2136_s1 + $0x18] sm:$0xff] %vm518_vm1, %v543_v52   ;;  %v579_v56 = vsel %vm516_vm0, %v577_v54, %v575_v53 }
  0xa4   :  { %v727_v11 = vpop.permute.xlu0 %726   ;;  %v1042_v43 = vsel %vm516_vm0, %v1040_v28, %v1038_v27  ;;  %v611_v57 = vld [vmem:[#allocation0 + $0x2c0] ss:$8 sm:$0xf]   ;;  %1313 = vst.msk [vmem:[%s2136_s1 + $0x38] sm:$0xff] %vm518_vm1, %v579_v56  }
  0xa5   :  { %1327 = vst.msk [vmem:[%s2136_s1 + $0x48] sm:$0xff] %vm663_vm2, %v727_v11   ;;  %v613_v58 = vld [vmem:[#allocation0 + $0x2c0] ss:$8 sm:$0xf0]  }
  0xa6   :  { %v615_v59 = vsel %vm516_vm0, %v613_v58, %v611_v57  ;;  %v647_v62 = vld [vmem:[#allocation0 + $0x3c0] ss:$8 sm:$0xf]   ;;  %v1104_v0 = vld [vmem:[#allocation0 + $0x181] ss:$8 sm:$0xf]  }
  0xa7   :  { %1317 = vst.msk [vmem:[%s2136_s1 + $0x58] sm:$0xff] %vm518_vm1, %v615_v59   ;;  %v649_v63 = vld [vmem:[#allocation0 + $0x3c0] ss:$8 sm:$0xf0]  }
  0xa8   :  { %v651_v1 = vsel %vm516_vm0, %v649_v63, %v647_v62  ;;  %v1139_v6 = vld [vmem:[#allocation0 + $0xc1] ss:$8 sm:$0xf0]  }
  0xa9   :  { %1321 = vst.msk [vmem:[%s2136_s1 + $0x78] sm:$0xff] %vm518_vm1, %v651_v1   ;;  %v1170_v10 = vld [vmem:[#allocation0 + $0x3c1] ss:$8 sm:$0xf]  }
  0xaa   :  { %945 = vrot.lane.b32.xlu2 %v944_v47, %s1371_s11  ;;  %1021 = vrot.lane.b32.xlu0 %v1020_v48, %s1372_s0  ;;  %v1073_v47 = vld [vmem:[#allocation0 + $0x241] ss:$8 sm:$0xf0]  }
  0xab   :  { %1065 = vrot.lane.b32.xlu1 %v1064_v49, %s1372_s0  ;;  %v1148_v48 = vld [vmem:[#allocation0 + $0x1c1] ss:$8 sm:$0xf]   ;;  %v1075_v60 = vsel %vm516_vm0, %v1073_v47, %v1071_v46 }
  0xac   :  { %v738_v16 = vpop.permute.xlu1 %737   ;;  %v1150_v49 = vld [vmem:[#allocation0 + $0x1c1] ss:$8 sm:$0xf0]  }
  0xad   :  { %1328 = vst.msk [vmem:[%s2136_s1 + $0x68] sm:$0xff] %vm663_vm2, %v738_v16   ;;  %v1152_v61 = vsel %vm516_vm0, %v1150_v49, %v1148_v48  ;;  %v1172_v11 = vld [vmem:[#allocation0 + $0x3c1] ss:$8 sm:$0xf0]  }
  0xae   :  { %v1174_v13 = vsel %vm516_vm0, %v1172_v11, %v1170_v10 }
  0xb2   :  { %978 = vrot.lane.b32.xlu2 %v977_v2, %s1371_s11  ;;  %1054 = vrot.lane.b32.xlu0 %v1053_v3, %s1372_s0  ;;  %v1106_v2 = vld [vmem:[#allocation0 + $0x181] ss:$8 sm:$0xf0]  }
  0xb3   :  { %1098 = vrot.lane.b32.xlu1 %v1097_v5, %s1372_s0  ;;  %v1108_v4 = vsel %vm516_vm0, %v1106_v2, %v1104_v0  ;;  %v1137_v5 = vld [vmem:[#allocation0 + $0xc1] ss:$8 sm:$0xf]  }
  0xb4   :  { %v716_v17 = vpop.permute.xlu2 %715   ;;  %v1141_v8 = vsel %vm516_vm0, %v1139_v6, %v1137_v5 }
  0xb5   :  { %1326 = vst.msk [vmem:[%s2136_s1 + $0x28] sm:$0xff] %vm663_vm2, %v716_v17  }
  0xba   :  { %1011 = vrot.lane.b32.xlu2 %v1010_v24, %s1372_s0  ;;  %1087 = vrot.lane.b32.xlu0 %v1086_v25, %s1372_s0 }
  0xbb   :  { %1131 = vrot.lane.b32.xlu1 %v1130_v26, %s1372_s0 }
  0xbc   :  { %v760_v37 = vpop.permute.xlu0 %759  }
  0xbd   :  { %1330 = vst.msk [vmem:[%s2136_s1 + $0x30] sm:$0xff] %vm663_vm2, %v760_v37  }
  0xc2   :  { %1043 = vrot.lane.b32.xlu2 %v1042_v43, %s1372_s0  ;;  %1120 = vrot.lane.b32.xlu0 %v1119_v44, %s1372_s0 }
  0xc3   :  { %1164 = vrot.lane.b32.xlu1 %v1163_v45, %s1372_s0 }
  0xc4   :  { %v771_v55 = vpop.permute.xlu1 %770  }
  0xc5   :  { %1331 = vst.msk [vmem:[%s2136_s1 + $0x50] sm:$0xff] %vm663_vm2, %v771_v55  }
  0xca   :  { %1076 = vrot.lane.b32.xlu2 %v1075_v60, %s1372_s0  ;;  %1153 = vrot.lane.b32.xlu0 %v1152_v61, %s1372_s0 }
  0xcc   :  { %v749_v3 = vpop.permute.xlu2 %748  }
  0xcd   :  { %1329 = vst.msk [vmem:[%s2136_s1 + $0x10] sm:$0xff] %vm663_vm2, %v749_v3  }
  0xd2   :  { %1109 = vrot.lane.b32.xlu2 %v1108_v4, %s1372_s0 }
  0xd4   :  { %v793_v7 = vpop.permute.xlu0 %792  }
  0xd5   :  { %1333 = vst.msk [vmem:[%s2136_s1 + $0x18] sm:$0xff] %vm663_vm2, %v793_v7  }
  0xda   :  { %1142 = vrot.lane.b32.xlu2 %v1141_v8, %s1372_s0 }
  0xdc   :  { %v782_v9 = vpop.permute.xlu2 %781   ;;  %v804_v12 = vpop.permute.xlu1 %803  }
  0xdd   :  { %1332 = vst.msk [vmem:[%s2136_s1 + $0x70] sm:$0xff] %vm663_vm2, %v782_v9  }
  0xde   :  { %1334 = vst.msk [vmem:[%s2136_s1 + $0x38] sm:$0xff] %vm663_vm2, %v804_v12  }
  0xe2   :  { %1175 = vrot.lane.b32.xlu2 %v1174_v13, %s1372_s0 }
  0xe4   :  { %v815_v14 = vpop.permute.xlu2 %814   ;;  %v837_v15 = vpop.permute.xlu1 %836  }
  0xe5   :  { %1335 = vst.msk [vmem:[%s2136_s1 + $0x58] sm:$0xff] %vm663_vm2, %v815_v14  }
  0xe6   :  { %839 = vst.msk [vmem:[%s2136_s1] sm:$0xff] %vm838_vm3, %v837_v15  }
  0xec   :  { %v847_v16 = vpop.permute.xlu2 %846   ;;  %v826_v17 = vpop.permute.xlu0 %825  }
  0xed   :  { %1337 = vst.msk [vmem:[%s2136_s1 + $0x20] sm:$0xff] %vm838_vm3, %v847_v16   ;;  %v869_v18 = vpop.permute.xlu1 %868  }
  0xee   :  { %1336 = vst.msk [vmem:[%s2136_s1 + $0x78] sm:$0xff] %vm663_vm2, %v826_v17  }
  0xef   :  { %1339 = vst.msk [vmem:[%s2136_s1 + $0x60] sm:$0xff] %vm838_vm3, %v869_v18  }
  0xf4   :  { %v880_v19 = vpop.permute.xlu2 %879   ;;  %v858_v20 = vpop.permute.xlu0 %857  }
  0xf5   :  { %1340 = vst.msk [vmem:[%s2136_s1 + $0x8] sm:$0xff] %vm838_vm3, %v880_v19   ;;  %v902_v21 = vpop.permute.xlu1 %901  }
  0xf6   :  { %1338 = vst.msk [vmem:[%s2136_s1 + $0x40] sm:$0xff] %vm838_vm3, %v858_v20  }
  0xf7   :  { %1342 = vst.msk [vmem:[%s2136_s1 + $0x48] sm:$0xff] %vm838_vm3, %v902_v21  }
  0xfc   :  { %v913_v22 = vpop.permute.xlu2 %912   ;;  %v891_v23 = vpop.permute.xlu0 %890  }
  0xfd   :  { %1343 = vst.msk [vmem:[%s2136_s1 + $0x68] sm:$0xff] %vm838_vm3, %v913_v22   ;;  %v935_v24 = vpop.permute.xlu1 %934  }
  0xfe   :  { %1341 = vst.msk [vmem:[%s2136_s1 + $0x28] sm:$0xff] %vm838_vm3, %v891_v23  }
  0xff   :  { %1345 = vst.msk [vmem:[%s2136_s1 + $0x30] sm:$0xff] %vm838_vm3, %v935_v24  }
 0x104   :  { %v946_v25 = vpop.permute.xlu2 %945   ;;  %v924_v26 = vpop.permute.xlu0 %923  }
 0x105   :  { %1346 = vst.msk [vmem:[%s2136_s1 + $0x50] sm:$0xff] %vm838_vm3, %v946_v25   ;;  %v968_v27 = vpop.permute.xlu1 %967  }
 0x106   :  { %1344 = vst.msk [vmem:[%s2136_s1 + $0x10] sm:$0xff] %vm838_vm3, %v924_v26  }
 0x107   :  { %1348 = vst.msk [vmem:[%s2136_s1 + $0x18] sm:$0xff] %vm838_vm3, %v968_v27  }
 0x10c   :  { %v979_v28 = vpop.permute.xlu2 %978   ;;  %v957_v29 = vpop.permute.xlu0 %956  }
 0x10d   :  { %1349 = vst.msk [vmem:[%s2136_s1 + $0x38] sm:$0xff] %vm838_vm3, %v979_v28   ;;  %v1001_v30 = vpop.permute.xlu1 %1000  }
 0x10e   :  { %1347 = vst.msk [vmem:[%s2136_s1 + $0x70] sm:$0xff] %vm838_vm3, %v957_v29  }
 0x10f   :  { %1351 = vst.msk [vmem:[%s2136_s1 + $0x78] sm:$0xff] %vm838_vm3, %v1001_v30  }
 0x114   :  { %v1012_v31 = vpop.permute.xlu2 %1011   ;;  %v990_v32 = vpop.permute.xlu0 %989  }
 0x115   :  { %1014 = vst.msk [vmem:[%s2136_s1] sm:$0xff] %vm1013_vm4, %v1012_v31   ;;  %v1033_v33 = vpop.permute.xlu1 %1032  }
 0x116   :  { %1350 = vst.msk [vmem:[%s2136_s1 + $0x58] sm:$0xff] %vm838_vm3, %v990_v32  }
 0x117   :  { %1353 = vst.msk [vmem:[%s2136_s1 + $0x40] sm:$0xff] %vm1013_vm4, %v1033_v33  }
 0x11c   :  { %v1044_v34 = vpop.permute.xlu2 %1043   ;;  %v1022_v35 = vpop.permute.xlu0 %1021  }
 0x11d   :  { %1354 = vst.msk [vmem:[%s2136_s1 + $0x60] sm:$0xff] %vm1013_vm4, %v1044_v34   ;;  %v1066_v36 = vpop.permute.xlu1 %1065  }
 0x11e   :  { %1352 = vst.msk [vmem:[%s2136_s1 + $0x20] sm:$0xff] %vm1013_vm4, %v1022_v35  }
 0x11f   :  { %1356 = vst.msk [vmem:[%s2136_s1 + $0x28] sm:$0xff] %vm1013_vm4, %v1066_v36  }
 0x124   :  { %v1077_v37 = vpop.permute.xlu2 %1076   ;;  %v1055_v38 = vpop.permute.xlu0 %1054  }
 0x125   :  { %1357 = vst.msk [vmem:[%s2136_s1 + $0x48] sm:$0xff] %vm1013_vm4, %v1077_v37   ;;  %v1099_v39 = vpop.permute.xlu1 %1098  }
 0x126   :  { %1355 = vst.msk [vmem:[%s2136_s1 + $0x8] sm:$0xff] %vm1013_vm4, %v1055_v38  }
 0x127   :  { %1359 = vst.msk [vmem:[%s2136_s1 + $0x10] sm:$0xff] %vm1013_vm4, %v1099_v39  }
 0x12c   :  { %v1110_v40 = vpop.permute.xlu2 %1109   ;;  %v1088_v41 = vpop.permute.xlu0 %1087  }
 0x12d   :  { %1360 = vst.msk [vmem:[%s2136_s1 + $0x30] sm:$0xff] %vm1013_vm4, %v1110_v40   ;;  %v1132_v42 = vpop.permute.xlu1 %1131  }
 0x12e   :  { %1358 = vst.msk [vmem:[%s2136_s1 + $0x68] sm:$0xff] %vm1013_vm4, %v1088_v41  }
 0x12f   :  { %1362 = vst.msk [vmem:[%s2136_s1 + $0x70] sm:$0xff] %vm1013_vm4, %v1132_v42  }
 0x134   :  { %v1143_v43 = vpop.permute.xlu2 %1142   ;;  %v1121_v44 = vpop.permute.xlu0 %1120  }
 0x135   :  { %1363 = vst.msk [vmem:[%s2136_s1 + $0x18] sm:$0xff] %vm1013_vm4, %v1143_v43   ;;  %v1165_v45 = vpop.permute.xlu1 %1164  }
 0x136   :  { %1361 = vst.msk [vmem:[%s2136_s1 + $0x50] sm:$0xff] %vm1013_vm4, %v1121_v44  }
 0x137   :  { %1365 = vst.msk [vmem:[%s2136_s1 + $0x58] sm:$0xff] %vm1013_vm4, %v1165_v45  }
 0x13c   :  { %v1176_v46 = vpop.permute.xlu2 %1175   ;;  %v1154_v47 = vpop.permute.xlu0 %1153  }
 0x13d   :  { %1366 = vst.msk [vmem:[%s2136_s1 + $0x78] sm:$0xff] %vm1013_vm4, %v1176_v46  }
 0x13e   :  { %1364 = vst.msk [vmem:[%s2136_s1 + $0x38] sm:$0xff] %vm1013_vm4, %v1154_v47  }

// kernel: _encoder_forward.1
= control target key start
LH: loop header
LB: loop body
LE: loop exit
PB: predicated region body
PF: predicated region fallthrough
CT: control target
= control target key end

     0   :  { %v2968_v2 = vmov 0   ;;  %s4119_s0 = inlined_call_operand.vmem [shape: s32[32,1], index: 0, kind: input, shape index: {}]   ;;  %s4120_s1 = inlined_call_operand.vmem [shape: f32[128,32], index: 1, kind: input, shape index: {}]   ;;  %s4121_s2 = inlined_call_operand.vmem [shape: f32[4,32,32], index: 2, kind: input, shape index: {}]   ;;  %s4122_s3 = inlined_call_operand.vmem [shape: f32[2,1,32], index: 3, kind: input, shape index: {}]   ;;  %s4123_s4 = inlined_call_operand.vmem [shape: f32[2,32,96], index: 4, kind: input, shape index: {}]   ;;  %s4124_s5 = inlined_call_operand.vmem [shape: f32[2,32,32], index: 5, kind: input, shape index: {}]   ;;  %s4125_s6 = inlined_call_operand.vmem [shape: f32[2,1,32], index: 6, kind: input, shape index: {}]   ;;  %s4126_s7 = inlined_call_operand.vmem [shape: f32[2,32,64], index: 7, kind: input, shape index: {}]   ;;  %s4127_s8 = inlined_call_operand.vmem [shape: f32[2,64,32], index: 8, kind: input, shape index: {}]   ;;  %s4128_s9 = inlined_call_operand.vmem [shape: f32[1,32], index: 9, kind: input, shape index: {}]   ;;  %s4129_s10 = inlined_call_operand.hbm [shape: f32[32,32], index: 10, kind: output, shape index: {}]  }
   0x1   :  { %v38_v0 = vld [vmem:[%s4119_s0] sm:$0xff]  ;;  %v40_v1 = vld [vmem:[%s4119_s0 + $0x10] sm:$0xff]  ;;  %2669 = vset.pattern.permute.xlu0 %v2968_v2  ;;  %2670 = vset.pattern.permute.xlu1 %v2968_v2  ;;  %v81_v3 = vld [vmem:[%s4120_s1 + $0x78] sm:$0xff] }
   0x2   :  { %43 = vperm.xlu0 %2669, %v38_v0   ;;  %49 = vperm.xlu1 %2670, %v40_v1   ;;  %v80_v4 = vld [vmem:[%s4120_s1 + $0x70] sm:$0xff]  ;;  %v79_v5 = vld [vmem:[%s4120_s1 + $0x68] sm:$0xff]  ;;  %v41_v7 = vld [vmem:[%s4119_s0 + $0x18] sm:$0xff] }
   0x3   :  { %82 = vmatpush.msra.mxu0 %v81_v3  ;;  %v39_v6 = vld [vmem:[%s4119_s0 + $0x8] sm:$0xff]  ;;  %v78_v8 = vld [vmem:[%s4120_s1 + $0x60] sm:$0xff]  ;;  %v77_v9 = vld [vmem:[%s4120_s1 + $0x58] sm:$0xff] }
   0x5   :  { %83 = vmatpush.msra.mxu0 %v80_v4 }
   0x7   :  { %84 = vmatpush.msra.mxu0 %v79_v5 }
   0x8   :  { %15 = vsyncpa [#allocation3], 0  ;;  %v76_v10 = vld [vmem:[%s4120_s1 + $0x50] sm:$0xff]  ;;  %v75_v11 = vld [vmem:[%s4120_s1 + $0x48] sm:$0xff]  ;;  %v36_v21 = vlaneseq  ;;  %v2969_v24 = vmov 1.0   ;;  %vm116_vm4 = vcmask 261120  }
   0x9   :  { %85 = vmatpush.msra.mxu0 %v78_v8  ;;  %v74_v12 = vld [vmem:[%s4120_s1 + $0x40] sm:$0xff]  ;;  %v73_v13 = vld [vmem:[%s4120_s1 + $0x38] sm:$0xff]  ;;  %v72_v14 = vld [vmem:[%s4120_s1 + $0x30] sm:$0xff]  ;;  %v2970_v40 = vmov 32.0   ;;  %s2971_s20 = smov 120   ;;  %s2972_s21 = smov 88  }
   0xa   :  { %46 = vperm.xlu0 %2669, %v39_v6   ;;  %52 = vperm.xlu1 %2670, %v41_v7   ;;  %v71_v15 = vld [vmem:[%s4120_s1 + $0x28] sm:$0xff]  ;;  %v70_v16 = vld [vmem:[%s4120_s1 + $0x20] sm:$0xff]  ;;  %v69_v17 = vld [vmem:[%s4120_s1 + $0x18] sm:$0xff]  ;;  %v37_v22 = vand.u32 127, %v36_v21  ;;  %2756 = vrcp.f32 %v2970_v40  ;;  %s2973_s22 = smov 96   ;;  %s2974_s23 = smov 72  }
   0xb   :  { %86 = vmatpush.msra.mxu0 %v77_v9  ;;  %v68_v18 = vld [vmem:[%s4120_s1 + $0x10] sm:$0xff]  ;;  %v67_v19 = vld [vmem:[%s4120_s1 + $0x8] sm:$0xff]  ;;  %v66_v20 = vld [vmem:[%s4120_s1] sm:$0xff]  ;;  %s2975_s24 = smov 104   ;;  %s2976_s25 = smov 80  }
   0xc   :  { %v198_v44 = vld [vmem:[%s4123_s4 + $0x18] sm:$0xff]  ;;  %v197_v45 = vld [vmem:[%s4123_s4 + $0x10] sm:$0xff]  ;;  %v196_v47 = vld [vmem:[%s4123_s4 + $0x8] sm:$0xff]  ;;  %s2977_s26 = smov 112   ;;  %s2978_s13 = smov 56  }
   0xd   :  { %87 = vmatpush.msra.mxu0 %v76_v10  ;;  %223 = vmatpush.msra.mxu1 %v198_v44  ;;  %v195_v48 = vld [vmem:[%s4123_s4] sm:$0xff]  ;;  %s2979_s18 = smov 64   ;;  %s2980_s30 = smov 40  }
   0xe   :  { %v2751_v4 = vld [vmem:[%s4122_s3] ss:$0 sm:$0xff]  ;;  %s2981_s12 = smov 48   ;;  %s2446_s27 = sshll.u32 %s4129_s10, 4  ;;  %s2447_s27 = int_to_ptr.hbm [resolvable:$true] %s2446_s27 }
   0xf   :  { %88 = vmatpush.msra.mxu0 %v75_v11  ;;  %224 = vmatpush.msra.mxu1 %v197_v45  ;;  %s2983_s28 = smov 128   ;;  %s2984_s29 = smov 8  }
  0x10   :  { %v2757_v41 = vpop.eup %2756 }
  0x11   :  { %89 = vmatpush.msra.mxu0 %v74_v12  ;;  %v130_v42 = vmul.f32 32.0, %v2757_v41  ;;  %225 = vmatpush.msra.mxu1 %v196_v47  ;;  %vm134_vm5 = vweird.f32 %v2757_v41 }
  0x13   :  { %90 = vmatpush.msra.mxu0 %v73_v13  ;;  %v131_v43 = vsub.f32 1.0, %v130_v42  ;;  %226 = vmatpush.msra.mxu1 %v195_v48 }
  0x15   :  { %91 = vmatpush.msra.mxu0 %v72_v14  ;;  %v132_v46 = vmul.f32 %v2757_v41, %v131_v43 }
  0x17   :  { %92 = vmatpush.msra.mxu0 %v71_v15  ;;  %v133_v49 = vadd.f32 %v2757_v41, %v132_v46 }
  0x19   :  { %93 = vmatpush.msra.mxu0 %v70_v16  ;;  %v3132_v50 = vsel %vm134_vm5, %v2757_v41, %v133_v49 }
  0x1b   :  { %94 = vmatpush.msra.mxu0 %v69_v17 }
  0x1d   :  { %95 = vmatpush.msra.mxu0 %v68_v18 }
  0x1f   :  { %96 = vmatpush.msra.mxu0 %v67_v19 }
  0x21   :  { %97 = vmatpush.msra.mxu0 %v66_v20 }
  0x74   :  { %v44_v23 = vpop.permute.xlu0 %43  ;;  %v50_v26 = vpop.permute.xlu1 %49 }
  0x75   :  { %vm54_vm0 = vcmp.eq.s32.totalorder %v37_v22, %v44_v23  ;;  %vm56_vm2 = vcmp.eq.s32.totalorder %v37_v22, %v50_v26 }
  0x76   :  { %2462 = vmatmul.msk.f32.vlgmr.msra.gmra.mxu0 %vm54_vm0, %v2969_v24 }
  0x7c   :  { %v47_v25 = vpop.permute.xlu0 %46  ;;  %v53_v27 = vpop.permute.xlu1 %52 }
  0x7d   :  { %vm55_vm1 = vcmp.eq.s32.totalorder %v37_v22, %v47_v25  ;;  %vm57_vm3 = vcmp.eq.s32.totalorder %v37_v22, %v53_v27 }
  0x7e   :  { %2463 = vmatmul.msk.f32.gmra.mxu0 %vm55_vm1, %v2969_v24 }
  0x86   :  { %2464 = vmatmul.msk.f32.gmra.mxu0 %vm56_vm2, %v2969_v24  ;;  %vm260_vm2 = vcmask 64512  }
  0x8e   :  { %2465 = vmatmul.msk.f32.gmra.mxu0 %vm57_vm3, %v2969_v24 }
  0xf3   :  { %v3100_v28 = vpop.f32.mrf.mxu0 }
  0xf4   :  { %v112_v29 = vmul.f32 %v3100_v28, %v3100_v28 }
  0xf6   :  { %v117_v30 = vsel %vm116_vm4, %v112_v29, 0.0 }
  0xf7   :  { %118 = vadd.xlane.f32.xlu2 %v117_v30 }
  0xfb   :  { %v3105_v31 = vpop.f32.mrf.mxu0 }
  0xfc   :  { %v113_v32 = vmul.f32 %v3105_v31, %v3105_v31 }
  0xfe   :  { %v120_v33 = vsel %vm116_vm4, %v113_v32, 0.0 }
  0xff   :  { %121 = vadd.xlane.f32.xlu2 %v120_v33 }
 0x103   :  { %v3110_v34 = vpop.f32.mrf.mxu0 }
 0x104   :  { %v114_v35 = vmul.f32 %v3110_v34, %v3110_v34 }
 0x106   :  { %v123_v36 = vsel %vm116_vm4, %v114_v35, 0.0 }
 0x107   :  { %124 = vadd.xlane.f32.xlu0 %v123_v36 }
 0x10b   :  { %v3115_v37 = vpop.f32.mrf.mxu0 }
 0x10c   :  { %v115_v38 = vmul.f32 %v3115_v37, %v3115_v37 }
 0x10e   :  { %v126_v39 = vsel %vm116_vm4, %v115_v38, 0.0 }
 0x10f   :  { %127 = vadd.xlane.f32.xlu1 %v126_v39 }
 0x16a   :  { %v119_v51 = vpop.xlane.xlu2 %118 }
 0x16b   :  { %v136_v52 = vmul.f32 %v3132_v50, %v119_v51 }
 0x16d   :  { %v140_v53 = vadd.f32 1e-06, %v136_v52 }
 0x16f   :  { %2758 = vrsqrt.f32 %v140_v53  ;;  %vm150_vm7 = vweird.f32 %v140_v53 }
 0x172   :  { %v122_v54 = vpop.xlane.xlu2 %121 }
 0x173   :  { %v137_v55 = vmul.f32 %v3132_v50, %v122_v54 }
 0x175   :  { %v2759_v56 = vpop.eup %2758  ;;  %v141_v57 = vadd.f32 1e-06, %v137_v55 }
 0x176   :  { %v145_v58 = vmul.f32 %v2759_v56, %v140_v53  ;;  %vm151_vm6 = vweird.f32 %v2759_v56 }
 0x177   :  { %2760 = vrsqrt.f32 %v141_v57  ;;  %vm152_vm8 = vmor %vm150_vm7, %vm151_vm6  ;;  %vm160_vm10 = vweird.f32 %v141_v57 }
 0x178   :  { %v146_v59 = vmul.f32 %v2759_v56, %v145_v58 }
 0x17a   :  { %v147_v60 = vmul.f32 0.5, %v146_v59  ;;  %v125_v61 = vpop.xlane.xlu0 %124 }
 0x17b   :  { %v138_v62 = vmul.f32 %v3132_v50, %v125_v61 }
 0x17c   :  { %v148_v63 = vsub.f32 1.5, %v147_v60 }
 0x17d   :  { %v2761_v0 = vpop.eup %2760  ;;  %v142_v1 = vadd.f32 1e-06, %v138_v62 }
 0x17e   :  { %v155_v2 = vmul.f32 %v2761_v0, %v141_v57  ;;  %v149_v3 = vmul.f32 %v2759_v56, %v148_v63  ;;  %vm161_vm9 = vweird.f32 %v2761_v0 }
 0x17f   :  { %2762 = vrsqrt.f32 %v142_v1  ;;  %vm162_vm11 = vmor %vm160_vm10, %vm161_vm9  ;;  %vm170_vm13 = vweird.f32 %v142_v1 }
 0x180   :  { %v156_v5 = vmul.f32 %v2761_v0, %v155_v2  ;;  %v153_v6 = vsel %vm152_vm8, %v2759_v56, %v149_v3 }
 0x181   :  { %v184_v7 = vmul.f32 %v153_v6, %v3100_v28 }
 0x182   :  { %v157_v8 = vmul.f32 0.5, %v156_v5  ;;  %v128_v9 = vpop.xlane.xlu1 %127 }
 0x183   :  { %v139_v10 = vmul.f32 %v3132_v50, %v128_v9  ;;  %v191_v11 = vmul.f32 %v2751_v4, %v184_v7  ;;  %v2478_v9 = vld [vmem:[%s4121_s2 + $0x20] sm:$0xff] }
 0x184   :  { %v158_v12 = vsub.f32 1.5, %v157_v8 }
 0x185   :  { %v2763_v13 = vpop.eup %2762  ;;  %v143_v14 = vadd.f32 1e-06, %v139_v10  ;;  %2466 = vmatmul.msk.f32.vlgmr.msra.gmra.mxu1 %vm116_vm4, %v191_v11 }
 0x186   :  { %v165_v15 = vmul.f32 %v2763_v13, %v142_v1  ;;  %v159_v16 = vmul.f32 %v2761_v0, %v158_v12  ;;  %vm171_vm12 = vweird.f32 %v2763_v13 }
 0x187   :  { %2764 = vrsqrt.f32 %v143_v14  ;;  %vm172_vm14 = vmor %vm170_vm13, %vm171_vm12  ;;  %vm180_vm0 = vweird.f32 %v143_v14 }
 0x188   :  { %v166_v17 = vmul.f32 %v2763_v13, %v165_v15  ;;  %v163_v18 = vsel %vm162_vm11, %v2761_v0, %v159_v16 }
 0x189   :  { %v185_v19 = vmul.f32 %v163_v18, %v3105_v31 }
 0x18a   :  { %v167_v20 = vmul.f32 0.5, %v166_v17  ;;  %v2480_v17 = vld [vmem:[%s4121_s2 + $0x30] sm:$0xff] }
 0x18b   :  { %v192_v21 = vmul.f32 %v2751_v4, %v185_v19 }
 0x18c   :  { %v168_v22 = vsub.f32 1.5, %v167_v20 }
 0x18d   :  { %v2765_v23 = vpop.eup %2764  ;;  %2467 = vmatmul.msk.f32.gmra.mxu1 %vm116_vm4, %v192_v21  ;;  %v2481_v21 = vld [vmem:[%s4121_s2 + $0x38] sm:$0xff] }
 0x18e   :  { %v169_v24 = vmul.f32 %v2763_v13, %v168_v22  ;;  %v175_v25 = vmul.f32 %v2765_v23, %v143_v14  ;;  %vm181_vm15 = vweird.f32 %v2765_v23 }
 0x18f   :  { %vm182_vm1 = vmor %vm180_vm0, %vm181_vm15  ;;  %vm1201_vm0 = vcmask 523264  }
 0x190   :  { %v176_v26 = vmul.f32 %v2765_v23, %v175_v25  ;;  %v173_v27 = vsel %vm172_vm14, %v2763_v13, %v169_v24  ;;  %v2479_v13 = vld [vmem:[%s4121_s2 + $0x28] sm:$0xff] }
 0x191   :  { %v186_v29 = vmul.f32 %v173_v27, %v3110_v34 }
 0x192   :  { %v177_v30 = vmul.f32 0.5, %v176_v26 }
 0x193   :  { %v193_v32 = vmul.f32 %v2751_v4, %v186_v29 }
 0x194   :  { %v178_v33 = vsub.f32 1.5, %v177_v30 }
 0x195   :  { %2468 = vmatmul.msk.f32.gmra.mxu1 %vm116_vm4, %v193_v32 }
 0x196   :  { %v179_v35 = vmul.f32 %v2765_v23, %v178_v33 }
 0x198   :  { %v183_v36 = vsel %vm182_vm1, %v2765_v23, %v179_v35 }
 0x199   :  { %v187_v38 = vmul.f32 %v183_v36, %v3115_v37 }
 0x19b   :  { %v194_v39 = vmul.f32 %v2751_v4, %v187_v38 }
 0x19d   :  { %2469 = vmatmul.msk.f32.gmra.mxu1 %vm116_vm4, %v194_v39 }
 0x202   :  { %v3149_v40 = vpop.f32.mrf.mxu1 }
 0x203   :  { %311 = vrot.lane.b32.xlu0 %v3149_v40, %s2971_s20 }
 0x20a   :  { %v3153_v41 = vpop.f32.mrf.mxu1 }
 0x20b   :  { %313 = vrot.lane.b32.xlu1 %v3153_v41, %s2971_s20 }
 0x212   :  { %v3157_v42 = vpop.f32.mrf.mxu1 }
 0x213   :  { %323 = vrot.lane.b32.xlu2 %v3157_v42, %s2972_s21  ;;  %254 = vrot.lane.b32.xlu1 %v3153_v41, %s2973_s22 }
 0x21a   :  { %v3163_v43 = vpop.f32.mrf.mxu1 }
 0x21b   :  { %453 = vrot.lane.b32.xlu1 %v3153_v41, %s2974_s23  ;;  %258 = vrot.lane.b32.xlu0 %v3163_v43, %s2973_s22  ;;  %v3267_v25 = vpack.i.bf16 %v3157_v42, %v3163_v43 }
 0x21c   :  { %325 = vrot.lane.b32.xlu2 %v3163_v43, %s2972_s21 }
 0x223   :  { %443 = vrot.lane.b32.xlu1 %v3149_v40, %s2975_s24  ;;  %252 = vrot.lane.b32.xlu0 %v3149_v40, %s2973_s22 }
 0x224   :  { %321 = vrot.lane.b32.xlu2 %v3153_v41, %s2972_s21 }
 0x22b   :  { %391 = vrot.lane.b32.xlu1 %v3163_v43, %s2976_s25  ;;  %455 = vrot.lane.b32.xlu0 %v3157_v42, %s2974_s23 }
 0x22c   :  { %319 = vrot.lane.b32.xlu2 %v3149_v40, %s2972_s21 }
 0x233   :  { %445 = vrot.lane.b32.xlu1 %v3153_v41, %s2975_s24  ;;  %387 = vrot.lane.b32.xlu0 %v3153_v41, %s2976_s25 }
 0x234   :  { %315 = vrot.lane.b32.xlu2 %v3157_v42, %s2971_s20 }
 0x23b   :  { %385 = vrot.lane.b32.xlu0 %v3149_v40, %s2976_s25 }
 0x23c   :  { %317 = vrot.lane.b32.xlu2 %v3163_v43, %s2971_s20 }
 0x243   :  { %379 = vrot.lane.b32.xlu0 %v3153_v41, %s2977_s26 }
 0x244   :  { %256 = vrot.lane.b32.xlu2 %v3157_v42, %s2973_s22 }
 0x24b   :  { %381 = vrot.lane.b32.xlu0 %v3157_v42, %s2977_s26 }
 0x24c   :  { %389 = vrot.lane.b32.xlu2 %v3157_v42, %s2976_s25 }
 0x254   :  { %451 = vrot.lane.b32.xlu2 %v3149_v40, %s2974_s23 }
 0x25c   :  { %377 = vrot.lane.b32.xlu2 %v3149_v40, %s2977_s26 }
 0x264   :  { %457 = vrot.lane.b32.xlu2 %v3163_v43, %s2974_s23 }
 0x26c   :  { %447 = vrot.lane.b32.xlu2 %v3157_v42, %s2975_s24 }
 0x26d   :  { %v324_v44 = vpop.permute.xlu2 %323 }
 0x274   :  { %449 = vrot.lane.b32.xlu2 %v3163_v43, %s2975_s24 }
 0x275   :  { %v312_v48 = vpop.permute.xlu0 %311 }
 0x276   :  { %v326_v45 = vpop.permute.xlu2 %325 }
 0x277   :  { %2482 = vmatpush.xpose.msk.msra.mxu3 %vm260_vm2, %v326_v45 }
 0x27b   :  { %2483 = vmatpush.xpose.msk.msra.mxu3 %vm260_vm2, %v324_v44 }
 0x27c   :  { %383 = vrot.lane.b32.xlu2 %v3163_v43, %s2977_s26 }
 0x27d   :  { %v314_v46 = vpop.permute.xlu1 %313 }
 0x27e   :  { %v322_v47 = vpop.permute.xlu2 %321 }
 0x27f   :  { %2484 = vmatpush.xpose.msk.msra.mxu3 %vm260_vm2, %v322_v47 }
 0x285   :  { %v255_v49 = vpop.permute.xlu1 %254 }
 0x286   :  { %v320_v51 = vpop.permute.xlu2 %319 }
 0x287   :  { %2485 = vmatpush.xpose.msk.msra.mxu3 %vm260_vm2, %v320_v51 }
 0x28a   :  { %2486 = vmatmul.msk.f32.vlgmr.msra.gmra.mxu3 %vm260_vm2, %v312_v48 }
 0x28d   :  { %v259_v52 = vpop.permute.xlu0 %258  ;;  %v454_v53 = vpop.permute.xlu1 %453 }
 0x28e   :  { %v316_v54 = vpop.permute.xlu2 %315  ;;  %2470 = vmatpush.xpose.msk.msra.mxu2 %vm260_vm2, %v259_v52 }
 0x292   :  { %2487 = vmatmul.msk.f32.gmra.mxu3 %vm260_vm2, %v314_v46 }
 0x295   :  { %v253_v55 = vpop.permute.xlu0 %252  ;;  %v444_v56 = vpop.permute.xlu1 %443 }
 0x296   :  { %v318_v57 = vpop.permute.xlu2 %317 }
 0x29a   :  { %2488 = vmatmul.msk.f32.gmra.mxu3 %vm260_vm2, %v316_v54 }
 0x29d   :  { %v456_v58 = vpop.permute.xlu0 %455  ;;  %v392_v59 = vpop.permute.xlu1 %391 }
 0x29e   :  { %v257_v60 = vpop.permute.xlu2 %256  ;;  %2494 = vmatpush.xpose.msk.msrb.mxu1 %vm260_vm2, %v392_v59 }
 0x29f   :  { %2471 = vmatpush.xpose.msk.msra.mxu2 %vm260_vm2, %v257_v60 }
 0x2a2   :  { %2489 = vmatmul.msk.f32.gmra.mxu3 %vm260_vm2, %v318_v57 }
 0x2a3   :  { %2472 = vmatpush.xpose.msk.msra.mxu2 %vm260_vm2, %v255_v49 }
 0x2a5   :  { %v388_v61 = vpop.permute.xlu0 %387  ;;  %v446_v7 = vpop.permute.xlu1 %445 }
 0x2a6   :  { %v390_v62 = vpop.permute.xlu2 %389 }
 0x2a7   :  { %2473 = vmatpush.xpose.msk.msra.mxu2 %vm260_vm2, %v253_v55  ;;  %2495 = vmatpush.xpose.msk.msrb.mxu1 %vm260_vm2, %v390_v62 }
 0x2aa   :  { %2474 = vmatmul.msk.f32.vlgmr.msra.gmra.mxu2 %vm260_vm2, %v3149_v40 }
 0x2ab   :  { %2496 = vmatpush.xpose.msk.msrb.mxu1 %vm260_vm2, %v388_v61 }
 0x2ad   :  { %v386_v63 = vpop.permute.xlu0 %385 }
 0x2ae   :  { %v452_v0 = vpop.permute.xlu2 %451 }
 0x2af   :  { %2497 = vmatpush.xpose.msk.msrb.mxu1 %vm260_vm2, %v386_v63 }
 0x2b2   :  { %2475 = vmatmul.msk.f32.gmra.mxu2 %vm260_vm2, %v3153_v41 }
 0x2b5   :  { %v380_v2 = vpop.permute.xlu0 %379 }
 0x2b6   :  { %v378_v1 = vpop.permute.xlu2 %377 }
 0x2b7   :  { %2498 = vmatmul.msk.f32.vlgmr.msrb.gmra.mxu1 %vm260_vm2, %v378_v1  ;;  %v2491_v1 = vld [vmem:[%s4121_s2 + $0x48] sm:$0xff] }
 0x2ba   :  { %2476 = vmatmul.msk.f32.gmra.mxu2 %vm260_vm2, %v3157_v42 }
 0x2bd   :  { %v382_v4 = vpop.permute.xlu0 %381 }
 0x2be   :  { %v458_v3 = vpop.permute.xlu2 %457 }
 0x2bf   :  { %2499 = vmatmul.msk.f32.gmra.mxu1 %vm260_vm2, %v380_v2  ;;  %2506 = vmatpush.xpose.msk.msrb.mxu2 %vm260_vm2, %v458_v3  ;;  %v246_v2 = vld [vmem:[%s4121_s2 + $0x10] sm:$0xff] }
 0x2c2   :  { %2477 = vmatmul.msk.f32.gmra.mxu2 %vm260_vm2, %v3163_v43 }
 0x2c3   :  { %2507 = vmatpush.xpose.msk.msrb.mxu2 %vm260_vm2, %v456_v58 }
 0x2c6   :  { %v448_v5 = vpop.permute.xlu2 %447 }
 0x2c7   :  { %2500 = vmatmul.msk.f32.gmra.mxu1 %vm260_vm2, %v382_v4  ;;  %2508 = vmatpush.xpose.msk.msrb.mxu2 %vm260_vm2, %v454_v53 }
 0x2cb   :  { %2509 = vmatpush.xpose.msk.msrb.mxu2 %vm260_vm2, %v452_v0  ;;  %v3296_v0 = vpack.i.bf16 %v3149_v40, %v3153_v41 }
 0x2ce   :  { %v450_v6 = vpop.permute.xlu2 %449  ;;  %2510 = vmatmul.msk.f32.vlgmr.msrb.gmra.mxu2 %vm260_vm2, %v444_v56  ;;  %v244_v56 = vld [vmem:[%s4121_s2] sm:$0xff] }
 0x2d6   :  { %v384_v8 = vpop.permute.xlu2 %383  ;;  %2511 = vmatmul.msk.f32.gmra.mxu2 %vm260_vm2, %v446_v7  ;;  %v247_v7 = vld [vmem:[%s4121_s2 + $0x18] sm:$0xff] }
 0x2d7   :  { %2501 = vmatmul.msk.f32.gmra.mxu1 %vm260_vm2, %v384_v8 }
 0x2de   :  { %2512 = vmatmul.msk.f32.gmra.mxu2 %vm260_vm2, %v448_v5  ;;  %v2492_v5 = vld [vmem:[%s4121_s2 + $0x50] sm:$0xff] }
 0x2e6   :  { %2513 = vmatmul.msk.f32.gmra.mxu2 %vm260_vm2, %v450_v6 }
 0x30d   :  { %v360_v10 = vpop.f32.mrf.mxu3 }
 0x30e   :  { %v361_v11 = vadd.f32 %v2478_v9, %v360_v10 }
 0x310   :  { %v516_v12 = vsel %vm116_vm4, %v361_v11, -inf }
 0x311   :  { %517 = vmax.xlane.f32.xlu1 %v516_v12 }
 0x315   :  { %v363_v14 = vpop.f32.mrf.mxu3 }
 0x316   :  { %v364_v15 = vadd.f32 %v2479_v13, %v363_v14  ;;  %v2490_v13 = vld [vmem:[%s4121_s2 + $0x40] sm:$0xff] }
 0x318   :  { %v519_v16 = vsel %vm116_vm4, %v364_v15, -inf }
 0x319   :  { %520 = vmax.xlane.f32.xlu0 %v519_v16 }
 0x31d   :  { %v366_v18 = vpop.f32.mrf.mxu3 }
 0x31e   :  { %v367_v19 = vadd.f32 %v2480_v17, %v366_v18  ;;  %v2502_v17 = vld [vmem:[%s4121_s2 + $0x60] sm:$0xff] }
 0x320   :  { %v522_v20 = vsel %vm116_vm4, %v367_v19, -inf }
 0x321   :  { %523 = vmax.xlane.f32.xlu2 %v522_v20 }
 0x325   :  { %v369_v22 = vpop.f32.mrf.mxu3 }
 0x326   :  { %v370_v23 = vadd.f32 %v2481_v21, %v369_v22  ;;  %v2503_v21 = vld [vmem:[%s4121_s2 + $0x68] sm:$0xff] }
 0x327   :  { %v245_v22 = vld [vmem:[%s4121_s2 + $0x8] sm:$0xff] }
 0x328   :  { %v525_v24 = vsel %vm116_vm4, %v370_v23, -inf }
 0x329   :  { %526 = vmax.xlane.f32.xlu1 %v525_v24 }
 0x32d   :  { %2672 = vrot.lane.b32.xlu0 %v3267_v25, %s2978_s13  ;;  %v294_v38 = vpop.f32.mrf.mxu2 }
 0x32e   :  { %v3286_v58 = vadd.f32 %v294_v38, %v244_v56 }
 0x330   :  { %v504_v62 = vsel %vm116_vm4, %v3286_v58, -inf }
 0x334   :  { %v426_v47 = vpop.f32.mrf.mxu1 }
 0x335   :  { %v297_v48 = vpop.f32.mrf.mxu2  ;;  %v3331_v14 = vadd.f32 %v2490_v13, %v426_v47 }
 0x336   :  { %v3352_v24 = vadd.f32 %v297_v48, %v245_v22  ;;  %v2505_v22 = vld [vmem:[%s4121_s2 + $0x78] sm:$0xff] }
 0x337   :  { %v528_v16 = vsel %vm116_vm4, %v3331_v14, -inf }
 0x33c   :  { %v429_v60 = vpop.f32.mrf.mxu1 }
 0x33d   :  { %v300_v61 = vpop.f32.mrf.mxu2  ;;  %v3306_v3 = vadd.f32 %v2491_v1, %v429_v60 }
 0x33e   :  { %v3308_v4 = vadd.f32 %v300_v61, %v246_v2 }
 0x33f   :  { %v531_v41 = vsel %vm116_vm4, %v3306_v3, -inf }
 0x340   :  { %v510_v40 = vsel %vm116_vm4, %v3308_v4, -inf }
 0x344   :  { %v432_v6 = vpop.f32.mrf.mxu1 }
 0x345   :  { %v303_v8 = vpop.f32.mrf.mxu2  ;;  %v3320_v9 = vadd.f32 %v2492_v5, %v432_v6 }
 0x346   :  { %v3322_v10 = vadd.f32 %v303_v8, %v247_v7 }
 0x347   :  { %v534_v12 = vsel %vm116_vm4, %v3320_v9, -inf }
 0x354   :  { %v435_v38 = vpop.f32.mrf.mxu1 }
 0x384   :  { %v518_v26 = vpop.xlane.xlu1 %517 }
 0x385   :  { %v556_v27 = vsub.f32 %v361_v11, %v518_v26  ;;  %v513_v11 = vsel %vm116_vm4, %v3322_v10, -inf }
 0x387   :  { %v576_v29 = vmul.f32 1.442695, %v556_v27  ;;  %v2504_v27 = vld [vmem:[%s4121_s2 + $0x70] sm:$0xff] }
 0x389   :  { %2766 = vpow2.f32 %v576_v29 }
 0x38c   :  { %v521_v30 = vpop.xlane.xlu0 %520 }
 0x38d   :  { %v557_v32 = vsub.f32 %v364_v15, %v521_v30  ;;  %v492_v15 = vpop.f32.mrf.mxu2  ;;  %v507_v30 = vsel %vm116_vm4, %v3352_v24, -inf }
 0x38e   :  { %v3338_v18 = vadd.f32 %v2502_v17, %v492_v15 }
 0x38f   :  { %v3271_v33 = vpop.eup %2766  ;;  %v578_v35 = vmul.f32 1.442695, %v557_v32 }
 0x390   :  { %v612_v36 = vsel %vm116_vm4, %v3271_v33, 0.0  ;;  %v540_v20 = vsel %vm116_vm4, %v3338_v18, -inf }
 0x391   :  { %2768 = vpow2.f32 %v578_v35  ;;  %613 = vadd.xlane.f32.xlu1 %v612_v36  ;;  %v2493_v36 = vld [vmem:[%s4121_s2 + $0x58] sm:$0xff] }
 0x394   :  { %v524_v39 = vpop.xlane.xlu2 %523 }
 0x395   :  { %v558_v42 = vsub.f32 %v367_v19, %v524_v39  ;;  %v495_v19 = vpop.f32.mrf.mxu2  ;;  %v3368_v39 = vadd.f32 %v2493_v36, %v435_v38 }
 0x397   :  { %v3275_v43 = vpop.eup %2768  ;;  %v580_v44 = vmul.f32 1.442695, %v558_v42  ;;  %v537_v42 = vsel %vm116_vm4, %v3368_v39, -inf }
 0x398   :  { %v615_v45 = vsel %vm116_vm4, %v3275_v43, 0.0 }
 0x399   :  { %2770 = vpow2.f32 %v580_v44  ;;  %616 = vadd.xlane.f32.xlu2 %v615_v45 }
 0x39c   :  { %v527_v46 = vpop.xlane.xlu1 %526 }
 0x39d   :  { %v559_v49 = vsub.f32 %v370_v23, %v527_v46  ;;  %v3348_v23 = vadd.f32 %v2503_v21, %v495_v19  ;;  %v498_v29 = vpop.f32.mrf.mxu2 }
 0x39e   :  { %v3361_v32 = vadd.f32 %v2504_v27, %v498_v29 }
 0x39f   :  { %v3279_v51 = vpop.eup %2770  ;;  %v582_v52 = vmul.f32 1.442695, %v559_v49  ;;  %v2673_v53 = vpop.permute.xlu0 %2672  ;;  %v543_v26 = vsel %vm116_vm4, %v3348_v23, -inf }
 0x3a0   :  { %v618_v54 = vsel %vm116_vm4, %v3279_v51, 0.0  ;;  %v2674_v55 = vunpack.i.l.bf16 %v2673_v53  ;;  %v2675_v57 = vunpack.i.h.bf16 %v2673_v53  ;;  %v546_v35 = vsel %vm116_vm4, %v3361_v32, -inf }
 0x3a1   :  { %2772 = vpow2.f32 %v582_v52  ;;  %619 = vadd.xlane.f32.xlu2 %v618_v54 }
 0x3a2   :  { %769 = vmatpush.msrb.mxu0 %v2674_v55 }
 0x3a4   :  { %770 = vmatpush.msrb.mxu0 %v2675_v57 }
 0x3a7   :  { %v3288_v59 = vpop.eup %2772 }
 0x3a8   :  { %v621_v63 = vsel %vm116_vm4, %v3288_v59, 0.0 }
 0x3a9   :  { %505 = vmax.xlane.f32.xlu2 %v504_v62  ;;  %622 = vadd.xlane.f32.xlu0 %v621_v63 }
 0x3aa   :  { %2677 = vrot.lane.b32.xlu1 %v3296_v0, %s2978_s13 }
 0x3b1   :  { %511 = vmax.xlane.f32.xlu2 %v510_v40  ;;  %532 = vmax.xlane.f32.xlu0 %v531_v41 }
 0x3b9   :  { %514 = vmax.xlane.f32.xlu2 %v513_v11  ;;  %535 = vmax.xlane.f32.xlu0 %v534_v12 }
 0x3c1   :  { %529 = vmax.xlane.f32.xlu2 %v528_v16 }
 0x3c9   :  { %541 = vmax.xlane.f32.xlu2 %v540_v20 }
 0x3cd   :  { %2682 = vrot.lane.b32.xlu0 %v3267_v25, %s2979_s18 }
 0x3d1   :  { %544 = vmax.xlane.f32.xlu2 %v543_v26  ;;  %v501_v26 = vpop.f32.mrf.mxu2 }
 0x3d2   :  { %v3403_v29 = vadd.f32 %v2505_v22, %v501_v26 }
 0x3d4   :  { %508 = vmax.xlane.f32.xlu1 %v507_v30 }
 0x3d9   :  { %547 = vmax.xlane.f32.xlu2 %v546_v35  ;;  %v549_v35 = vsel %vm116_vm4, %v3403_v29, -inf }
 0x3e1   :  { %538 = vmax.xlane.f32.xlu2 %v537_v42 }
 0x404   :  { %v614_v46 = vpop.xlane.xlu1 %613 }
 0x405   :  { %2774 = vrcp.f32 %v614_v46 }
 0x40b   :  { %v2775_v52 = vpop.eup %2774 }
 0x40c   :  { %v617_v44 = vpop.xlane.xlu2 %616  ;;  %v668_v56 = vmul.f32 %v2775_v52, %v3271_v33 }
 0x40d   :  { %2776 = vrcp.f32 %v617_v44 }
 0x413   :  { %v2777_v62 = vpop.eup %2776 }
 0x414   :  { %v620_v45 = vpop.xlane.xlu2 %619  ;;  %v669_v2 = vmul.f32 %v2777_v62, %v3275_v43 }
 0x41c   :  { %v506_v47 = vpop.xlane.xlu2 %505  ;;  %v2678_v49 = vpop.permute.xlu1 %2677 }
 0x41d   :  { %v552_v48 = vsub.f32 %v3286_v58, %v506_v47  ;;  %v2679_v53 = vunpack.i.l.bf16 %v2678_v49  ;;  %v2680_v55 = vunpack.i.h.bf16 %v2678_v49  ;;  %v623_v57 = vpop.xlane.xlu0 %622 }
 0x41f   :  { %v568_v54 = vmul.f32 1.442695, %v552_v48  ;;  %771 = vmatpush.msrb.mxu0 %v2679_v53 }
 0x421   :  { %2778 = vpow2.f32 %v568_v54  ;;  %772 = vmatpush.msrb.mxu0 %v2680_v55 }
 0x422   :  { %2518 = vmatmul.msk.f32.vlgmr.msrb.gmra.mxu0 %vm116_vm4, %v668_v56  ;;  %2780 = vrcp.f32 %v620_v45 }
 0x424   :  { %v512_v60 = vpop.xlane.xlu2 %511 }
 0x425   :  { %v554_v61 = vsub.f32 %v3308_v4, %v512_v60  ;;  %v533_v33 = vpop.xlane.xlu0 %532 }
 0x426   :  { %v561_v44 = vsub.f32 %v3306_v3, %v533_v33 }
 0x427   :  { %v3376_v63 = vpop.eup %2778  ;;  %v572_v58 = vmul.f32 1.442695, %v554_v61 }
 0x428   :  { %v600_v1 = vsel %vm116_vm4, %v3376_v63, 0.0  ;;  %v2781_v40 = vpop.eup %2780  ;;  %v586_v46 = vmul.f32 1.442695, %v561_v44 }
 0x429   :  { %2782 = vpow2.f32 %v572_v58  ;;  %601 = vadd.xlane.f32.xlu1 %v600_v1  ;;  %v670_v5 = vmul.f32 %v2781_v40, %v3279_v51 }
 0x42a   :  { %2519 = vmatmul.msk.f32.gmra.mxu0 %vm116_vm4, %v669_v2  ;;  %2784 = vrcp.f32 %v623_v57 }
 0x42c   :  { %v515_v43 = vpop.xlane.xlu2 %514 }
 0x42d   :  { %v536_v7 = vpop.xlane.xlu0 %535 }
 0x42f   :  { %v3382_v41 = vpop.eup %2782 }
 0x430   :  { %v606_v4 = vsel %vm116_vm4, %v3382_v41, 0.0  ;;  %v2785_v6 = vpop.eup %2784 }
 0x431   :  { %607 = vadd.xlane.f32.xlu0 %v606_v4  ;;  %v671_v8 = vmul.f32 %v2785_v6, %v3288_v59 }
 0x432   :  { %2520 = vmatmul.msk.f32.gmra.mxu0 %vm116_vm4, %v670_v5 }
 0x434   :  { %v530_v51 = vpop.xlane.xlu2 %529 }
 0x435   :  { %v560_v20 = vsub.f32 %v3331_v14, %v530_v51  ;;  %v562_v14 = vsub.f32 %v3320_v9, %v536_v7 }
 0x437   :  { %v584_v27 = vmul.f32 1.442695, %v560_v20  ;;  %v588_v42 = vmul.f32 1.442695, %v562_v14 }
 0x43a   :  { %2521 = vmatmul.msk.f32.gmra.mxu0 %vm116_vm4, %v671_v8 }
 0x43c   :  { %v542_v17 = vpop.xlane.xlu2 %541 }
 0x43d   :  { %v564_v58 = vsub.f32 %v3338_v18, %v542_v17 }
 0x43f   :  { %v2683_v11 = vpop.permute.xlu0 %2682  ;;  %v592_v1 = vmul.f32 1.442695, %v564_v58 }
 0x440   :  { %v2684_v12 = vunpack.i.l.bf16 %v2683_v11  ;;  %v2685_v13 = vunpack.i.h.bf16 %v2683_v11 }
 0x442   :  { %2687 = vrot.lane.b32.xlu1 %v3296_v0, %s2979_s18  ;;  %716 = vmatpush.msrb.mxu3 %v2684_v12 }
 0x444   :  { %717 = vmatpush.msrb.mxu3 %v2685_v13  ;;  %v545_v30 = vpop.xlane.xlu2 %544 }
 0x445   :  { %2697 = vrot.lane.b32.xlu0 %v3267_v25, %s2980_s30  ;;  %v565_v9 = vsub.f32 %v3348_v23, %v545_v30 }
 0x447   :  { %v509_v15 = vpop.xlane.xlu1 %508  ;;  %v594_v3 = vmul.f32 1.442695, %v565_v9 }
 0x448   :  { %v553_v16 = vsub.f32 %v3352_v24, %v509_v15  ;;  %v555_v24 = vsub.f32 %v3322_v10, %v515_v43 }
 0x44a   :  { %v570_v59 = vmul.f32 1.442695, %v553_v16  ;;  %v574_v36 = vmul.f32 1.442695, %v555_v24 }
 0x44c   :  { %2786 = vpow2.f32 %v570_v59  ;;  %v3414_v10 = vpop.xlane.xlu2 %547 }
 0x44d   :  { %2788 = vpow2.f32 %v584_v27 }
 0x44e   :  { %2790 = vpow2.f32 %v574_v36 }
 0x44f   :  { %2792 = vpow2.f32 %v588_v42 }
 0x450   :  { %2794 = vpow2.f32 %v586_v46 }
 0x451   :  { %2796 = vpow2.f32 %v594_v3 }
 0x452   :  { %v3395_v19 = vpop.eup %2786 }
 0x453   :  { %v603_v21 = vsel %vm116_vm4, %v3395_v19, 0.0  ;;  %v3409_v38 = vpop.eup %2788 }
 0x454   :  { %604 = vadd.xlane.f32.xlu2 %v603_v21  ;;  %v624_v45 = vsel %vm116_vm4, %v3409_v38, 0.0  ;;  %v3416_v47 = vpop.eup %2790  ;;  %v539_v53 = vpop.xlane.xlu2 %538 }
 0x455   :  { %v3419_v48 = vpop.eup %2792  ;;  %v609_v49 = vsel %vm116_vm4, %v3416_v47, 0.0  ;;  %v563_v55 = vsub.f32 %v3368_v39, %v539_v53  ;;  %v241_v39 = vld [vmem:[%s4124_s5 + $0x8] sm:$0xff] }
 0x456   :  { %v630_v52 = vsel %vm116_vm4, %v3419_v48, 0.0  ;;  %v3425_v54 = vpop.eup %2794  ;;  %813 = vmatpush.msra.mxu1 %v241_v39 }
 0x457   :  { %v627_v23 = vsel %vm116_vm4, %v3425_v54, 0.0  ;;  %v590_v56 = vmul.f32 1.442695, %v563_v55  ;;  %v3430_v57 = vpop.eup %2796 }
 0x458   :  { %v639_v60 = vsel %vm116_vm4, %v3430_v57, 0.0 }
 0x459   :  { %2798 = vpow2.f32 %v590_v56 }
 0x45a   :  { %2800 = vpow2.f32 %v592_v1 }
 0x45c   :  { %550 = vmax.xlane.f32.xlu2 %v549_v35 }
 0x45f   :  { %v3439_v61 = vpop.eup %2798 }
 0x460   :  { %v633_v62 = vsel %vm116_vm4, %v3439_v61, 0.0  ;;  %v3447_v33 = vpop.eup %2800 }
 0x461   :  { %v636_v4 = vsel %vm116_vm4, %v3447_v33, 0.0 }
 0x464   :  { %625 = vadd.xlane.f32.xlu2 %v624_v45 }
 0x46c   :  { %610 = vadd.xlane.f32.xlu1 %v609_v49 }
 0x46f   :  { %631 = vadd.xlane.f32.xlu0 %v630_v52 }
 0x474   :  { %628 = vadd.xlane.f32.xlu1 %v627_v23 }
 0x47c   :  { %640 = vadd.xlane.f32.xlu1 %v639_v60  ;;  %2692 = vrot.lane.b32.xlu2 %v3267_v25, %s2981_s12 }
 0x484   :  { %634 = vadd.xlane.f32.xlu1 %v633_v62  ;;  %2702 = vrot.lane.b32.xlu2 %v3296_v0, %s2981_s12  ;;  %v240_v62 = vld [vmem:[%s4124_s5] sm:$0xff] }
 0x485   :  { %854 = vmatpush.msra.mxu2 %v240_v62 }
 0x49c   :  { %v602_v40 = vpop.xlane.xlu1 %601 }
 0x49d   :  { %2802 = vrcp.f32 %v602_v40 }
 0x49f   :  { %v774_v2 = vpop.f32.mrf.mxu0 }
 0x4a0   :  { %2522 = vmatmul.msk.f32.vlgmr.msra.gmra.mxu1 %vm260_vm2, %v774_v2 }
 0x4a3   :  { %v2803_v7 = vpop.eup %2802 }
 0x4a4   :  { %v608_v5 = vpop.xlane.xlu0 %607  ;;  %v664_v51 = vmul.f32 %v2803_v7, %v3376_v63 }
 0x4a7   :  { %v777_v25 = vpop.f32.mrf.mxu0 }
 0x4a8   :  { %2523 = vmatmul.msk.f32.gmra.mxu1 %vm260_vm2, %v777_v25 }
 0x4ad   :  { %637 = vadd.xlane.f32.xlu2 %v636_v4 }
 0x4af   :  { %v780_v6 = vpop.f32.mrf.mxu0 }
 0x4b0   :  { %2524 = vmatmul.msk.f32.gmra.mxu1 %vm260_vm2, %v780_v6  ;;  %v242_v6 = vld [vmem:[%s4124_s5 + $0x10] sm:$0xff] }
 0x4b1   :  { %948 = vmatpush.msra.mxu0 %v242_v6 }
 0x4b4   :  { %v2688_v18 = vpop.permute.xlu1 %2687 }
 0x4b5   :  { %v2689_v8 = vunpack.i.l.bf16 %v2688_v18  ;;  %v2690_v11 = vunpack.i.h.bf16 %v2688_v18 }
 0x4b7   :  { %v2698_v43 = vpop.permute.xlu0 %2697  ;;  %718 = vmatpush.msrb.mxu3 %v2689_v8  ;;  %v783_v13 = vpop.f32.mrf.mxu0 }
 0x4b8   :  { %v2699_v12 = vunpack.i.l.bf16 %v2698_v43  ;;  %2525 = vmatmul.msk.f32.gmra.mxu1 %vm260_vm2, %v783_v13  ;;  %v2700_v15 = vunpack.i.h.bf16 %v2698_v43 }
 0x4b9   :  { %719 = vmatpush.msrb.mxu3 %v2690_v11 }
 0x4ba   :  { %2514 = vmatmul.msk.f32.vlgmr.msrb.gmra.mxu3 %vm116_vm4, %v664_v51  ;;  %1002 = vmatpush.msrb.mxu1 %v2699_v12 }
 0x4bc   :  { %1003 = vmatpush.msrb.mxu1 %v2700_v15 }
 0x4c5   :  { %2707 = vrot.lane.b32.xlu2 %v3296_v0, %s2980_s30 }
 0x4c7   :  { %v605_v16 = vpop.xlane.xlu2 %604 }
 0x4c8   :  { %2804 = vrcp.f32 %v605_v16 }
 0x4c9   :  { %2806 = vrcp.f32 %v608_v5 }
 0x4ce   :  { %v2805_v59 = vpop.eup %2804 }
 0x4cf   :  { %v551_v17 = vpop.xlane.xlu2 %550  ;;  %v665_v20 = vmul.f32 %v2805_v59, %v3395_v19  ;;  %v2807_v22 = vpop.eup %2806  ;;  %v566_v19 = vsub.f32 %v3361_v32, %v3414_v10  ;;  %v243_v59 = vld [vmem:[%s4124_s5 + $0x18] sm:$0xff] }
 0x4d0   :  { %v567_v63 = vsub.f32 %v3403_v29, %v551_v17  ;;  %v666_v27 = vmul.f32 %v2807_v22, %v3382_v41  ;;  %1046 = vmatpush.msrb.mxu2 %v243_v59  ;;  %v2752_v59 = vld [vmem:[%s4125_s6] ss:$0 sm:$0xff] }
 0x4d1   :  { %2515 = vmatmul.msk.f32.gmra.mxu3 %vm116_vm4, %v665_v20  ;;  %v596_v35 = vmul.f32 1.442695, %v566_v19 }
 0x4d2   :  { %v598_v21 = vmul.f32 1.442695, %v567_v63 }
 0x4d4   :  { %2808 = vpow2.f32 %v598_v21 }
 0x4d7   :  { %v626_v26 = vpop.xlane.xlu2 %625 }
 0x4d9   :  { %2516 = vmatmul.msk.f32.gmra.mxu3 %vm116_vm4, %v666_v27 }
 0x4da   :  { %v3463_v0 = vpop.eup %2808 }
 0x4db   :  { %v645_v24 = vsel %vm116_vm4, %v3463_v0, 0.0 }
 0x4dc   :  { %646 = vadd.xlane.f32.xlu1 %v645_v24 }
 0x4df   :  { %v2693_v29 = vpop.permute.xlu2 %2692  ;;  %v611_v30 = vpop.xlane.xlu1 %610 }
 0x4e0   :  { %v2694_v14 = vunpack.i.l.bf16 %v2693_v29  ;;  %2810 = vrcp.f32 %v611_v30  ;;  %v2695_v36 = vunpack.i.h.bf16 %v2693_v29 }
 0x4e1   :  { %2812 = vpow2.f32 %v596_v35 }
 0x4e2   :  { %904 = vmatpush.msra.mxu3 %v2694_v14  ;;  %2814 = vrcp.f32 %v626_v26  ;;  %v632_v53 = vpop.xlane.xlu0 %631 }
 0x4e4   :  { %905 = vmatpush.msra.mxu3 %v2695_v36 }
 0x4e6   :  { %v2811_v41 = vpop.eup %2810 }
 0x4e7   :  { %v2703_v42 = vpop.permute.xlu2 %2702  ;;  %v629_v44 = vpop.xlane.xlu1 %628  ;;  %v667_v45 = vmul.f32 %v2811_v41, %v3416_v47 }
 0x4e8   :  { %v2704_v46 = vunpack.i.l.bf16 %v2703_v42  ;;  %v2813_v32 = vpop.eup %2812  ;;  %v2705_v10 = vunpack.i.h.bf16 %v2703_v42  ;;  %2816 = vrcp.f32 %v629_v44 }
 0x4e9   :  { %2517 = vmatmul.msk.f32.gmra.mxu3 %vm116_vm4, %v667_v45  ;;  %v2815_v9 = vpop.eup %2814  ;;  %v642_v49 = vsel %vm116_vm4, %v2813_v32, 0.0  ;;  %2818 = vrcp.f32 %v632_v53 }
 0x4ea   :  { %906 = vmatpush.msra.mxu3 %v2704_v46  ;;  %v672_v3 = vmul.f32 %v2815_v9, %v3409_v38 }
 0x4ec   :  { %907 = vmatpush.msra.mxu3 %v2705_v10 }
 0x4ee   :  { %643 = vadd.xlane.f32.xlu2 %v642_v49  ;;  %v2817_v55 = vpop.eup %2816 }
 0x4ef   :  { %v641_v52 = vpop.xlane.xlu1 %640  ;;  %v673_v47 = vmul.f32 %v2817_v55, %v3425_v54  ;;  %v2819_v56 = vpop.eup %2818 }
 0x4f0   :  { %v674_v60 = vmul.f32 %v2819_v56, %v3419_v48 }
 0x4f1   :  { %2530 = vmatmul.msk.f32.vlgmr.msra.gmra.mxu3 %vm116_vm4, %v672_v3 }
 0x4f7   :  { %v635_v23 = vpop.xlane.xlu1 %634 }
 0x4f8   :  { %2820 = vrcp.f32 %v635_v23 }
 0x4f9   :  { %2531 = vmatmul.msk.f32.gmra.mxu3 %vm116_vm4, %v673_v47 }
 0x4fe   :  { %v2821_v39 = vpop.eup %2820 }
 0x4ff   :  { %v675_v38 = vmul.f32 %v2821_v39, %v3439_v61 }
 0x501   :  { %2532 = vmatmul.msk.f32.gmra.mxu3 %vm116_vm4, %v674_v60 }
 0x509   :  { %2533 = vmatmul.msk.f32.gmra.mxu3 %vm116_vm4, %v675_v38 }
 0x51d   :  { %v815_v16 = vpop.f32.mrf.mxu1 }
 0x520   :  { %v638_v54 = vpop.xlane.xlu2 %637 }
 0x521   :  { %2822 = vrcp.f32 %v638_v54 }
 0x522   :  { %2824 = vrcp.f32 %v641_v52 }
 0x525   :  { %v818_v20 = vpop.f32.mrf.mxu1 }
 0x527   :  { %v2823_v1 = vpop.eup %2822 }
 0x528   :  { %v2708_v58 = vpop.permute.xlu2 %2707  ;;  %v676_v48 = vmul.f32 %v2823_v1, %v3447_v33  ;;  %v2825_v61 = vpop.eup %2824 }
 0x529   :  { %v2709_v2 = vunpack.i.l.bf16 %v2708_v58  ;;  %v2710_v25 = vunpack.i.h.bf16 %v2708_v58  ;;  %v677_v40 = vmul.f32 %v2825_v61, %v3430_v57  ;;  %v1147_v61 = vld [vmem:[%s4126_s7 + $0x18] sm:$0xff] }
 0x52a   :  { %1172 = vmatpush.msrb.mxu3 %v1147_v61  ;;  %v1194_v61 = vld [vmem:[%s4127_s8 + $0x8] sm:$0xff] }
 0x52b   :  { %1004 = vmatpush.msrb.mxu1 %v2709_v2 }
 0x52d   :  { %1005 = vmatpush.msrb.mxu1 %v2710_v25  ;;  %v821_v63 = vpop.f32.mrf.mxu1 }
 0x52e   :  { %2538 = vmatmul.msk.f32.vlgmr.msrb.gmra.mxu1 %vm116_vm4, %v676_v48 }
 0x535   :  { %v824_v21 = vpop.f32.mrf.mxu1 }
 0x536   :  { %2539 = vmatmul.msk.f32.gmra.mxu1 %vm116_vm4, %v677_v40  ;;  %v1146_v40 = vld [vmem:[%s4126_s7 + $0x10] sm:$0xff] }
 0x537   :  { %1173 = vmatpush.msrb.mxu3 %v1146_v40  ;;  %v1193_v40 = vld [vmem:[%s4127_s8] sm:$0xff] }
 0x53d   :  { %v721_v4 = vpop.f32.mrf.mxu3 }
 0x53e   :  { %2526 = vmatmul.msk.f32.vlgmr.msra.gmra.mxu2 %vm260_vm2, %v721_v4  ;;  %v1144_v4 = vld [vmem:[%s4126_s7] sm:$0xff] }
 0x54f   :  { %v647_v7 = vpop.xlane.xlu1 %646 }
 0x554   :  { %v724_v5 = vpop.f32.mrf.mxu3 }
 0x555   :  { %2527 = vmatmul.msk.f32.gmra.mxu2 %vm260_vm2, %v724_v5 }
 0x55c   :  { %v727_v33 = vpop.f32.mrf.mxu3 }
 0x55d   :  { %2528 = vmatmul.msk.f32.gmra.mxu2 %vm260_vm2, %v727_v33 }
 0x561   :  { %v644_v18 = vpop.xlane.xlu2 %643 }
 0x562   :  { %2826 = vrcp.f32 %v644_v18 }
 0x563   :  { %2828 = vrcp.f32 %v647_v7 }
 0x568   :  { %v2827_v57 = vpop.eup %2826 }
 0x569   :  { %v678_v8 = vmul.f32 %v2827_v57, %v2813_v32  ;;  %v2829_v11 = vpop.eup %2828 }
 0x56a   :  { %v679_v12 = vmul.f32 %v2829_v11, %v3463_v0 }
 0x56b   :  { %2540 = vmatmul.msk.f32.gmra.mxu1 %vm116_vm4, %v678_v8 }
 0x56c   :  { %v730_v43 = vpop.f32.mrf.mxu3 }
 0x56d   :  { %2529 = vmatmul.msk.f32.gmra.mxu2 %vm260_vm2, %v730_v43 }
 0x573   :  { %2541 = vmatmul.msk.f32.gmra.mxu1 %vm116_vm4, %v679_v12 }
 0x574   :  { %v909_v13 = vpop.f32.mrf.mxu3 }
 0x575   :  { %2534 = vmatmul.msk.f32.vlgmr.msra.gmra.mxu0 %vm260_vm2, %v909_v13 }
 0x57c   :  { %v912_v51 = vpop.f32.mrf.mxu3 }
 0x57d   :  { %2535 = vmatmul.msk.f32.gmra.mxu0 %vm260_vm2, %v912_v51 }
 0x584   :  { %v915_v15 = vpop.f32.mrf.mxu3 }
 0x585   :  { %2536 = vmatmul.msk.f32.gmra.mxu0 %vm260_vm2, %v915_v15 }
 0x58c   :  { %v918_v17 = vpop.f32.mrf.mxu3 }
 0x58d   :  { %2537 = vmatmul.msk.f32.gmra.mxu0 %vm260_vm2, %v918_v17 }
 0x5ab   :  { %v1007_v22 = vpop.f32.mrf.mxu1 }
 0x5ac   :  { %2542 = vmatmul.msk.f32.vlgmr.msrb.gmra.mxu2 %vm260_vm2, %v1007_v22 }
 0x5b3   :  { %v1010_v26 = vpop.f32.mrf.mxu1 }
 0x5b4   :  { %2543 = vmatmul.msk.f32.gmra.mxu2 %vm260_vm2, %v1010_v26 }
 0x5c1   :  { %v856_v24 = vpop.f32.mrf.mxu2 }
 0x5c2   :  { %v857_v14 = vadd.f32 %v856_v24, %v815_v16 }
 0x5d8   :  { %v859_v19 = vpop.f32.mrf.mxu2 }
 0x5d9   :  { %v860_v46 = vadd.f32 %v859_v19, %v818_v20 }
 0x5e0   :  { %v862_v29 = vpop.f32.mrf.mxu2 }
 0x5e1   :  { %v863_v47 = vadd.f32 %v862_v29, %v821_v63 }
 0x5e8   :  { %v1013_v27 = vpop.f32.mrf.mxu1 }
 0x5e9   :  { %2544 = vmatmul.msk.f32.gmra.mxu2 %vm260_vm2, %v1013_v27 }
 0x5f0   :  { %v1016_v0 = vpop.f32.mrf.mxu1  ;;  %v865_v30 = vpop.f32.mrf.mxu2 }
 0x5f1   :  { %2545 = vmatmul.msk.f32.gmra.mxu2 %vm260_vm2, %v1016_v0  ;;  %v866_v62 = vadd.f32 %v865_v30, %v824_v21 }
 0x5f2   :  { %v950_v35 = vpop.f32.mrf.mxu0 }
 0x5f3   :  { %v962_v36 = vadd.f32 %v950_v35, %v857_v14  ;;  %v1200_v14 = vld [vmem:[%s4127_s8 + $0x38] sm:$0xff] }
 0x5f4   :  { %1222 = vmatpush.msrb.mxu0 %v1200_v14 }
 0x5fa   :  { %v953_v45 = vpop.f32.mrf.mxu0 }
 0x5fb   :  { %v963_v10 = vadd.f32 %v953_v45, %v860_v46 }
 0x602   :  { %v956_v55 = vpop.f32.mrf.mxu0 }
 0x603   :  { %v964_v23 = vadd.f32 %v956_v55, %v863_v47 }
 0x60a   :  { %v959_v38 = vpop.f32.mrf.mxu0 }
 0x60b   :  { %v965_v54 = vadd.f32 %v959_v38, %v866_v62 }
 0x62f   :  { %v1048_v41 = vpop.f32.mrf.mxu2 }
 0x630   :  { %v1060_v42 = vadd.f32 %v1048_v41, %v962_v36  ;;  %v1199_v36 = vld [vmem:[%s4127_s8 + $0x30] sm:$0xff]  ;;  %v1198_v41 = vld [vmem:[%s4127_s8 + $0x28] sm:$0xff] }
 0x631   :  { %1223 = vmatpush.msrb.mxu0 %v1199_v36 }
 0x632   :  { %v3509_v44 = vadd.f32 %v1060_v42, %v3100_v28  ;;  %v1197_v42 = vld [vmem:[%s4127_s8 + $0x20] sm:$0xff] }
 0x633   :  { %1224 = vmatpush.msrb.mxu0 %v1198_v41 }
 0x634   :  { %v1069_v32 = vmul.f32 %v3509_v44, %v3509_v44 }
 0x635   :  { %1225 = vmatpush.msrb.mxu0 %v1197_v42 }
 0x636   :  { %v1073_v9 = vsel %vm116_vm4, %v1069_v32, 0.0  ;;  %v1196_v32 = vld [vmem:[%s4127_s8 + $0x18] sm:$0xff] }
 0x637   :  { %1074 = vadd.xlane.f32.xlu1 %v1073_v9  ;;  %v1051_v49 = vpop.f32.mrf.mxu2  ;;  %1226 = vmatpush.msrb.mxu0 %v1196_v32 }
 0x638   :  { %v1061_v3 = vadd.f32 %v1051_v49, %v963_v10  ;;  %v1195_v49 = vld [vmem:[%s4127_s8 + $0x10] sm:$0xff] }
 0x639   :  { %1227 = vmatpush.msrb.mxu0 %v1195_v49 }
 0x63a   :  { %v3515_v52 = vadd.f32 %v1061_v3, %v3105_v31 }
 0x63b   :  { %1228 = vmatpush.msrb.mxu0 %v1194_v61 }
 0x63c   :  { %v1070_v53 = vmul.f32 %v3515_v52, %v3515_v52 }
 0x63d   :  { %1229 = vmatpush.msrb.mxu0 %v1193_v40 }
 0x63e   :  { %v1076_v28 = vsel %vm116_vm4, %v1070_v53, 0.0 }
 0x63f   :  { %1077 = vadd.xlane.f32.xlu1 %v1076_v28 }
 0x66c   :  { %v1054_v56 = vpop.f32.mrf.mxu2 }
 0x66d   :  { %v1062_v60 = vadd.f32 %v1054_v56, %v964_v23 }
 0x66f   :  { %v3521_v39 = vadd.f32 %v1062_v60, %v3110_v34 }
 0x671   :  { %v1071_v31 = vmul.f32 %v3521_v39, %v3521_v39 }
 0x673   :  { %v1079_v58 = vsel %vm116_vm4, %v1071_v31, 0.0 }
 0x674   :  { %1080 = vadd.xlane.f32.xlu1 %v1079_v58  ;;  %v1057_v1 = vpop.f32.mrf.mxu2 }
 0x675   :  { %v1063_v2 = vadd.f32 %v1057_v1, %v965_v54 }
 0x677   :  { %v3527_v25 = vadd.f32 %v1063_v2, %v3115_v37  ;;  %v1145_v37 = vld [vmem:[%s4126_s7 + $0x8] sm:$0xff] }
 0x678   :  { %1174 = vmatpush.msrb.mxu3 %v1145_v37 }
 0x679   :  { %v1072_v48 = vmul.f32 %v3527_v25, %v3527_v25 }
 0x67a   :  { %1175 = vmatpush.msrb.mxu3 %v1144_v4 }
 0x67b   :  { %v1082_v34 = vsel %vm116_vm4, %v1072_v48, 0.0 }
 0x67c   :  { %1083 = vadd.xlane.f32.xlu0 %v1082_v34 }
 0x6aa   :  { %v1075_v5 = vpop.xlane.xlu1 %1074 }
 0x6ab   :  { %v1085_v6 = vmul.f32 %v1075_v5, %v3132_v50 }
 0x6ad   :  { %v1089_v33 = vadd.f32 1e-06, %v1085_v6 }
 0x6af   :  { %2830 = vrsqrt.f32 %v1089_v33  ;;  %vm1099_vm5 = vweird.f32 %v1089_v33 }
 0x6b2   :  { %v1078_v18 = vpop.xlane.xlu1 %1077 }
 0x6b3   :  { %v1086_v7 = vmul.f32 %v1078_v18, %v3132_v50 }
 0x6b5   :  { %v2831_v57 = vpop.eup %2830  ;;  %v1090_v8 = vadd.f32 1e-06, %v1086_v7 }
 0x6b6   :  { %v1094_v43 = vmul.f32 %v2831_v57, %v1089_v33  ;;  %vm1100_vm3 = vweird.f32 %v2831_v57 }
 0x6b7   :  { %2832 = vrsqrt.f32 %v1090_v8  ;;  %vm1101_vm6 = vmor %vm1099_vm5, %vm1100_vm3  ;;  %vm1109_vm8 = vweird.f32 %v1090_v8 }
 0x6b8   :  { %v1095_v11 = vmul.f32 %v2831_v57, %v1094_v43 }
 0x6ba   :  { %v1096_v12 = vmul.f32 0.5, %v1095_v11 }
 0x6bc   :  { %v1097_v13 = vsub.f32 1.5, %v1096_v12 }
 0x6bd   :  { %v2833_v51 = vpop.eup %2832 }
 0x6be   :  { %v1098_v15 = vmul.f32 %v2831_v57, %v1097_v13  ;;  %v1104_v16 = vmul.f32 %v2833_v51, %v1090_v8  ;;  %vm1110_vm7 = vweird.f32 %v2833_v51 }
 0x6bf   :  { %vm1111_vm9 = vmor %vm1109_vm8, %vm1110_vm7 }
 0x6c0   :  { %v1102_v17 = vsel %vm1101_vm6, %v2831_v57, %v1098_v15  ;;  %v1105_v20 = vmul.f32 %v2833_v51, %v1104_v16 }
 0x6c1   :  { %v1133_v63 = vmul.f32 %v1102_v17, %v3509_v44 }
 0x6c2   :  { %v1106_v21 = vmul.f32 0.5, %v1105_v20 }
 0x6c3   :  { %v1140_v22 = vmul.f32 %v2752_v59, %v1133_v63 }
 0x6c4   :  { %v1107_v26 = vsub.f32 1.5, %v1106_v21 }
 0x6c5   :  { %2546 = vmatmul.msk.f32.vlgmr.msrb.gmra.mxu3 %vm116_vm4, %v1140_v22 }
 0x6c6   :  { %v1108_v27 = vmul.f32 %v2833_v51, %v1107_v26  ;;  %v2557_v26 = vld [vmem:[%s4123_s4 + $0x30] sm:$0xff] }
 0x6c8   :  { %v1112_v0 = vsel %vm1111_vm9, %v2833_v51, %v1108_v27  ;;  %v2555_v27 = vld [vmem:[%s4123_s4 + $0x20] sm:$0xff] }
 0x6c9   :  { %v1134_v24 = vmul.f32 %v1112_v0, %v3515_v52 }
 0x6cb   :  { %v1141_v19 = vmul.f32 %v2752_v59, %v1134_v24 }
 0x6cd   :  { %2547 = vmatmul.msk.f32.gmra.mxu3 %vm116_vm4, %v1141_v19 }
 0x6e7   :  { %v1081_v29 = vpop.xlane.xlu1 %1080 }
 0x6e8   :  { %v1087_v30 = vmul.f32 %v1081_v29, %v3132_v50 }
 0x6ea   :  { %v1091_v35 = vadd.f32 1e-06, %v1087_v30 }
 0x6ec   :  { %2834 = vrsqrt.f32 %v1091_v35  ;;  %vm1119_vm11 = vweird.f32 %v1091_v35 }
 0x6ef   :  { %v1084_v45 = vpop.xlane.xlu0 %1083 }
 0x6f0   :  { %v1088_v46 = vmul.f32 %v1084_v45, %v3132_v50 }
 0x6f2   :  { %v2835_v10 = vpop.eup %2834  ;;  %v1092_v9 = vadd.f32 1e-06, %v1088_v46 }
 0x6f3   :  { %v1114_v3 = vmul.f32 %v2835_v10, %v1091_v35  ;;  %vm1120_vm10 = vweird.f32 %v2835_v10 }
 0x6f4   :  { %2836 = vrsqrt.f32 %v1092_v9  ;;  %vm1121_vm12 = vmor %vm1119_vm11, %vm1120_vm10  ;;  %vm1129_vm14 = vweird.f32 %v1092_v9 }
 0x6f5   :  { %v1115_v53 = vmul.f32 %v2835_v10, %v1114_v3 }
 0x6f7   :  { %v1116_v28 = vmul.f32 0.5, %v1115_v53 }
 0x6f9   :  { %v1117_v55 = vsub.f32 1.5, %v1116_v28 }
 0x6fa   :  { %v2837_v47 = vpop.eup %2836 }
 0x6fb   :  { %v1118_v23 = vmul.f32 %v2835_v10, %v1117_v55  ;;  %v1124_v56 = vmul.f32 %v2837_v47, %v1092_v9  ;;  %vm1130_vm13 = vweird.f32 %v2837_v47  ;;  %v2753_v9 = vld [vmem:[%s4122_s3 + $0x1] ss:$0 sm:$0xff] }
 0x6fc   :  { %vm1131_vm15 = vmor %vm1129_vm14, %vm1130_vm13 }
 0x6fd   :  { %v1125_v60 = vmul.f32 %v2837_v47, %v1124_v56  ;;  %v1122_v38 = vsel %vm1121_vm12, %v2835_v10, %v1118_v23 }
 0x6fe   :  { %v1135_v62 = vmul.f32 %v1122_v38, %v3521_v39 }
 0x6ff   :  { %v1126_v31 = vmul.f32 0.5, %v1125_v60 }
 0x700   :  { %v1142_v54 = vmul.f32 %v2752_v59, %v1135_v62 }
 0x701   :  { %v1127_v58 = vsub.f32 1.5, %v1126_v31 }
 0x702   :  { %2548 = vmatmul.msk.f32.gmra.mxu3 %vm116_vm4, %v1142_v54 }
 0x703   :  { %v1128_v1 = vmul.f32 %v2837_v47, %v1127_v58 }
 0x705   :  { %v1132_v2 = vsel %vm1131_vm15, %v2837_v47, %v1128_v1 }
 0x706   :  { %v1136_v48 = vmul.f32 %v1132_v2, %v3527_v25 }
 0x708   :  { %v1143_v34 = vmul.f32 %v2752_v59, %v1136_v48 }
 0x70a   :  { %2549 = vmatmul.msk.f32.gmra.mxu3 %vm116_vm4, %v1143_v34 }
 0x748   :  { %v1177_v37 = vpop.f32.mrf.mxu3 }
 0x749   :  { %v1189_v4 = vmax.f32 %v1177_v37, 0.0 }
 0x74b   :  { %2550 = vmatmul.msk.f32.vlgmr.msrb.gmra.mxu0 %vm1201_vm0, %v1189_v4 }
 0x750   :  { %v1180_v5 = vpop.f32.mrf.mxu3 }
 0x751   :  { %v1190_v6 = vmax.f32 %v1180_v5, 0.0 }
 0x753   :  { %2551 = vmatmul.msk.f32.gmra.mxu0 %vm1201_vm0, %v1190_v6 }
 0x785   :  { %v1183_v33 = vpop.f32.mrf.mxu3 }
 0x786   :  { %v1191_v18 = vmax.f32 %v1183_v33, 0.0 }
 0x788   :  { %2552 = vmatmul.msk.f32.gmra.mxu0 %vm1201_vm0, %v1191_v18 }
 0x78d   :  { %v1186_v7 = vpop.f32.mrf.mxu3 }
 0x78e   :  { %v1192_v57 = vmax.f32 %v1186_v7, 0.0 }
 0x790   :  { %2553 = vmatmul.msk.f32.gmra.mxu0 %vm1201_vm0, %v1192_v57 }
 0x7c8   :  { %v1231_v8 = vpop.f32.mrf.mxu0 }
 0x7c9   :  { %v3588_v43 = vadd.f32 %v1231_v8, %v3509_v44 }
 0x7cb   :  { %v1249_v11 = vmul.f32 %v3588_v43, %v3588_v43 }
 0x7cd   :  { %v1253_v12 = vsel %vm116_vm4, %v1249_v11, 0.0 }
 0x7ce   :  { %1254 = vadd.xlane.f32.xlu2 %v1253_v12 }
 0x7d0   :  { %v1234_v13 = vpop.f32.mrf.mxu0 }
 0x7d1   :  { %v3594_v51 = vadd.f32 %v1234_v13, %v3515_v52 }
 0x7d3   :  { %v1250_v15 = vmul.f32 %v3594_v51, %v3594_v51 }
 0x7d5   :  { %v1256_v16 = vsel %vm116_vm4, %v1250_v15, 0.0 }
 0x7d6   :  { %1257 = vadd.xlane.f32.xlu1 %v1256_v16 }
 0x805   :  { %v1237_v59 = vpop.f32.mrf.mxu0 }
 0x806   :  { %v3600_v44 = vadd.f32 %v1237_v59, %v3521_v39  ;;  %v2558_v39 = vld [vmem:[%s4123_s4 + $0x38] sm:$0xff] }
 0x807   :  { %1353 = vmatpush.msra.mxu1 %v2558_v39 }
 0x808   :  { %v1251_v17 = vmul.f32 %v3600_v44, %v3600_v44 }
 0x809   :  { %1354 = vmatpush.msra.mxu1 %v2557_v26 }
 0x80a   :  { %v1259_v20 = vsel %vm116_vm4, %v1251_v17, 0.0 }
 0x80b   :  { %1260 = vadd.xlane.f32.xlu0 %v1259_v20 }
 0x80d   :  { %v1240_v63 = vpop.f32.mrf.mxu0 }
 0x80e   :  { %v3606_v52 = vadd.f32 %v1240_v63, %v3527_v25  ;;  %v2556_v25 = vld [vmem:[%s4123_s4 + $0x28] sm:$0xff] }
 0x80f   :  { %1355 = vmatpush.msra.mxu1 %v2556_v25 }
 0x810   :  { %v1252_v21 = vmul.f32 %v3606_v52, %v3606_v52 }
 0x811   :  { %1356 = vmatpush.msra.mxu1 %v2555_v27 }
 0x812   :  { %v1262_v22 = vsel %vm116_vm4, %v1252_v21, 0.0 }
 0x813   :  { %1263 = vadd.xlane.f32.xlu2 %v1262_v22 }
 0x841   :  { %v1255_v0 = vpop.xlane.xlu2 %1254 }
 0x842   :  { %v1265_v24 = vmul.f32 %v1255_v0, %v3132_v50 }
 0x844   :  { %v1269_v19 = vadd.f32 1e-06, %v1265_v24 }
 0x846   :  { %2838 = vrsqrt.f32 %v1269_v19  ;;  %vm1279_vm3 = vweird.f32 %v1269_v19 }
 0x849   :  { %v1258_v29 = vpop.xlane.xlu1 %1257 }
 0x84a   :  { %v1266_v30 = vmul.f32 %v1258_v29, %v3132_v50 }
 0x84c   :  { %v2839_v35 = vpop.eup %2838  ;;  %v1270_v14 = vadd.f32 1e-06, %v1266_v30 }
 0x84d   :  { %v1274_v36 = vmul.f32 %v2839_v35, %v1269_v19  ;;  %vm1280_vm1 = vweird.f32 %v2839_v35 }
 0x84e   :  { %2840 = vrsqrt.f32 %v1270_v14  ;;  %vm1281_vm5 = vmor %vm1279_vm3, %vm1280_vm1  ;;  %vm1289_vm7 = vweird.f32 %v1270_v14 }
 0x84f   :  { %v1275_v41 = vmul.f32 %v2839_v35, %v1274_v36 }
 0x851   :  { %v1276_v42 = vmul.f32 0.5, %v1275_v41 }
 0x853   :  { %v1277_v45 = vsub.f32 1.5, %v1276_v42 }
 0x854   :  { %v2841_v46 = vpop.eup %2840 }
 0x855   :  { %v1278_v32 = vmul.f32 %v2839_v35, %v1277_v45  ;;  %v1284_v10 = vmul.f32 %v2841_v46, %v1270_v14  ;;  %vm1290_vm6 = vweird.f32 %v2841_v46 }
 0x856   :  { %vm1291_vm8 = vmor %vm1289_vm7, %vm1290_vm6 }
 0x857   :  { %v1282_v49 = vsel %vm1281_vm5, %v2839_v35, %v1278_v32  ;;  %v1285_v3 = vmul.f32 %v2841_v46, %v1284_v10 }
 0x858   :  { %v1313_v53 = vmul.f32 %v1282_v49, %v3588_v43 }
 0x859   :  { %v1286_v28 = vmul.f32 0.5, %v1285_v3 }
 0x85a   :  { %v1320_v55 = vmul.f32 %v2753_v9, %v1313_v53 }
 0x85b   :  { %v1287_v47 = vsub.f32 1.5, %v1286_v28 }
 0x85c   :  { %2559 = vmatmul.msk.f32.vlgmr.msra.gmra.mxu1 %vm116_vm4, %v1320_v55 }
 0x85d   :  { %v1288_v23 = vmul.f32 %v2841_v46, %v1287_v47 }
 0x85f   :  { %v1292_v56 = vsel %vm1291_vm8, %v2841_v46, %v1288_v23 }
 0x860   :  { %v1314_v60 = vmul.f32 %v1292_v56, %v3594_v51  ;;  %v2926_v56 = vld [vmem:[%s4121_s2 + $0x20] sm:$0xff] }
 0x862   :  { %v1321_v38 = vmul.f32 %v2753_v9, %v1314_v60 }
 0x864   :  { %2560 = vmatmul.msk.f32.gmra.mxu1 %vm116_vm4, %v1321_v38 }
 0x87e   :  { %v1261_v62 = vpop.xlane.xlu0 %1260 }
 0x87f   :  { %v1267_v31 = vmul.f32 %v1261_v62, %v3132_v50 }
 0x881   :  { %v1271_v54 = vadd.f32 1e-06, %v1267_v31  ;;  %v2927_v31 = vld [vmem:[%s4121_s2 + $0x28] sm:$0xff] }
 0x883   :  { %2842 = vrsqrt.f32 %v1271_v54  ;;  %vm1299_vm10 = vweird.f32 %v1271_v54 }
 0x886   :  { %v1264_v58 = vpop.xlane.xlu2 %1263 }
 0x887   :  { %v1268_v1 = vmul.f32 %v1264_v58, %v3132_v50 }
 0x889   :  { %v2843_v2 = vpop.eup %2842  ;;  %v1272_v48 = vadd.f32 1e-06, %v1268_v1 }
 0x88a   :  { %v1294_v34 = vmul.f32 %v2843_v2, %v1271_v54  ;;  %vm1300_vm9 = vweird.f32 %v2843_v2 }
 0x88b   :  { %2844 = vrsqrt.f32 %v1272_v48  ;;  %vm1301_vm11 = vmor %vm1299_vm10, %vm1300_vm9  ;;  %vm1309_vm13 = vweird.f32 %v1272_v48 }
 0x88c   :  { %v1295_v61 = vmul.f32 %v2843_v2, %v1294_v34 }
 0x88e   :  { %v1296_v40 = vmul.f32 0.5, %v1295_v61 }
 0x890   :  { %v1297_v37 = vsub.f32 1.5, %v1296_v40  ;;  %v2929_v40 = vld [vmem:[%s4121_s2 + $0x38] sm:$0xff] }
 0x891   :  { %v2845_v4 = vpop.eup %2844 }
 0x892   :  { %v1298_v5 = vmul.f32 %v2843_v2, %v1297_v37  ;;  %v1304_v6 = vmul.f32 %v2845_v4, %v1272_v48  ;;  %vm1310_vm12 = vweird.f32 %v2845_v4 }
 0x893   :  { %vm1311_vm14 = vmor %vm1309_vm13, %vm1310_vm12 }
 0x894   :  { %v1305_v33 = vmul.f32 %v2845_v4, %v1304_v6  ;;  %v1302_v18 = vsel %vm1301_vm11, %v2843_v2, %v1298_v5  ;;  %v2928_v2 = vld [vmem:[%s4121_s2 + $0x30] sm:$0xff] }
 0x895   :  { %v1315_v7 = vmul.f32 %v1302_v18, %v3600_v44 }
 0x896   :  { %v1306_v57 = vmul.f32 0.5, %v1305_v33 }
 0x897   :  { %v1322_v8 = vmul.f32 %v2753_v9, %v1315_v7 }
 0x898   :  { %v1307_v11 = vsub.f32 1.5, %v1306_v57  ;;  %v2930_v57 = vld [vmem:[%s4121_s2 + $0x8] sm:$0xff] }
 0x899   :  { %2561 = vmatmul.msk.f32.gmra.mxu1 %vm116_vm4, %v1322_v8 }
 0x89a   :  { %v1308_v12 = vmul.f32 %v2845_v4, %v1307_v11 }
 0x89c   :  { %v1312_v13 = vsel %vm1311_vm14, %v2845_v4, %v1308_v12 }
 0x89d   :  { %v1316_v15 = vmul.f32 %v1312_v13, %v3606_v52  ;;  %v2931_v13 = vld [vmem:[%s4121_s2 + $0x68] sm:$0xff] }
 0x89f   :  { %v1323_v16 = vmul.f32 %v2753_v9, %v1316_v15 }
 0x8a1   :  { %2562 = vmatmul.msk.f32.gmra.mxu1 %vm116_vm4, %v1323_v16 }
 0x8d9   :  { %v3638_v59 = vpop.f32.mrf.mxu1 }
 0x8e1   :  { %v3640_v17 = vpop.f32.mrf.mxu1 }
 0x8e2   :  { %1442 = vrot.lane.b32.xlu2 %v3640_v17, %s2972_s21  ;;  %v3758_v5 = vpack.i.bf16 %v3638_v59, %v3640_v17 }
 0x8ea   :  { %1434 = vrot.lane.b32.xlu2 %v3640_v17, %s2971_s20 }
 0x916   :  { %v3646_v20 = vpop.f32.mrf.mxu1 }
 0x917   :  { %1444 = vrot.lane.b32.xlu0 %v3646_v20, %s2972_s21 }
 0x91e   :  { %v3650_v63 = vpop.f32.mrf.mxu1 }
 0x91f   :  { %1432 = vrot.lane.b32.xlu0 %v3638_v59, %s2971_s20  ;;  %1385 = vrot.lane.b32.xlu2 %v3650_v63, %s2973_s22  ;;  %v3764_v6 = vpack.i.bf16 %v3646_v20, %v3650_v63 }
 0x920   :  { %1446 = vrot.lane.b32.xlu1 %v3650_v63, %s2972_s21 }
 0x927   :  { %1379 = vrot.lane.b32.xlu2 %v3638_v59, %s2973_s22  ;;  %1438 = vrot.lane.b32.xlu0 %v3650_v63, %s2971_s20 }
 0x928   :  { %1440 = vrot.lane.b32.xlu1 %v3638_v59, %s2972_s21 }
 0x92f   :  { %1503 = vrot.lane.b32.xlu2 %v3640_v17, %s2976_s25  ;;  %1381 = vrot.lane.b32.xlu0 %v3640_v17, %s2973_s22 }
 0x930   :  { %1436 = vrot.lane.b32.xlu1 %v3646_v20, %s2971_s20 }
 0x937   :  { %1493 = vrot.lane.b32.xlu2 %v3638_v59, %s2977_s26  ;;  %1505 = vrot.lane.b32.xlu0 %v3646_v20, %s2976_s25 }
 0x938   :  { %1383 = vrot.lane.b32.xlu1 %v3646_v20, %s2973_s22 }
 0x93c   :  { %v1443_v21 = vpop.permute.xlu2 %1442 }
 0x93f   :  { %1495 = vrot.lane.b32.xlu2 %v3640_v17, %s2977_s26  ;;  %1564 = vrot.lane.b32.xlu0 %v3640_v17, %s2974_s23 }
 0x940   :  { %1501 = vrot.lane.b32.xlu1 %v3638_v59, %s2976_s25 }
 0x944   :  { %v1435_v22 = vpop.permute.xlu2 %1434 }
 0x947   :  { %1497 = vrot.lane.b32.xlu2 %v3646_v20, %s2977_s26  ;;  %1554 = vrot.lane.b32.xlu0 %v3638_v59, %s2975_s24 }
 0x948   :  { %1566 = vrot.lane.b32.xlu1 %v3646_v20, %s2974_s23 }
 0x94f   :  { %1499 = vrot.lane.b32.xlu2 %v3650_v63, %s2977_s26  ;;  %1568 = vrot.lane.b32.xlu0 %v3650_v63, %s2974_s23 }
 0x950   :  { %1562 = vrot.lane.b32.xlu1 %v3638_v59, %s2974_s23 }
 0x957   :  { %1558 = vrot.lane.b32.xlu2 %v3646_v20, %s2975_s24  ;;  %1556 = vrot.lane.b32.xlu0 %v3640_v17, %s2975_s24 }
 0x958   :  { %1507 = vrot.lane.b32.xlu1 %v3650_v63, %s2976_s25 }
 0x979   :  { %v1386_v39 = vpop.permute.xlu2 %1385 }
 0x97a   :  { %2567 = vmatpush.xpose.msk.msra.mxu2 %vm260_vm2, %v1386_v39 }
 0x981   :  { %v1380_v30 = vpop.permute.xlu2 %1379 }
 0x989   :  { %v1445_v26 = vpop.permute.xlu0 %1444  ;;  %v1504_v36 = vpop.permute.xlu2 %1503 }
 0x991   :  { %v1433_v25 = vpop.permute.xlu0 %1432  ;;  %v1494_v45 = vpop.permute.xlu2 %1493 }
 0x992   :  { %v1447_v27 = vpop.permute.xlu1 %1446 }
 0x993   :  { %2575 = vmatpush.xpose.msk.msra.mxu3 %vm260_vm2, %v1447_v27 }
 0x997   :  { %2576 = vmatpush.xpose.msk.msra.mxu3 %vm260_vm2, %v1445_v26 }
 0x999   :  { %v1439_v0 = vpop.permute.xlu0 %1438  ;;  %v1496_v9 = vpop.permute.xlu2 %1495 }
 0x99a   :  { %v1441_v24 = vpop.permute.xlu1 %1440 }
 0x99b   :  { %2577 = vmatpush.xpose.msk.msra.mxu3 %vm260_vm2, %v1443_v21 }
 0x99f   :  { %2578 = vmatpush.xpose.msk.msra.mxu3 %vm260_vm2, %v1441_v24 }
 0x9a1   :  { %v1382_v19 = vpop.permute.xlu0 %1381  ;;  %v1498_v53 = vpop.permute.xlu2 %1497 }
 0x9a2   :  { %2579 = vmatmul.msk.f32.vlgmr.msra.gmra.mxu3 %vm260_vm2, %v1433_v25  ;;  %v1437_v29 = vpop.permute.xlu1 %1436 }
 0x9a9   :  { %v1506_v35 = vpop.permute.xlu0 %1505  ;;  %v1500_v28 = vpop.permute.xlu2 %1499 }
 0x9aa   :  { %2580 = vmatmul.msk.f32.gmra.mxu3 %vm260_vm2, %v1435_v22  ;;  %v1384_v14 = vpop.permute.xlu1 %1383 }
 0x9ab   :  { %2568 = vmatpush.xpose.msk.msra.mxu2 %vm260_vm2, %v1384_v14 }
 0x9af   :  { %2569 = vmatpush.xpose.msk.msra.mxu2 %vm260_vm2, %v1382_v19 }
 0x9b1   :  { %v1565_v41 = vpop.permute.xlu0 %1564  ;;  %v1559_v47 = vpop.permute.xlu2 %1558 }
 0x9b2   :  { %2581 = vmatmul.msk.f32.gmra.mxu3 %vm260_vm2, %v1437_v29  ;;  %v1502_v42 = vpop.permute.xlu1 %1501 }
 0x9b3   :  { %2570 = vmatpush.xpose.msk.msra.mxu2 %vm260_vm2, %v1380_v30  ;;  %v2932_v30 = vld [vmem:[%s4121_s2] sm:$0xff] }
 0x9b6   :  { %2571 = vmatmul.msk.f32.vlgmr.msra.gmra.mxu2 %vm260_vm2, %v3638_v59 }
 0x9b9   :  { %v1555_v46 = vpop.permute.xlu0 %1554 }
 0x9ba   :  { %2582 = vmatmul.msk.f32.gmra.mxu3 %vm260_vm2, %v1439_v0  ;;  %v1567_v32 = vpop.permute.xlu1 %1566 }
 0x9be   :  { %2572 = vmatmul.msk.f32.gmra.mxu2 %vm260_vm2, %v3640_v17 }
 0x9c1   :  { %v1569_v10 = vpop.permute.xlu0 %1568 }
 0x9c2   :  { %v1563_v49 = vpop.permute.xlu1 %1562  ;;  %2591 = vmatpush.xpose.msk.msrb.mxu1 %vm260_vm2, %v1569_v10  ;;  %v2933_v10 = vld [vmem:[%s4121_s2 + $0x60] sm:$0xff] }
 0x9c6   :  { %2573 = vmatmul.msk.f32.gmra.mxu2 %vm260_vm2, %v3646_v20  ;;  %2592 = vmatpush.xpose.msk.msrb.mxu1 %vm260_vm2, %v1567_v32 }
 0x9c9   :  { %v1557_v55 = vpop.permute.xlu0 %1556 }
 0x9ca   :  { %v1508_v3 = vpop.permute.xlu1 %1507  ;;  %2593 = vmatpush.xpose.msk.msrb.mxu1 %vm260_vm2, %v1565_v41 }
 0x9cb   :  { %2583 = vmatpush.xpose.msk.msra.mxu0 %vm260_vm2, %v1508_v3 }
 0x9ce   :  { %2574 = vmatmul.msk.f32.gmra.mxu2 %vm260_vm2, %v3650_v63  ;;  %2594 = vmatpush.xpose.msk.msrb.mxu1 %vm260_vm2, %v1563_v49  ;;  %v2934_v49 = vld [vmem:[%s4121_s2 + $0x10] sm:$0xff] }
 0x9cf   :  { %2584 = vmatpush.xpose.msk.msra.mxu0 %vm260_vm2, %v1506_v35 }
 0x9d1   :  { %2595 = vmatmul.msk.f32.vlgmr.msrb.gmra.mxu1 %vm260_vm2, %v1555_v46 }
 0x9d3   :  { %2585 = vmatpush.xpose.msk.msra.mxu0 %vm260_vm2, %v1504_v36 }
 0x9d7   :  { %2586 = vmatpush.xpose.msk.msra.mxu0 %vm260_vm2, %v1502_v42 }
 0x9d9   :  { %2596 = vmatmul.msk.f32.gmra.mxu1 %vm260_vm2, %v1557_v55 }
 0x9da   :  { %2587 = vmatmul.msk.f32.vlgmr.msra.gmra.mxu0 %vm260_vm2, %v1494_v45 }
 0x9e1   :  { %2597 = vmatmul.msk.f32.gmra.mxu1 %vm260_vm2, %v1559_v47 }
 0x9e2   :  { %2588 = vmatmul.msk.f32.gmra.mxu0 %vm260_vm2, %v1496_v9 }
 0x9ea   :  { %2589 = vmatmul.msk.f32.gmra.mxu0 %vm260_vm2, %v1498_v53 }
 0x9f2   :  { %2590 = vmatmul.msk.f32.gmra.mxu0 %vm260_vm2, %v1500_v28 }
 0xa25   :  { %v1481_v23 = vpop.f32.mrf.mxu3 }
 0xa26   :  { %v1482_v60 = vadd.f32 %v2926_v56, %v1481_v23 }
 0xa28   :  { %v1627_v38 = vsel %vm116_vm4, %v1482_v60, -inf }
 0xa29   :  { %1628 = vmax.xlane.f32.xlu1 %v1627_v38 }
 0xa2d   :  { %v1484_v62 = vpop.f32.mrf.mxu3 }
 0xa2e   :  { %v1485_v54 = vadd.f32 %v2927_v31, %v1484_v62 }
 0xa30   :  { %v1630_v58 = vsel %vm116_vm4, %v1485_v54, -inf }
 0xa31   :  { %1631 = vmax.xlane.f32.xlu0 %v1630_v58 }
 0xa35   :  { %v1487_v1 = vpop.f32.mrf.mxu3 }
 0xa36   :  { %v1488_v48 = vadd.f32 %v2928_v2, %v1487_v1  ;;  %v2936_v2 = vld [vmem:[%s4121_s2 + $0x40] sm:$0xff] }
 0xa38   :  { %v1633_v34 = vsel %vm116_vm4, %v1488_v48, -inf }
 0xa39   :  { %1634 = vmax.xlane.f32.xlu2 %v1633_v34  ;;  %v1420_v33 = vpop.f32.mrf.mxu2 }
 0xa3a   :  { %v3795_v35 = vadd.f32 %v2932_v30, %v1420_v33 }
 0xa3c   :  { %v1615_v32 = vsel %vm116_vm4, %v3795_v35, -inf }
 0xa3d   :  { %v1490_v61 = vpop.f32.mrf.mxu3 }
 0xa3e   :  { %v3750_v37 = vadd.f32 %v2929_v40, %v1490_v61 }
 0xa40   :  { %v1636_v4 = vsel %vm116_vm4, %v3750_v37, -inf }
 0xa41   :  { %1637 = vmax.xlane.f32.xlu0 %v1636_v4  ;;  %v1423_v7 = vpop.f32.mrf.mxu2  ;;  %v2937_v4 = vld [vmem:[%s4121_s2 + $0x48] sm:$0xff] }
 0xa42   :  { %1560 = vrot.lane.b32.xlu1 %v3650_v63, %s2975_s24  ;;  %v3771_v8 = vadd.f32 %v2930_v57, %v1423_v7  ;;  %v2938_v57 = vld [vmem:[%s4121_s2 + $0x50] sm:$0xff] }
 0xa44   :  { %v1618_v11 = vsel %vm116_vm4, %v3771_v8, -inf }
 0xa49   :  { %v1426_v45 = vpop.f32.mrf.mxu2 }
 0xa4a   :  { %2717 = vrot.lane.b32.xlu1 %v3758_v5, %s2978_s13  ;;  %v3812_v3 = vadd.f32 %v2934_v49, %v1426_v45 }
 0xa4c   :  { %v1621_v23 = vsel %vm116_vm4, %v3812_v3, -inf }
 0xa4e   :  { %v1603_v18 = vpop.f32.mrf.mxu1 }
 0xa4f   :  { %v3807_v9 = vadd.f32 %v2933_v10, %v1603_v18 }
 0xa51   :  { %2712 = vrot.lane.b32.xlu2 %v3764_v6, %s2978_s13  ;;  %v1651_v47 = vsel %vm116_vm4, %v3807_v9, -inf  ;;  %v1429_v56 = vpop.f32.mrf.mxu2 }
 0xa56   :  { %v1606_v12 = vpop.f32.mrf.mxu1 }
 0xa57   :  { %v3778_v15 = vadd.f32 %v2931_v13, %v1606_v12  ;;  %v1542_v58 = vpop.f32.mrf.mxu0 }
 0xa59   :  { %v1654_v16 = vsel %vm116_vm4, %v3778_v15, -inf }
 0xa5f   :  { %v1545_v40 = vpop.f32.mrf.mxu0 }
 0xa60   :  { %v3840_v33 = vadd.f32 %v2937_v4, %v1545_v40  ;;  %v2941_v40 = vld [vmem:[%s4121_s2 + $0x78] sm:$0xff] }
 0xa62   :  { %v1642_v18 = vsel %vm116_vm4, %v3840_v33, -inf }
 0xa67   :  { %v1548_v7 = vpop.f32.mrf.mxu0 }
 0xa7a   :  { %1619 = vmax.xlane.f32.xlu2 %v1618_v11  ;;  %v3847_v11 = vadd.f32 %v2938_v57, %v1548_v7 }
 0xa7c   :  { %v1645_v12 = vsel %vm116_vm4, %v3847_v11, -inf }
 0xa82   :  { %1655 = vmax.xlane.f32.xlu2 %v1654_v16 }
 0xa9a   :  { %2727 = vrot.lane.b32.xlu2 %v3758_v5, %s2979_s18 }
 0xa9c   :  { %v1629_v59 = vpop.xlane.xlu1 %1628 }
 0xa9d   :  { %v1667_v17 = vsub.f32 %v1482_v60, %v1629_v59  ;;  %v2935_v60 = vld [vmem:[%s4121_s2 + $0x18] sm:$0xff] }
 0xa9e   :  { %v3821_v38 = vadd.f32 %v2935_v60, %v1429_v56  ;;  %v1609_v56 = vpop.f32.mrf.mxu1  ;;  %v2940_v60 = vld [vmem:[%s4121_s2 + $0x70] sm:$0xff] }
 0xa9f   :  { %v1687_v20 = vmul.f32 1.442695, %v1667_v17 }
 0xaa1   :  { %2846 = vpow2.f32 %v1687_v20 }
 0xaa4   :  { %v1632_v63 = vpop.xlane.xlu0 %1631 }
 0xaa5   :  { %v1668_v21 = vsub.f32 %v1485_v54, %v1632_v63  ;;  %v1624_v54 = vsel %vm116_vm4, %v3821_v38, -inf }
 0xaa7   :  { %v3784_v22 = vpop.eup %2846  ;;  %v1689_v39 = vmul.f32 1.442695, %v1668_v21 }
 0xaa8   :  { %v1723_v26 = vsel %vm116_vm4, %v3784_v22, 0.0 }
 0xaa9   :  { %2848 = vpow2.f32 %v1689_v39  ;;  %1724 = vadd.xlane.f32.xlu0 %v1723_v26 }
 0xaac   :  { %v1635_v25 = vpop.xlane.xlu2 %1634 }
 0xaad   :  { %v1669_v27 = vsub.f32 %v1488_v48, %v1635_v25  ;;  %v3829_v48 = vadd.f32 %v2936_v2, %v1542_v58 }
 0xaaf   :  { %v3788_v0 = vpop.eup %2848  ;;  %v1691_v24 = vmul.f32 1.442695, %v1669_v27  ;;  %v1639_v34 = vsel %vm116_vm4, %v3829_v48, -inf }
 0xab0   :  { %v1726_v19 = vsel %vm116_vm4, %v3788_v0, 0.0 }
 0xab1   :  { %2850 = vpow2.f32 %v1691_v24  ;;  %1727 = vadd.xlane.f32.xlu0 %v1726_v19 }
 0xab4   :  { %v2713_v29 = vpop.permute.xlu2 %2712  ;;  %v1561_v36 = vpop.permute.xlu1 %1560 }
 0xab5   :  { %v2714_v14 = vunpack.i.l.bf16 %v2713_v29  ;;  %2598 = vmatmul.msk.f32.gmra.mxu1 %vm260_vm2, %v1561_v36  ;;  %v2715_v42 = vunpack.i.h.bf16 %v2713_v29  ;;  %v1638_v62 = vpop.xlane.xlu0 %1637 }
 0xab6   :  { %v1670_v31 = vsub.f32 %v3750_v37, %v1638_v62  ;;  %v3889_v62 = vadd.f32 %v2940_v60, %v1609_v56 }
 0xab7   :  { %v3798_v41 = vpop.eup %2850  ;;  %1880 = vmatpush.msrb.mxu3 %v2714_v14 }
 0xab8   :  { %v1729_v46 = vsel %vm116_vm4, %v3798_v41, 0.0  ;;  %v1693_v1 = vmul.f32 1.442695, %v1670_v31  ;;  %v1657_v58 = vsel %vm116_vm4, %v3889_v62, -inf }
 0xab9   :  { %1730 = vadd.xlane.f32.xlu1 %v1729_v46  ;;  %1881 = vmatpush.msrb.mxu3 %v2715_v42  ;;  %v1551_v46 = vpop.f32.mrf.mxu0 }
 0xaba   :  { %1616 = vmax.xlane.f32.xlu0 %v1615_v32  ;;  %2852 = vpow2.f32 %v1693_v1  ;;  %v2939_v32 = vld [vmem:[%s4121_s2 + $0x58] sm:$0xff] }
 0xabb   :  { %v3870_v10 = vadd.f32 %v2939_v32, %v1551_v46 }
 0xabc   :  { %v2718_v53 = vpop.permute.xlu1 %2717 }
 0xabd   :  { %v2719_v28 = vunpack.i.l.bf16 %v2718_v53  ;;  %v2720_v55 = vunpack.i.h.bf16 %v2718_v53  ;;  %v1648_v53 = vsel %vm116_vm4, %v3870_v10, -inf }
 0xabf   :  { %1882 = vmatpush.msrb.mxu3 %v2719_v28 }
 0xac0   :  { %v3833_v61 = vpop.eup %2852 }
 0xac1   :  { %1652 = vmax.xlane.f32.xlu1 %v1651_v47  ;;  %1883 = vmatpush.msrb.mxu3 %v2720_v55  ;;  %v1732_v37 = vsel %vm116_vm4, %v3833_v61, 0.0 }
 0xac2   :  { %1622 = vmax.xlane.f32.xlu0 %v1621_v23 }
 0xaca   :  { %1625 = vmax.xlane.f32.xlu0 %v1624_v54 }
 0xad2   :  { %1640 = vmax.xlane.f32.xlu0 %v1639_v34 }
 0xada   :  { %1733 = vadd.xlane.f32.xlu0 %v1732_v37 }
 0xae2   :  { %1643 = vmax.xlane.f32.xlu0 %v1642_v18 }
 0xaea   :  { %1646 = vmax.xlane.f32.xlu0 %v1645_v12 }
 0xaed   :  { %v1620_v19 = vpop.xlane.xlu2 %1619 }
 0xafe   :  { %2722 = vrot.lane.b32.xlu0 %v3764_v6, %s2979_s18 }
 0xb1c   :  { %v1725_v13 = vpop.xlane.xlu0 %1724 }
 0xb1d   :  { %2854 = vrcp.f32 %v1725_v13 }
 0xb23   :  { %v2855_v16 = vpop.eup %2854 }
 0xb24   :  { %v1779_v59 = vmul.f32 %v2855_v16, %v3784_v22  ;;  %v1728_v17 = vpop.xlane.xlu0 %1727 }
 0xb25   :  { %2856 = vrcp.f32 %v1728_v17 }
 0xb26   :  { %2603 = vmatmul.msk.f32.vlgmr.msrb.gmra.mxu3 %vm116_vm4, %v1779_v59 }
 0xb2b   :  { %v2857_v20 = vpop.eup %2856 }
 0xb2c   :  { %v1731_v63 = vpop.xlane.xlu1 %1730  ;;  %v1780_v21 = vmul.f32 %v2857_v20, %v3788_v0  ;;  %v1656_v20 = vpop.xlane.xlu2 %1655 }
 0xb2d   :  { %v1617_v39 = vpop.xlane.xlu0 %1616  ;;  %2858 = vrcp.f32 %v1731_v63 }
 0xb2e   :  { %v1663_v26 = vsub.f32 %v3795_v35, %v1617_v39  ;;  %2604 = vmatmul.msk.f32.gmra.mxu3 %vm116_vm4, %v1780_v21  ;;  %v1664_v35 = vsub.f32 %v3771_v8, %v1620_v19 }
 0xb30   :  { %v1679_v25 = vmul.f32 1.442695, %v1663_v26 }
 0xb32   :  { %2860 = vpow2.f32 %v1679_v25  ;;  %v1612_v1 = vpop.f32.mrf.mxu1 }
 0xb33   :  { %v2859_v27 = vpop.eup %2858  ;;  %v3897_v37 = vadd.f32 %v2941_v40, %v1612_v1 }
 0xb34   :  { %v1653_v24 = vpop.xlane.xlu1 %1652  ;;  %v1781_v22 = vmul.f32 %v2859_v27, %v3798_v41  ;;  %v1681_v41 = vmul.f32 1.442695, %v1664_v35  ;;  %v2728_v26 = vpop.permute.xlu2 %2727 }
 0xb35   :  { %v1623_v29 = vpop.xlane.xlu0 %1622  ;;  %v1675_v30 = vsub.f32 %v3807_v9, %v1653_v24  ;;  %v2729_v27 = vunpack.i.l.bf16 %v2728_v26  ;;  %v1676_v24 = vsub.f32 %v3778_v15, %v1656_v20 }
 0xb36   :  { %v1665_v14 = vsub.f32 %v3812_v3, %v1623_v29  ;;  %2605 = vmatmul.msk.f32.gmra.mxu3 %vm116_vm4, %v1781_v22  ;;  %v2730_v22 = vunpack.i.h.bf16 %v2728_v26 }
 0xb37   :  { %v1703_v0 = vmul.f32 1.442695, %v1675_v30  ;;  %v1705_v19 = vmul.f32 1.442695, %v1676_v24 }
 0xb38   :  { %v3862_v36 = vpop.eup %2860  ;;  %v1683_v42 = vmul.f32 1.442695, %v1665_v14  ;;  %v2564_v14 = vld [vmem:[%s4124_s5 + $0x28] sm:$0xff] }
 0xb39   :  { %2862 = vpow2.f32 %v1703_v0  ;;  %v1711_v45 = vsel %vm116_vm4, %v3862_v36, 0.0  ;;  %1924 = vmatpush.msrb.mxu0 %v2564_v14 }
 0xb3a   :  { %2864 = vpow2.f32 %v1683_v42  ;;  %1712 = vadd.xlane.f32.xlu1 %v1711_v45 }
 0xb3b   :  { %2866 = vpow2.f32 %v1681_v41 }
 0xb3d   :  { %v1626_v9 = vpop.xlane.xlu0 %1625 }
 0xb3f   :  { %v3872_v49 = vpop.eup %2862 }
 0xb40   :  { %v3874_v3 = vpop.eup %2864  ;;  %v1747_v8 = vsel %vm116_vm4, %v3872_v49, 0.0 }
 0xb41   :  { %v1717_v28 = vsel %vm116_vm4, %v3874_v3, 0.0  ;;  %1748 = vadd.xlane.f32.xlu2 %v1747_v8  ;;  %v3882_v47 = vpop.eup %2866 }
 0xb42   :  { %1649 = vmax.xlane.f32.xlu1 %v1648_v53  ;;  %1718 = vadd.xlane.f32.xlu0 %v1717_v28  ;;  %v1714_v23 = vsel %vm116_vm4, %v3882_v47, 0.0 }
 0xb45   :  { %v1641_v55 = vpop.xlane.xlu0 %1640 }
 0xb46   :  { %v1671_v54 = vsub.f32 %v3829_v48, %v1641_v55  ;;  %v1660_v48 = vsel %vm116_vm4, %v3897_v37, -inf }
 0xb48   :  { %v1695_v34 = vmul.f32 1.442695, %v1671_v54 }
 0xb4a   :  { %1715 = vadd.xlane.f32.xlu1 %v1714_v23 }
 0xb4d   :  { %v1734_v31 = vpop.xlane.xlu0 %1733 }
 0xb4e   :  { %2868 = vrcp.f32 %v1734_v31 }
 0xb4f   :  { %2870 = vpow2.f32 %v1695_v34 }
 0xb52   :  { %1658 = vmax.xlane.f32.xlu1 %v1657_v58 }
 0xb54   :  { %v2869_v2 = vpop.eup %2868 }
 0xb55   :  { %v1644_v4 = vpop.xlane.xlu0 %1643  ;;  %v1782_v18 = vmul.f32 %v2869_v2, %v3833_v61  ;;  %v3905_v57 = vpop.eup %2870  ;;  %v1666_v61 = vsub.f32 %v3821_v38, %v1626_v9 }
 0xb56   :  { %2737 = vrot.lane.b32.xlu0 %v3758_v5, %s2981_s12  ;;  %v1735_v16 = vsel %vm116_vm4, %v3905_v57, 0.0  ;;  %v1672_v15 = vsub.f32 %v3840_v33, %v1644_v4 }
 0xb57   :  { %2606 = vmatmul.msk.f32.gmra.mxu3 %vm116_vm4, %v1782_v18  ;;  %v1685_v59 = vmul.f32 1.442695, %v1666_v61 }
 0xb58   :  { %v1697_v0 = vmul.f32 1.442695, %v1672_v15 }
 0xb5a   :  { %1661 = vmax.xlane.f32.xlu1 %v1660_v48 }
 0xb5d   :  { %v1647_v7 = vpop.xlane.xlu0 %1646 }
 0xb5e   :  { %v1673_v12 = vsub.f32 %v3847_v11, %v1647_v7  ;;  %2742 = vrot.lane.b32.xlu0 %v3764_v6, %s2980_s30 }
 0xb60   :  { %v1699_v13 = vmul.f32 1.442695, %v1673_v12 }
 0xb62   :  { %2872 = vpow2.f32 %v1699_v13  ;;  %1736 = vadd.xlane.f32.xlu1 %v1735_v16 }
 0xb63   :  { %2874 = vpow2.f32 %v1685_v59 }
 0xb64   :  { %2876 = vpow2.f32 %v1705_v19 }
 0xb65   :  { %2878 = vpow2.f32 %v1697_v0 }
 0xb68   :  { %v3913_v17 = vpop.eup %2872 }
 0xb69   :  { %v1741_v63 = vsel %vm116_vm4, %v3913_v17, 0.0  ;;  %v3917_v11 = vpop.eup %2874 }
 0xb6a   :  { %1742 = vadd.xlane.f32.xlu2 %v1741_v63  ;;  %v1720_v38 = vsel %vm116_vm4, %v3917_v11, 0.0  ;;  %v3924_v29 = vpop.eup %2876 }
 0xb6b   :  { %v1750_v30 = vsel %vm116_vm4, %v3924_v29, 0.0 }
 0xb70   :  { %v2723_v21 = vpop.permute.xlu0 %2722 }
 0xb71   :  { %v2724_v39 = vunpack.i.l.bf16 %v2723_v21  ;;  %v2725_v25 = vunpack.i.h.bf16 %v2723_v21 }
 0xb72   :  { %1721 = vadd.xlane.f32.xlu2 %v1720_v38 }
 0xb73   :  { %1827 = vmatpush.msrb.mxu2 %v2724_v39 }
 0xb75   :  { %1828 = vmatpush.msrb.mxu2 %v2725_v25 }
 0xb77   :  { %1829 = vmatpush.msrb.mxu2 %v2729_v27 }
 0xb79   :  { %1830 = vmatpush.msrb.mxu2 %v2730_v22 }
 0xb7b   :  { %2732 = vrot.lane.b32.xlu1 %v3764_v6, %s2981_s12  ;;  %v3934_v6 = vpop.eup %2878 }
 0xb7c   :  { %v1738_v35 = vsel %vm116_vm4, %v3934_v6, 0.0 }
 0xb88   :  { %1751 = vadd.xlane.f32.xlu0 %v1750_v30 }
 0xb8a   :  { %2747 = vrot.lane.b32.xlu2 %v3758_v5, %s2980_s30 }
 0xba5   :  { %1739 = vadd.xlane.f32.xlu1 %v1738_v35  ;;  %v2563_v35 = vld [vmem:[%s4124_s5 + $0x20] sm:$0xff] }
 0xba6   :  { %1965 = vmatpush.msra.mxu1 %v2563_v35 }
 0xba9   :  { %v1885_v42 = vpop.f32.mrf.mxu3 }
 0xbaa   :  { %2607 = vmatmul.msk.f32.vlgmr.msrb.gmra.mxu0 %vm260_vm2, %v1885_v42 }
 0xbad   :  { %v1713_v45 = vpop.xlane.xlu1 %1712 }
 0xbae   :  { %2880 = vrcp.f32 %v1713_v45 }
 0xbb1   :  { %v1888_v46 = vpop.f32.mrf.mxu3 }
 0xbb2   :  { %2608 = vmatmul.msk.f32.gmra.mxu0 %vm260_vm2, %v1888_v46 }
 0xbb4   :  { %v2881_v5 = vpop.eup %2880  ;;  %v1749_v7 = vpop.xlane.xlu2 %1748 }
 0xbb5   :  { %v1775_v41 = vmul.f32 %v2881_v5, %v3862_v36  ;;  %v1650_v33 = vpop.xlane.xlu1 %1649  ;;  %v1719_v55 = vpop.xlane.xlu0 %1718 }
 0xbb6   :  { %v1674_v32 = vsub.f32 %v3870_v10, %v1650_v33 }
 0xbb7   :  { %2599 = vmatmul.msk.f32.vlgmr.msrb.gmra.mxu2 %vm116_vm4, %v1775_v41 }
 0xbb8   :  { %v1701_v9 = vmul.f32 1.442695, %v1674_v32 }
 0xbb9   :  { %v1891_v8 = vpop.f32.mrf.mxu3 }
 0xbba   :  { %2882 = vpow2.f32 %v1701_v9  ;;  %2609 = vmatmul.msk.f32.gmra.mxu0 %vm260_vm2, %v1891_v8 }
 0xbbd   :  { %v1716_v53 = vpop.xlane.xlu1 %1715 }
 0xbbe   :  { %2884 = vrcp.f32 %v1716_v53 }
 0xbbf   :  { %2886 = vrcp.f32 %v1719_v55 }
 0xbc0   :  { %v3944_v28 = vpop.eup %2882 }
 0xbc1   :  { %v1744_v23 = vsel %vm116_vm4, %v3944_v28, 0.0 }
 0xbc2   :  { %1745 = vadd.xlane.f32.xlu1 %v1744_v23 }
 0xbc4   :  { %v2885_v36 = vpop.eup %2884 }
 0xbc5   :  { %v1659_v56 = vpop.xlane.xlu1 %1658  ;;  %v1776_v10 = vmul.f32 %v2885_v36, %v3882_v47  ;;  %v2887_v58 = vpop.eup %2886  ;;  %v2565_v36 = vld [vmem:[%s4124_s5 + $0x30] sm:$0xff] }
 0xbc6   :  { %v1677_v60 = vsub.f32 %v3889_v62, %v1659_v56  ;;  %v1777_v2 = vmul.f32 %v2887_v58, %v3874_v3  ;;  %v2566_v56 = vld [vmem:[%s4124_s5 + $0x38] sm:$0xff]  ;;  %2059 = vmatpush.msra.mxu3 %v2565_v36  ;;  %v4042_v36 = vld [vmem:[%s4125_s6 + $0x1] ss:$0 sm:$0xff] }
 0xbc7   :  { %2600 = vmatmul.msk.f32.gmra.mxu2 %vm116_vm4, %v1776_v10  ;;  %2157 = vmatpush.msrb.mxu1 %v2566_v56 }
 0xbc8   :  { %v1707_v31 = vmul.f32 1.442695, %v1677_v60  ;;  %v2738_v54 = vpop.permute.xlu0 %2737 }
 0xbc9   :  { %v2739_v19 = vunpack.i.l.bf16 %v2738_v54  ;;  %v2740_v30 = vunpack.i.h.bf16 %v2738_v54 }
 0xbca   :  { %2888 = vpow2.f32 %v1707_v31 }
 0xbcd   :  { %v1662_v1 = vpop.xlane.xlu1 %1661 }
 0xbce   :  { %v1678_v34 = vsub.f32 %v3897_v37, %v1662_v1 }
 0xbcf   :  { %2601 = vmatmul.msk.f32.gmra.mxu2 %vm116_vm4, %v1777_v2 }
 0xbd0   :  { %v3954_v40 = vpop.eup %2888  ;;  %v1709_v4 = vmul.f32 1.442695, %v1678_v34  ;;  %v2743_v18 = vpop.permute.xlu0 %2742 }
 0xbd1   :  { %v2744_v47 = vunpack.i.l.bf16 %v2743_v18  ;;  %v1753_v62 = vsel %vm116_vm4, %v3954_v40, 0.0  ;;  %v2745_v48 = vunpack.i.h.bf16 %v2743_v18 }
 0xbd2   :  { %2890 = vpow2.f32 %v1709_v4  ;;  %1754 = vadd.xlane.f32.xlu2 %v1753_v62 }
 0xbd3   :  { %2113 = vmatpush.msra.mxu0 %v2744_v47 }
 0xbd5   :  { %2114 = vmatpush.msra.mxu0 %v2745_v48  ;;  %v1737_v13 = vpop.xlane.xlu1 %1736 }
 0xbd8   :  { %v3958_v12 = vpop.eup %2890 }
 0xbd9   :  { %v1756_v3 = vsel %vm116_vm4, %v3958_v12, 0.0 }
 0xbda   :  { %1757 = vadd.xlane.f32.xlu1 %v1756_v3  ;;  %v1894_v37 = vpop.f32.mrf.mxu3 }
 0xbdb   :  { %2610 = vmatmul.msk.f32.gmra.mxu0 %vm260_vm2, %v1894_v37 }
 0xbdd   :  { %v1743_v61 = vpop.xlane.xlu2 %1742 }
 0xbe5   :  { %v1722_v16 = vpop.xlane.xlu2 %1721 }
 0xbe6   :  { %2892 = vrcp.f32 %v1722_v16 }
 0xbe7   :  { %2894 = vrcp.f32 %v1749_v7 }
 0xbe8   :  { %2896 = vrcp.f32 %v1737_v13 }
 0xbec   :  { %v2893_v59 = vpop.eup %2892 }
 0xbed   :  { %v2748_v20 = vpop.permute.xlu2 %2747  ;;  %v2733_v63 = vpop.permute.xlu1 %2732  ;;  %v1778_v21 = vmul.f32 %v2893_v59, %v3917_v11 }
 0xbee   :  { %v2895_v39 = vpop.eup %2894  ;;  %v2749_v38 = vunpack.i.l.bf16 %v2748_v20  ;;  %v2734_v26 = vunpack.i.l.bf16 %v2733_v63  ;;  %v2750_v25 = vunpack.i.h.bf16 %v2748_v20  ;;  %v2735_v27 = vunpack.i.h.bf16 %v2733_v63 }
 0xbef   :  { %2602 = vmatmul.msk.f32.gmra.mxu2 %vm116_vm4, %v1778_v21  ;;  %v1787_v24 = vmul.f32 %v2895_v39, %v3872_v49  ;;  %v2897_v22 = vpop.eup %2896 }
 0xbf0   :  { %2015 = vmatpush.msra.mxu2 %v2734_v26  ;;  %2115 = vmatpush.msra.mxu0 %v2749_v38  ;;  %v1783_v11 = vmul.f32 %v2897_v22, %v3905_v57 }
 0xbf2   :  { %2016 = vmatpush.msra.mxu2 %v2735_v27  ;;  %2116 = vmatpush.msra.mxu0 %v2750_v25 }
 0xbf3   :  { %2623 = vmatmul.msk.f32.vlgmr.msra.gmra.mxu0 %vm116_vm4, %v1787_v24 }
 0xbf4   :  { %2017 = vmatpush.msra.mxu2 %v2739_v19 }
 0xbf6   :  { %2018 = vmatpush.msra.mxu2 %v2740_v30 }
 0xbf7   :  { %2615 = vmatmul.msk.f32.vlgmr.msra.gmra.mxu2 %vm116_vm4, %v1783_v11 }
 0xbfb   :  { %v1752_v14 = vpop.xlane.xlu0 %1751 }
 0xbfc   :  { %2898 = vrcp.f32 %v1752_v14 }
 0xc02   :  { %v2899_v15 = vpop.eup %2898 }
 0xc03   :  { %v1788_v0 = vmul.f32 %v2899_v15, %v3924_v29 }
 0xc05   :  { %2624 = vmatmul.msk.f32.gmra.mxu0 %vm116_vm4, %v1788_v0 }
 0xc18   :  { %v1740_v49 = vpop.xlane.xlu1 %1739 }
 0xc19   :  { %2900 = vrcp.f32 %v1740_v49 }
 0xc1a   :  { %2902 = vrcp.f32 %v1743_v61 }
 0xc1f   :  { %v2901_v42 = vpop.eup %2900 }
 0xc20   :  { %v1784_v57 = vmul.f32 %v2901_v42, %v3934_v6  ;;  %v2903_v45 = vpop.eup %2902 }
 0xc21   :  { %v1785_v46 = vmul.f32 %v2903_v45, %v3913_v17 }
 0xc22   :  { %2616 = vmatmul.msk.f32.gmra.mxu2 %vm116_vm4, %v1784_v57 }
 0xc27   :  { %v1926_v23 = vpop.f32.mrf.mxu0 }
 0xc2a   :  { %2617 = vmatmul.msk.f32.gmra.mxu2 %vm116_vm4, %v1785_v46 }
 0xc2f   :  { %v1929_v10 = vpop.f32.mrf.mxu0 }
 0xc35   :  { %v1746_v29 = vpop.xlane.xlu1 %1745 }
 0xc36   :  { %2904 = vrcp.f32 %v1746_v29 }
 0xc37   :  { %v1932_v60 = vpop.f32.mrf.mxu0 }
 0xc3a   :  { %v1832_v5 = vpop.f32.mrf.mxu2 }
 0xc3b   :  { %2611 = vmatmul.msk.f32.vlgmr.msra.gmra.mxu1 %vm260_vm2, %v1832_v5  ;;  %v2635_v5 = vld [vmem:[%s4126_s7 + $0x38] sm:$0xff] }
 0xc3c   :  { %v2905_v41 = vpop.eup %2904  ;;  %2285 = vmatpush.msrb.mxu2 %v2635_v5  ;;  %v2641_v5 = vld [vmem:[%s4127_s8 + $0x48] sm:$0xff] }
 0xc3d   :  { %v1786_v33 = vmul.f32 %v2905_v41, %v3944_v28  ;;  %v2634_v41 = vld [vmem:[%s4126_s7 + $0x30] sm:$0xff] }
 0xc3e   :  { %2286 = vmatpush.msrb.mxu2 %v2634_v41  ;;  %v2640_v41 = vld [vmem:[%s4127_s8 + $0x40] sm:$0xff] }
 0xc3f   :  { %2618 = vmatmul.msk.f32.gmra.mxu2 %vm116_vm4, %v1786_v33  ;;  %v2632_v33 = vld [vmem:[%s4126_s7 + $0x20] sm:$0xff] }
 0xc45   :  { %v1755_v32 = vpop.xlane.xlu2 %1754 }
 0xc46   :  { %2906 = vrcp.f32 %v1755_v32 }
 0xc4a   :  { %v1835_v6 = vpop.f32.mrf.mxu2 }
 0xc4b   :  { %2612 = vmatmul.msk.f32.gmra.mxu1 %vm260_vm2, %v1835_v6 }
 0xc4c   :  { %v2907_v9 = vpop.eup %2906 }
 0xc4d   :  { %v1758_v8 = vpop.xlane.xlu1 %1757  ;;  %v1789_v17 = vmul.f32 %v2907_v9, %v3954_v40 }
 0xc4e   :  { %2908 = vrcp.f32 %v1758_v8 }
 0xc4f   :  { %2625 = vmatmul.msk.f32.gmra.mxu0 %vm116_vm4, %v1789_v17 }
 0xc52   :  { %v1838_v53 = vpop.f32.mrf.mxu2 }
 0xc53   :  { %2613 = vmatmul.msk.f32.gmra.mxu1 %vm260_vm2, %v1838_v53 }
 0xc54   :  { %v2909_v55 = vpop.eup %2908 }
 0xc55   :  { %v1790_v28 = vmul.f32 %v2909_v55, %v3958_v12 }
 0xc57   :  { %2626 = vmatmul.msk.f32.gmra.mxu0 %vm116_vm4, %v1790_v28 }
 0xc58   :  { %v1935_v31 = vpop.f32.mrf.mxu0 }
 0xc70   :  { %v2118_v58 = vpop.f32.mrf.mxu0 }
 0xc72   :  { %v1841_v54 = vpop.f32.mrf.mxu2 }
 0xc73   :  { %2614 = vmatmul.msk.f32.gmra.mxu1 %vm260_vm2, %v1841_v54 }
 0xc7a   :  { %v2020_v1 = vpop.f32.mrf.mxu2 }
 0xc7b   :  { %2619 = vmatmul.msk.f32.vlgmr.msra.gmra.mxu3 %vm260_vm2, %v2020_v1  ;;  %2627 = vmatmul.msk.f32.vlgmr.msrb.gmra.mxu1 %vm260_vm2, %v2118_v58 }
 0xc82   :  { %v2121_v2 = vpop.f32.mrf.mxu0 }
 0xc83   :  { %2628 = vmatmul.msk.f32.gmra.mxu1 %vm260_vm2, %v2121_v2 }
 0xca5   :  { %v2023_v34 = vpop.f32.mrf.mxu2 }
 0xca6   :  { %2620 = vmatmul.msk.f32.gmra.mxu3 %vm260_vm2, %v2023_v34 }
 0xcad   :  { %v2026_v40 = vpop.f32.mrf.mxu2 }
 0xcae   :  { %2621 = vmatmul.msk.f32.gmra.mxu3 %vm260_vm2, %v2026_v40 }
 0xcb8   :  { %v1967_v62 = vpop.f32.mrf.mxu1 }
 0xcb9   :  { %v1968_v3 = vadd.f32 %v1967_v62, %v1926_v23 }
 0xcc2   :  { %v2029_v4 = vpop.f32.mrf.mxu2 }
 0xcc3   :  { %2622 = vmatmul.msk.f32.gmra.mxu3 %vm260_vm2, %v2029_v4 }
 0xcc8   :  { %v1970_v48 = vpop.f32.mrf.mxu1 }
 0xcc9   :  { %v1971_v21 = vadd.f32 %v1970_v48, %v1929_v10 }
 0xccc   :  { %v2124_v18 = vpop.f32.mrf.mxu0 }
 0xccd   :  { %2629 = vmatmul.msk.f32.gmra.mxu1 %vm260_vm2, %v2124_v18 }
 0xcd0   :  { %v1973_v7 = vpop.f32.mrf.mxu1 }
 0xcd1   :  { %v1974_v19 = vadd.f32 %v1973_v7, %v1932_v60 }
 0xcd4   :  { %v2127_v47 = vpop.f32.mrf.mxu0 }
 0xcd5   :  { %2630 = vmatmul.msk.f32.gmra.mxu1 %vm260_vm2, %v2127_v47 }
 0xcf0   :  { %v1976_v12 = vpop.f32.mrf.mxu1 }
 0xcf1   :  { %v1977_v49 = vadd.f32 %v1976_v12, %v1935_v31 }
 0xcf8   :  { %v2159_v13 = vpop.f32.mrf.mxu1 }
 0xcfe   :  { %v2061_v37 = vpop.f32.mrf.mxu3 }
 0xcff   :  { %v2073_v61 = vadd.f32 %v2061_v37, %v1968_v3  ;;  %v2647_v37 = vld [vmem:[%s4127_s8 + $0x78] sm:$0xff] }
 0xd00   :  { %v2162_v26 = vpop.f32.mrf.mxu1  ;;  %2335 = vmatpush.msrb.mxu3 %v2647_v37 }
 0xd01   :  { %v2171_v16 = vadd.f32 %v2159_v13, %v2073_v61  ;;  %v2646_v61 = vld [vmem:[%s4127_s8 + $0x70] sm:$0xff]  ;;  %v2645_v13 = vld [vmem:[%s4127_s8 + $0x68] sm:$0xff] }
 0xd02   :  { %2336 = vmatpush.msrb.mxu3 %v2646_v61 }
 0xd03   :  { %v4003_v59 = vadd.f32 %v2171_v16, %v3588_v43  ;;  %v2644_v16 = vld [vmem:[%s4127_s8 + $0x60] sm:$0xff] }
 0xd04   :  { %2337 = vmatpush.msrb.mxu3 %v2645_v13 }
 0xd05   :  { %v2181_v20 = vmul.f32 %v4003_v59, %v4003_v59 }
 0xd06   :  { %2338 = vmatpush.msrb.mxu3 %v2644_v16 }
 0xd07   :  { %v2185_v63 = vsel %vm116_vm4, %v2181_v20, 0.0 }
 0xd08   :  { %2186 = vadd.xlane.f32.xlu1 %v2185_v63 }
 0xd29   :  { %v2064_v39 = vpop.f32.mrf.mxu3 }
 0xd2a   :  { %v2074_v38 = vadd.f32 %v2064_v39, %v1971_v21  ;;  %v2643_v21 = vld [vmem:[%s4127_s8 + $0x58] sm:$0xff] }
 0xd2b   :  { %2339 = vmatpush.msrb.mxu3 %v2643_v21 }
 0xd2c   :  { %v2172_v25 = vadd.f32 %v2162_v26, %v2074_v38  ;;  %v2642_v26 = vld [vmem:[%s4127_s8 + $0x50] sm:$0xff] }
 0xd2d   :  { %2340 = vmatpush.msrb.mxu3 %v2642_v26 }
 0xd2e   :  { %v4009_v27 = vadd.f32 %v2172_v25, %v3594_v51 }
 0xd2f   :  { %2341 = vmatpush.msrb.mxu3 %v2641_v5 }
 0xd30   :  { %v2182_v24 = vmul.f32 %v4009_v27, %v4009_v27 }
 0xd31   :  { %v2067_v22 = vpop.f32.mrf.mxu3  ;;  %2342 = vmatpush.msrb.mxu3 %v2640_v41 }
 0xd32   :  { %v2188_v43 = vsel %vm116_vm4, %v2182_v24, 0.0  ;;  %v2075_v30 = vadd.f32 %v2067_v22, %v1974_v19 }
 0xd33   :  { %2189 = vadd.xlane.f32.xlu0 %v2188_v43 }
 0xd46   :  { %v2070_v0 = vpop.f32.mrf.mxu3 }
 0xd47   :  { %v2076_v35 = vadd.f32 %v2070_v0, %v1977_v49 }
 0xd4a   :  { %v2165_v11 = vpop.f32.mrf.mxu1 }
 0xd4b   :  { %v2173_v14 = vadd.f32 %v2165_v11, %v2075_v30 }
 0xd4d   :  { %v4015_v15 = vadd.f32 %v2173_v14, %v3600_v44 }
 0xd4f   :  { %v2183_v51 = vmul.f32 %v4015_v15, %v4015_v15 }
 0xd51   :  { %v2191_v42 = vsel %vm116_vm4, %v2183_v51, 0.0 }
 0xd52   :  { %2192 = vadd.xlane.f32.xlu1 %v2191_v42  ;;  %v2168_v57 = vpop.f32.mrf.mxu1 }
 0xd53   :  { %v2174_v45 = vadd.f32 %v2168_v57, %v2076_v35 }
 0xd55   :  { %v4021_v46 = vadd.f32 %v2174_v45, %v3606_v52  ;;  %v2633_v52 = vld [vmem:[%s4126_s7 + $0x28] sm:$0xff] }
 0xd56   :  { %2287 = vmatpush.msrb.mxu2 %v2633_v52 }
 0xd57   :  { %v2184_v29 = vmul.f32 %v4021_v46, %v4021_v46 }
 0xd58   :  { %2288 = vmatpush.msrb.mxu2 %v2632_v33 }
 0xd59   :  { %v2194_v44 = vsel %vm116_vm4, %v2184_v29, 0.0 }
 0xd5a   :  { %2195 = vadd.xlane.f32.xlu0 %v2194_v44 }
 0xd7b   :  { %v2187_v32 = vpop.xlane.xlu1 %2186 }
 0xd7c   :  { %v2197_v6 = vmul.f32 %v2187_v32, %v3132_v50 }
 0xd7e   :  { %v2201_v9 = vadd.f32 1e-06, %v2197_v6 }
 0xd80   :  { %2910 = vrsqrt.f32 %v2201_v9  ;;  %vm2211_vm15 = vweird.f32 %v2201_v9 }
 0xd86   :  { %v2911_v8 = vpop.eup %2910 }
 0xd87   :  { %v2206_v17 = vmul.f32 %v2911_v8, %v2201_v9  ;;  %vm2212_vm2 = vweird.f32 %v2911_v8 }
 0xd88   :  { %vm2213_vm1 = vmor %vm2211_vm15, %vm2212_vm2 }
 0xd89   :  { %v2207_v53 = vmul.f32 %v2911_v8, %v2206_v17 }
 0xd8b   :  { %v2208_v55 = vmul.f32 0.5, %v2207_v53 }
 0xd8d   :  { %v2209_v28 = vsub.f32 1.5, %v2208_v55 }
 0xd8f   :  { %v2210_v23 = vmul.f32 %v2911_v8, %v2209_v28 }
 0xd91   :  { %v2214_v56 = vsel %vm2213_vm1, %v2911_v8, %v2210_v23 }
 0xd92   :  { %v2245_v10 = vmul.f32 %v2214_v56, %v4003_v59 }
 0xd94   :  { %v2252_v60 = vmul.f32 %v4042_v36, %v2245_v10 }
 0xd96   :  { %2636 = vmatmul.msk.f32.vlgmr.msrb.gmra.mxu2 %vm116_vm4, %v2252_v60 }
 0xda6   :  { %v2190_v31 = vpop.xlane.xlu0 %2189 }
 0xda7   :  { %v2198_v54 = vmul.f32 %v2190_v31, %v3132_v50 }
 0xda9   :  { %v2202_v58 = vadd.f32 1e-06, %v2198_v54 }
 0xdab   :  { %2912 = vrsqrt.f32 %v2202_v58  ;;  %vm2221_vm5 = vweird.f32 %v2202_v58 }
 0xdb1   :  { %v2913_v1 = vpop.eup %2912 }
 0xdb2   :  { %v2216_v2 = vmul.f32 %v2913_v1, %v2202_v58  ;;  %vm2222_vm3 = vweird.f32 %v2913_v1 }
 0xdb3   :  { %vm2223_vm6 = vmor %vm2221_vm5, %vm2222_vm3 }
 0xdb4   :  { %v2217_v34 = vmul.f32 %v2913_v1, %v2216_v2 }
 0xdb6   :  { %v2218_v40 = vmul.f32 0.5, %v2217_v34 }
 0xdb8   :  { %v2219_v4 = vsub.f32 1.5, %v2218_v40 }
 0xdba   :  { %v2220_v18 = vmul.f32 %v2913_v1, %v2219_v4 }
 0xdbc   :  { %v2224_v47 = vsel %vm2223_vm6, %v2913_v1, %v2220_v18 }
 0xdbd   :  { %v2246_v62 = vmul.f32 %v2224_v47, %v4009_v27 }
 0xdbf   :  { %v2253_v48 = vmul.f32 %v4042_v36, %v2246_v62 }
 0xdc1   :  { %2637 = vmatmul.msk.f32.gmra.mxu2 %vm116_vm4, %v2253_v48 }
 0xdc5   :  { %v2193_v7 = vpop.xlane.xlu1 %2192 }
 0xdc6   :  { %v2199_v12 = vmul.f32 %v2193_v7, %v3132_v50 }
 0xdc8   :  { %v2203_v3 = vadd.f32 1e-06, %v2199_v12 }
 0xdca   :  { %2914 = vrsqrt.f32 %v2203_v3  ;;  %vm2231_vm8 = vweird.f32 %v2203_v3 }
 0xdcd   :  { %v2196_v20 = vpop.xlane.xlu0 %2195 }
 0xdce   :  { %v2200_v63 = vmul.f32 %v2196_v20, %v3132_v50 }
 0xdd0   :  { %v2915_v39 = vpop.eup %2914  ;;  %v2204_v38 = vadd.f32 1e-06, %v2200_v63 }
 0xdd1   :  { %v2226_v25 = vmul.f32 %v2915_v39, %v2203_v3  ;;  %vm2232_vm7 = vweird.f32 %v2915_v39 }
 0xdd2   :  { %2916 = vrsqrt.f32 %v2204_v38  ;;  %vm2233_vm9 = vmor %vm2231_vm8, %vm2232_vm7  ;;  %vm2241_vm11 = vweird.f32 %v2204_v38 }
 0xdd3   :  { %v2227_v24 = vmul.f32 %v2915_v39, %v2226_v25 }
 0xdd5   :  { %v2228_v43 = vmul.f32 0.5, %v2227_v24 }
 0xdd7   :  { %v2229_v22 = vsub.f32 1.5, %v2228_v43 }
 0xdd8   :  { %v2917_v19 = vpop.eup %2916 }
 0xdd9   :  { %v2230_v30 = vmul.f32 %v2915_v39, %v2229_v22  ;;  %v2236_v11 = vmul.f32 %v2917_v19, %v2204_v38  ;;  %vm2242_vm10 = vweird.f32 %v2917_v19 }
 0xdda   :  { %vm2243_vm12 = vmor %vm2241_vm11, %vm2242_vm10 }
 0xddb   :  { %v2234_v14 = vsel %vm2233_vm9, %v2915_v39, %v2230_v30  ;;  %v2237_v0 = vmul.f32 %v2917_v19, %v2236_v11 }
 0xddc   :  { %v2247_v49 = vmul.f32 %v2234_v14, %v4015_v15 }
 0xddd   :  { %v2238_v51 = vmul.f32 0.5, %v2237_v0 }
 0xdde   :  { %v2254_v35 = vmul.f32 %v4042_v36, %v2247_v49 }
 0xddf   :  { %v2239_v42 = vsub.f32 1.5, %v2238_v51 }
 0xde0   :  { %2638 = vmatmul.msk.f32.gmra.mxu2 %vm116_vm4, %v2254_v35 }
 0xde1   :  { %v2240_v57 = vmul.f32 %v2917_v19, %v2239_v42 }
 0xde3   :  { %v2244_v45 = vsel %vm2243_vm12, %v2917_v19, %v2240_v57 }
 0xde4   :  { %v2248_v29 = vmul.f32 %v2244_v45, %v4021_v46 }
 0xde6   :  { %v2255_v44 = vmul.f32 %v4042_v36, %v2248_v29 }
 0xde8   :  { %2639 = vmatmul.msk.f32.gmra.mxu2 %vm116_vm4, %v2255_v44 }
 0xe19   :  { %v2290_v52 = vpop.f32.mrf.mxu2 }
 0xe1a   :  { %v2302_v33 = vmax.f32 %v2290_v52, 0.0 }
 0xe1c   :  { %2648 = vmatmul.msk.f32.vlgmr.msrb.gmra.mxu3 %vm1201_vm0, %v2302_v33 }
 0xe44   :  { %v2293_v32 = vpop.f32.mrf.mxu2 }
 0xe45   :  { %v2303_v6 = vmax.f32 %v2293_v32, 0.0 }
 0xe47   :  { %2649 = vmatmul.msk.f32.gmra.mxu3 %vm1201_vm0, %v2303_v6 }
 0xe63   :  { %v2296_v9 = vpop.f32.mrf.mxu2 }
 0xe64   :  { %v2304_v8 = vmax.f32 %v2296_v9, 0.0 }
 0xe66   :  { %2650 = vmatmul.msk.f32.gmra.mxu3 %vm1201_vm0, %v2304_v8 }
 0xe6b   :  { %v2299_v17 = vpop.f32.mrf.mxu2 }
 0xe6c   :  { %v2305_v53 = vmax.f32 %v2299_v17, 0.0 }
 0xe6e   :  { %2651 = vmatmul.msk.f32.gmra.mxu3 %vm1201_vm0, %v2305_v53 }
 0xe9f   :  { %v2344_v55 = vpop.f32.mrf.mxu3 }
 0xea0   :  { %v2356_v28 = vadd.f32 %v2344_v55, %v4003_v59 }
 0xea2   :  { %v2361_v23 = vmul.f32 %v2356_v28, %v2356_v28 }
 0xea4   :  { %v2365_v36 = vsel %vm116_vm4, %v2361_v23, 0.0 }
 0xea5   :  { %2366 = vadd.xlane.f32.xlu1 %v2365_v36 }
 0xeca   :  { %v2347_v56 = vpop.f32.mrf.mxu3 }
 0xecb   :  { %v2357_v10 = vadd.f32 %v2347_v56, %v4009_v27 }
 0xecd   :  { %v2362_v60 = vmul.f32 %v2357_v10, %v2357_v10 }
 0xecf   :  { %v2368_v31 = vsel %vm116_vm4, %v2362_v60, 0.0 }
 0xed0   :  { %2369 = vadd.xlane.f32.xlu0 %v2368_v31 }
 0xee9   :  { %v2350_v54 = vpop.f32.mrf.mxu3 }
 0xeea   :  { %v4092_v58 = vadd.f32 %v2350_v54, %v4015_v15 }
 0xeec   :  { %v2363_v1 = vmul.f32 %v4092_v58, %v4092_v58 }
 0xeee   :  { %v2371_v59 = vsel %vm116_vm4, %v2363_v1, 0.0 }
 0xeef   :  { %2372 = vadd.xlane.f32.xlu1 %v2371_v59 }
 0xef1   :  { %v2353_v2 = vpop.f32.mrf.mxu3 }
 0xef2   :  { %v4098_v34 = vadd.f32 %v2353_v2, %v4021_v46  ;;  %v2755_v46 = vld [vmem:[%s4128_s9] ss:$0 sm:$0xff]  ;;  %s2982_s9 = smov [#allocation2]  }
 0xef3   :  { %s2444_s17 = sshll.u32 %s2982_s9, 4  ;;  %s2445_s17 = int_to_ptr.vmem [resolvable:$true] %s2444_s17 }
 0xef4   :  { %v2364_v27 = vmul.f32 %v4098_v34, %v4098_v34 }
 0xef6   :  { %v2374_v40 = vsel %vm116_vm4, %v2364_v27, 0.0 }
 0xef7   :  { %2375 = vadd.xlane.f32.xlu2 %v2374_v40 }
 0xf18   :  { %v2367_v4 = vpop.xlane.xlu1 %2366 }
 0xf19   :  { %v2377_v15 = vmul.f32 %v2367_v4, %v3132_v50 }
 0xf1b   :  { %v2381_v18 = vadd.f32 1e-06, %v2377_v15 }
 0xf1d   :  { %2918 = vrsqrt.f32 %v2381_v18  ;;  %vm2391_vm13 = vweird.f32 %v2381_v18 }
 0xf23   :  { %v2919_v47 = vpop.eup %2918 }
 0xf24   :  { %v2386_v62 = vmul.f32 %v2919_v47, %v2381_v18  ;;  %vm2392_vm0 = vweird.f32 %v2919_v47 }
 0xf25   :  { %vm2393_vm14 = vmor %vm2391_vm13, %vm2392_vm0 }
 0xf26   :  { %v2387_v48 = vmul.f32 %v2919_v47, %v2386_v62 }
 0xf28   :  { %v2388_v7 = vmul.f32 0.5, %v2387_v48 }
 0xf2a   :  { %v2389_v12 = vsub.f32 1.5, %v2388_v7 }
 0xf2c   :  { %v2390_v3 = vmul.f32 %v2919_v47, %v2389_v12 }
 0xf2e   :  { %v2394_v37 = vsel %vm2393_vm14, %v2919_v47, %v2390_v3 }
 0xf2f   :  { %v2425_v61 = vmul.f32 %v2394_v37, %v2356_v28 }
 0xf31   :  { %v2432_v13 = vmul.f32 %v2755_v46, %v2425_v61 }
 0xf33   :  { %2436 = vst.msk [vmem:[#allocation2] sm:$0xff] %vm116_vm4, %v2432_v13 }
 0xf43   :  { %v2370_v16 = vpop.xlane.xlu0 %2369 }
 0xf44   :  { %v2378_v20 = vmul.f32 %v2370_v16, %v3132_v50 }
 0xf46   :  { %v2382_v63 = vadd.f32 1e-06, %v2378_v20 }
 0xf48   :  { %2920 = vrsqrt.f32 %v2382_v63  ;;  %vm2401_vm15 = vweird.f32 %v2382_v63 }
 0xf4e   :  { %v2921_v21 = vpop.eup %2920 }
 0xf4f   :  { %v2396_v39 = vmul.f32 %v2921_v21, %v2382_v63  ;;  %vm2402_vm2 = vweird.f32 %v2921_v21 }
 0xf50   :  { %vm2403_vm1 = vmor %vm2401_vm15, %vm2402_vm2 }
 0xf51   :  { %v2397_v38 = vmul.f32 %v2921_v21, %v2396_v39 }
 0xf53   :  { %v2398_v26 = vmul.f32 0.5, %v2397_v38 }
 0xf55   :  { %v2399_v25 = vsub.f32 1.5, %v2398_v26 }
 0xf57   :  { %v2400_v24 = vmul.f32 %v2921_v21, %v2399_v25 }
 0xf59   :  { %v2404_v43 = vsel %vm2403_vm1, %v2921_v21, %v2400_v24 }
 0xf5a   :  { %v2426_v22 = vmul.f32 %v2404_v43, %v2357_v10 }
 0xf5c   :  { %v2433_v19 = vmul.f32 %v2755_v46, %v2426_v22 }
 0xf5e   :  { %2437 = vst.msk [vmem:[#allocation2 + $0x8] sm:$0xff] %vm116_vm4, %v2433_v19 }
 0xf62   :  { %v2373_v30 = vpop.xlane.xlu1 %2372 }
 0xf63   :  { %v2379_v11 = vmul.f32 %v2373_v30, %v3132_v50 }
 0xf65   :  { %v2383_v14 = vadd.f32 1e-06, %v2379_v11 }
 0xf67   :  { %2922 = vrsqrt.f32 %v2383_v14  ;;  %vm2411_vm5 = vweird.f32 %v2383_v14 }
 0xf6a   :  { %v2376_v0 = vpop.xlane.xlu2 %2375 }
 0xf6b   :  { %v2380_v49 = vmul.f32 %v2376_v0, %v3132_v50 }
 0xf6d   :  { %v2923_v51 = vpop.eup %2922  ;;  %v2384_v35 = vadd.f32 1e-06, %v2380_v49 }
 0xf6e   :  { %v2406_v42 = vmul.f32 %v2923_v51, %v2383_v14  ;;  %vm2412_vm3 = vweird.f32 %v2923_v51 }
 0xf6f   :  { %2924 = vrsqrt.f32 %v2384_v35  ;;  %vm2413_vm6 = vmor %vm2411_vm5, %vm2412_vm3  ;;  %vm2421_vm8 = vweird.f32 %v2384_v35 }
 0xf70   :  { %v2407_v57 = vmul.f32 %v2923_v51, %v2406_v42 }
 0xf72   :  { %v2408_v45 = vmul.f32 0.5, %v2407_v57 }
 0xf74   :  { %v2409_v29 = vsub.f32 1.5, %v2408_v45 }
 0xf75   :  { %v2925_v44 = vpop.eup %2924 }
 0xf76   :  { %v2410_v5 = vmul.f32 %v2923_v51, %v2409_v29  ;;  %v2416_v41 = vmul.f32 %v2925_v44, %v2384_v35  ;;  %vm2422_vm7 = vweird.f32 %v2925_v44 }
 0xf77   :  { %vm2423_vm9 = vmor %vm2421_vm8, %vm2422_vm7 }
 0xf78   :  { %v2414_v52 = vsel %vm2413_vm6, %v2923_v51, %v2410_v5  ;;  %v2417_v33 = vmul.f32 %v2925_v44, %v2416_v41 }
 0xf79   :  { %v2427_v32 = vmul.f32 %v2414_v52, %v4092_v58 }
 0xf7a   :  { %v2418_v6 = vmul.f32 0.5, %v2417_v33 }
 0xf7b   :  { %v2434_v9 = vmul.f32 %v2755_v46, %v2427_v32 }
 0xf7c   :  { %v2419_v50 = vsub.f32 1.5, %v2418_v6 }
 0xf7d   :  { %2438 = vst.msk [vmem:[#allocation2 + $0x10] sm:$0xff] %vm116_vm4, %v2434_v9 }
 0xf7e   :  { %v2420_v8 = vmul.f32 %v2925_v44, %v2419_v50 }
 0xf80   :  { %v2424_v17 = vsel %vm2423_vm9, %v2925_v44, %v2420_v8 }
 0xf81   :  { %v2428_v53 = vmul.f32 %v2424_v17, %v4098_v34 }
 0xf83   :  { %v2435_v55 = vmul.f32 %v2755_v46, %v2428_v53 }
 0xf85   :  { %2439 = vst.msk [vmem:[#allocation2 + $0x18] sm:$0xff] %vm116_vm4, %v2435_v55 }
 0xf86   :  { %2452 = dma.vmem_to_hbm [thread:$0]  %s2445_s17, 512, %s2447_s27, [#allocation3], %s2983_s28, %s2983_s28, %s2984_s29  }
 0xf87   :  { %2966 = dma.done.wait [#allocation3], 512  }
 0xf88   :  { %2967 = vsyncadd [#allocation3], 4294966784 }
 0xf89   :  { %2457 = vsyncpa [#allocation3], 1 }

</bundles_post_ra>
